<compile_context>
chip_gen: v7x
topology: tpu7x:2x2x1
jax: 0.10.0
libtpu: 0.0.40
codegen_flags: <defaults>
</compile_context>

<pallas_src>
import functools
import numpy as np

import jax
import jax.numpy as jnp
from jax import lax
from jax.experimental import pallas as pl
from jax.experimental.pallas import tpu as pltpu


# ---------------------------------------------------------------------------
# Kernel: all dilation splits fused — grouped dilated 3x3 conv + concat + bias
# ---------------------------------------------------------------------------
def _dilated_conv_kernel(x_ref, w_ref, b_ref, o_ref, *, dilations, stride,
                         has_bias, compute_dtype):
    num_splits = len(dilations)
    c_total = x_ref.shape[-1]
    temp = c_total // num_splits
    ho, wo = o_ref.shape[1], o_ref.shape[2]

    x_full = x_ref[0]                                     # (H, W, C_total)
    h, w_sp = x_full.shape[0], x_full.shape[1]

    parts = []
    for i, d in enumerate(dilations):
        xi = x_full[:, :, i * temp:(i + 1) * temp]        # (H, W, temp)

        # Build the halo'd (H+2d, W+2d, temp) tile in VMEM (no HBM pad copy).
        zh = jnp.zeros((d, w_sp, temp), xi.dtype)
        xp = jnp.concatenate([zh, xi, zh], axis=0)        # (H+2d, W, temp)
        zw = jnp.zeros((h + 2 * d, d, temp), xi.dtype)
        xp = jnp.concatenate([zw, xp, zw], axis=1)        # (H+2d, W+2d, temp)

        acc = jnp.zeros((ho, wo, temp), jnp.float32)
        for kh in range(3):
            # Concatenate the 3 kw-shifted patches -> one K = 3*temp matmul.
            cols = []
            for kw in range(3):
                h0, w0 = kh * d, kw * d
                patch = xp[h0:h0 + (ho - 1) * stride + 1:stride,
                           w0:w0 + (wo - 1) * stride + 1:stride, :]
                cols.append(patch)
            slab = jnp.concatenate(cols, axis=-1)         # (Ho, Wo, 3*temp)
            wk = w_ref[i, kh]                             # (3*temp, temp)
            if compute_dtype is not None:
                slab = slab.astype(compute_dtype)
                wk = wk.astype(compute_dtype)
            acc = acc + lax.dot_general(
                slab, wk, (((2,), (0,)), ((), ())),
                preferred_element_type=jnp.float32)
        parts.append(acc)

    out = jnp.concatenate(parts, axis=-1)                 # (Ho, Wo, C_total)
    if has_bias:
        out = out + b_ref[...]                            # (1, C) broadcast
    o_ref[0] = out.astype(o_ref.dtype)


def dilated_conv(x_nhwc, w_slabs, bias, *, dilations, stride,
                 compute_dtype=None):
    n, h, w_sp, c = x_nhwc.shape
    num_splits = len(dilations)
    temp = c // num_splits
    ho = (h - 1) // stride + 1
    wo = (w_sp - 1) // stride + 1

    has_bias = bias is not None
    if bias is None:
        bias = jnp.zeros((c,), x_nhwc.dtype)

    kernel = functools.partial(
        _dilated_conv_kernel, dilations=tuple(dilations), stride=stride,
        has_bias=has_bias, compute_dtype=compute_dtype)

    return pl.pallas_call(
        kernel,
        out_shape=jax.ShapeDtypeStruct((n, ho, wo, c), x_nhwc.dtype),
        grid=(n,),
        in_specs=[
            pl.BlockSpec((1, h, w_sp, c), lambda i: (i, 0, 0, 0)),
            pl.BlockSpec((num_splits, 3, 3 * temp, temp),
                         lambda i: (0, 0, 0, 0)),
            pl.BlockSpec((1, c), lambda i: (0, 0)),
        ],
        out_specs=pl.BlockSpec((1, ho, wo, c), lambda i: (i, 0, 0, 0)),
        compiler_params=pltpu.CompilerParams(
            dimension_semantics=("parallel",)),
    )(x_nhwc, w_slabs, bias.reshape(1, c))


# ---------------------------------------------------------------------------
# Parameter preparation / glue
# ---------------------------------------------------------------------------
def build_weight_slabs(w_splits, group_width):
    """Convert per-split PyTorch Conv2d weights (temp, group_width, 3, 3)
    into MXU-friendly slabs (num_splits, 3, 3*temp, temp):
    block-diagonal over groups, kw taps concatenated along the K axis."""
    slabs = []
    for w_t in w_splits:
        w_np = np.asarray(w_t)                            # (temp, gw, 3, 3)
        temp = w_np.shape[0]
        groups = temp // group_width
        dense = np.zeros((3, 3, temp, temp), np.float32)  # (kh, kw, cin, cout)
        for g in range(groups):
            lo, hi = g * group_width, (g + 1) * group_width
            # dense[kh, kw, cin, cout] = w[cout, cin_local, kh, kw]
            dense[:, :, lo:hi, lo:hi] = np.transpose(w_np[lo:hi], (2, 3, 1, 0))
        per_kh = [np.concatenate([dense[kh, 0], dense[kh, 1], dense[kh, 2]],
                                 axis=0) for kh in range(3)]   # (3*temp, temp)
        slabs.append(np.stack(per_kh, axis=0))                 # (3, 3*temp, temp)
    return jnp.asarray(np.stack(slabs, axis=0))


def dilated_conv_forward(x_nchw, params, *, dilations, group_width, stride,
                         compute_dtype=None):
    num_splits = len(dilations)
    c = x_nchw.shape[1]
    assert c % num_splits == 0
    temp = c // num_splits
    assert temp % group_width == 0

    x = jnp.transpose(x_nchw, (0, 2, 3, 1))               # NCHW -> NHWC
    w_slabs = build_weight_slabs(params["w"], group_width)
    bias = (jnp.concatenate(params["b"], axis=0)
            if params["b"] is not None else None)
    y = dilated_conv(x, w_slabs, bias, dilations=dilations, stride=stride,
                     compute_dtype=compute_dtype)
    return jnp.transpose(y, (0, 3, 1, 2))                 # NHWC -> NCHW


def init_params(key, w_total, num_splits, group_width, bias=True):
    temp = w_total // num_splits
    keys = jax.random.split(key, 2 * num_splits)
    ws, bs = [], []
    for i in range(num_splits):
        ws.append(0.1 * jax.random.normal(
            keys[2 * i], (temp, group_width, 3, 3), jnp.float32))
        bs.append(0.05 * jax.random.normal(keys[2 * i + 1], (temp,),
                                           jnp.float32))
    return {"w": ws, "b": bs if bias else None}


# ---------------------------------------------------------------------------
# Pure-JAX reference (lax grouped dilated conv) for the correctness check
# ---------------------------------------------------------------------------
def ref_forward(x_nchw, params, *, dilations, group_width, stride):
    x = jnp.transpose(x_nchw, (0, 2, 3, 1))
    c = x.shape[-1]
    num_splits = len(dilations)
    temp = c // num_splits
    outs = []
    for i, d in enumerate(dilations):
        xi = x[..., i * temp:(i + 1) * temp]
        w_hwio = jnp.transpose(params["w"][i], (2, 3, 1, 0))   # (3,3,gw,temp)
        groups = temp // group_width
        yi = lax.conv_general_dilated(
            xi, w_hwio, window_strides=(stride, stride),
            padding=((d, d), (d, d)), rhs_dilation=(d, d),
            dimension_numbers=("NHWC", "HWIO", "NHWC"),
            feature_group_count=groups)
        if params["b"] is not None:
            yi = yi + params["b"][i]
        outs.append(yi)
    return jnp.transpose(jnp.concatenate(outs, axis=-1), (0, 3, 1, 2))


if __name__ == "__main__":
    # Small shapes consistent with the module: total width 128 split over two
    # dilations (1, 2), group_width 16 -> 4 groups of 16 channels per split.
    N = 2
    W_TOTAL = 128
    H = W = 16
    DILATIONS = (1, 2)
    GROUP_WIDTH = 16
    STRIDE = 1

    key = jax.random.PRNGKey(0)
    kx, kp = jax.random.split(key)
    x = jax.random.normal(kx, (N, W_TOTAL, H, W), jnp.float32)     # NCHW
    params = init_params(kp, W_TOTAL, len(DILATIONS), GROUP_WIDTH, bias=True)

    out = dilated_conv_forward(x, params, dilations=DILATIONS,
                               group_width=GROUP_WIDTH, stride=STRIDE)
    out = jax.block_until_ready(out)
    assert out.shape == (N, W_TOTAL, H, W), out.shape

    ref = jax.block_until_ready(
        ref_forward(x, params, dilations=DILATIONS,
                    group_width=GROUP_WIDTH, stride=STRIDE))

    if np.allclose(np.asarray(out), np.asarray(ref), rtol=1e-3, atol=1e-3):
        print("KERNEL_OK")
    else:
        print("MISMATCH",
              float(np.max(np.abs(np.asarray(out) - np.asarray(ref)))))
</pallas_src>

<mosaic_0001>
module attributes {stable_mosaic.version = 11 : i64} {
  func.func @_dilated_conv_kernel(%arg0: i32, %arg1: memref<1x16x16x128xf32, #tpu.memory_space<vmem>>, %arg2: memref<2x3x192x64xf32, #tpu.memory_space<vmem>>, %arg3: memref<1x128xf32, #tpu.memory_space<vmem>>, %arg4: memref<1x16x16x128xf32, #tpu.memory_space<vmem>>) attributes {dimension_semantics = [#tpu.dimension_semantics<parallel>], iteration_bounds = array<i64: 2>, scalar_prefetch = 0 : i64, scratch_operands = 0 : i64, tpu.core_type = #tpu.core_type<tc>, window_params = [{transform_indices = @transform_0, window_bounds = array<i64: 1, 16, 16, 128>}, {pipeline_mode = #tpu.pipeline_mode<synchronous>, transform_indices = @transform_1, window_bounds = array<i64: 2, 3, 192, 64>}, {pipeline_mode = #tpu.pipeline_mode<synchronous>, transform_indices = @transform_2, window_bounds = array<i64: 1, 128>}, {transform_indices = @transform_3, window_bounds = array<i64: 1, 16, 16, 128>}]} {
    %c0 = arith.constant 0 : index
    %c0_0 = arith.constant 0 : index
    %c0_1 = arith.constant 0 : index
    %c0_2 = arith.constant 0 : index
    %0 = vector.load %arg1[%c0, %c0_0, %c0_1, %c0_2] : memref<1x16x16x128xf32, #tpu.memory_space<vmem>>, vector<1x16x16x128xf32>
    %1 = vector.shape_cast %0 : vector<1x16x16x128xf32> to vector<16x16x128xf32>
    %2 = vector.extract_strided_slice %1 {offsets = [0, 0, 0], sizes = [16, 16, 64], strides = [1, 1, 1]} : vector<16x16x128xf32> to vector<16x16x64xf32>
    %cst = arith.constant 0.000000e+00 : f32
    %3 = vector.broadcast %cst : f32 to vector<1x16x64xf32>
    %4 = tpu.concatenate %3, %2, %3 in 0 : vector<1x16x64xf32>, vector<16x16x64xf32>, vector<1x16x64xf32> -> vector<18x16x64xf32>
    %cst_3 = arith.constant 0.000000e+00 : f32
    %5 = vector.broadcast %cst_3 : f32 to vector<18x1x64xf32>
    %6 = tpu.concatenate %5, %4, %5 in 1 : vector<18x1x64xf32>, vector<18x16x64xf32>, vector<18x1x64xf32> -> vector<18x18x64xf32>
    %cst_4 = arith.constant 0.000000e+00 : f32
    %7 = vector.broadcast %cst_4 : f32 to vector<16x16x64xf32>
    %8 = vector.extract_strided_slice %6 {offsets = [0, 0, 0], sizes = [16, 16, 64], strides = [1, 1, 1]} : vector<18x18x64xf32> to vector<16x16x64xf32>
    %9 = vector.extract_strided_slice %6 {offsets = [0, 1, 0], sizes = [16, 16, 64], strides = [1, 1, 1]} : vector<18x18x64xf32> to vector<16x16x64xf32>
    %10 = vector.extract_strided_slice %6 {offsets = [0, 2, 0], sizes = [16, 16, 64], strides = [1, 1, 1]} : vector<18x18x64xf32> to vector<16x16x64xf32>
    %11 = tpu.concatenate %8, %9, %10 in 2 : vector<16x16x64xf32>, vector<16x16x64xf32>, vector<16x16x64xf32> -> vector<16x16x192xf32>
    %c0_5 = arith.constant 0 : index
    %c0_6 = arith.constant 0 : index
    %c0_7 = arith.constant 0 : index
    %c0_8 = arith.constant 0 : index
    %12 = vector.load %arg2[%c0_5, %c0_6, %c0_7, %c0_8] : memref<2x3x192x64xf32, #tpu.memory_space<vmem>>, vector<1x1x192x64xf32>
    %13 = vector.shape_cast %12 : vector<1x1x192x64xf32> to vector<192x64xf32>
    %cst_9 = arith.constant dense<0.000000e+00> : vector<16x16x64xf32>
    %14 = tpu.matmul %11, %13, %cst_9 {dimension_numbers = #tpu.dot_dimension_numbers<[2], [0], [0, 1], [1], [0, 0, 0, 1, 1, 1], [], []>} : vector<16x16x192xf32>, vector<192x64xf32>, vector<16x16x64xf32> -> vector<16x16x64xf32>
    %15 = arith.addf %7, %14 : vector<16x16x64xf32>
    %16 = vector.extract_strided_slice %6 {offsets = [1, 0, 0], sizes = [16, 16, 64], strides = [1, 1, 1]} : vector<18x18x64xf32> to vector<16x16x64xf32>
    %17 = vector.extract_strided_slice %6 {offsets = [1, 1, 0], sizes = [16, 16, 64], strides = [1, 1, 1]} : vector<18x18x64xf32> to vector<16x16x64xf32>
    %18 = vector.extract_strided_slice %6 {offsets = [1, 2, 0], sizes = [16, 16, 64], strides = [1, 1, 1]} : vector<18x18x64xf32> to vector<16x16x64xf32>
    %19 = tpu.concatenate %16, %17, %18 in 2 : vector<16x16x64xf32>, vector<16x16x64xf32>, vector<16x16x64xf32> -> vector<16x16x192xf32>
    %c0_10 = arith.constant 0 : index
    %c1 = arith.constant 1 : index
    %c0_11 = arith.constant 0 : index
    %c0_12 = arith.constant 0 : index
    %20 = vector.load %arg2[%c0_10, %c1, %c0_11, %c0_12] : memref<2x3x192x64xf32, #tpu.memory_space<vmem>>, vector<1x1x192x64xf32>
    %21 = vector.shape_cast %20 : vector<1x1x192x64xf32> to vector<192x64xf32>
    %cst_13 = arith.constant dense<0.000000e+00> : vector<16x16x64xf32>
    %22 = tpu.matmul %19, %21, %cst_13 {dimension_numbers = #tpu.dot_dimension_numbers<[2], [0], [0, 1], [1], [0, 0, 0, 1, 1, 1], [], []>} : vector<16x16x192xf32>, vector<192x64xf32>, vector<16x16x64xf32> -> vector<16x16x64xf32>
    %23 = arith.addf %15, %22 : vector<16x16x64xf32>
    %24 = vector.extract_strided_slice %6 {offsets = [2, 0, 0], sizes = [16, 16, 64], strides = [1, 1, 1]} : vector<18x18x64xf32> to vector<16x16x64xf32>
    %25 = vector.extract_strided_slice %6 {offsets = [2, 1, 0], sizes = [16, 16, 64], strides = [1, 1, 1]} : vector<18x18x64xf32> to vector<16x16x64xf32>
    %26 = vector.extract_strided_slice %6 {offsets = [2, 2, 0], sizes = [16, 16, 64], strides = [1, 1, 1]} : vector<18x18x64xf32> to vector<16x16x64xf32>
    %27 = tpu.concatenate %24, %25, %26 in 2 : vector<16x16x64xf32>, vector<16x16x64xf32>, vector<16x16x64xf32> -> vector<16x16x192xf32>
    %c0_14 = arith.constant 0 : index
    %c2 = arith.constant 2 : index
    %c0_15 = arith.constant 0 : index
    %c0_16 = arith.constant 0 : index
    %28 = vector.load %arg2[%c0_14, %c2, %c0_15, %c0_16] : memref<2x3x192x64xf32, #tpu.memory_space<vmem>>, vector<1x1x192x64xf32>
    %29 = vector.shape_cast %28 : vector<1x1x192x64xf32> to vector<192x64xf32>
    %cst_17 = arith.constant dense<0.000000e+00> : vector<16x16x64xf32>
    %30 = tpu.matmul %27, %29, %cst_17 {dimension_numbers = #tpu.dot_dimension_numbers<[2], [0], [0, 1], [1], [0, 0, 0, 1, 1, 1], [], []>} : vector<16x16x192xf32>, vector<192x64xf32>, vector<16x16x64xf32> -> vector<16x16x64xf32>
    %31 = arith.addf %23, %30 : vector<16x16x64xf32>
    %32 = vector.extract_strided_slice %1 {offsets = [0, 0, 64], sizes = [16, 16, 64], strides = [1, 1, 1]} : vector<16x16x128xf32> to vector<16x16x64xf32>
    %cst_18 = arith.constant 0.000000e+00 : f32
    %33 = vector.broadcast %cst_18 : f32 to vector<2x16x64xf32>
    %34 = tpu.concatenate %33, %32, %33 in 0 : vector<2x16x64xf32>, vector<16x16x64xf32>, vector<2x16x64xf32> -> vector<20x16x64xf32>
    %cst_19 = arith.constant 0.000000e+00 : f32
    %35 = vector.broadcast %cst_19 : f32 to vector<20x2x64xf32>
    %36 = tpu.concatenate %35, %34, %35 in 1 : vector<20x2x64xf32>, vector<20x16x64xf32>, vector<20x2x64xf32> -> vector<20x20x64xf32>
    %cst_20 = arith.constant 0.000000e+00 : f32
    %37 = vector.broadcast %cst_20 : f32 to vector<16x16x64xf32>
    %38 = vector.extract_strided_slice %36 {offsets = [0, 0, 0], sizes = [16, 16, 64], strides = [1, 1, 1]} : vector<20x20x64xf32> to vector<16x16x64xf32>
    %39 = vector.extract_strided_slice %36 {offsets = [0, 2, 0], sizes = [16, 16, 64], strides = [1, 1, 1]} : vector<20x20x64xf32> to vector<16x16x64xf32>
    %40 = vector.extract_strided_slice %36 {offsets = [0, 4, 0], sizes = [16, 16, 64], strides = [1, 1, 1]} : vector<20x20x64xf32> to vector<16x16x64xf32>
    %41 = tpu.concatenate %38, %39, %40 in 2 : vector<16x16x64xf32>, vector<16x16x64xf32>, vector<16x16x64xf32> -> vector<16x16x192xf32>
    %c1_21 = arith.constant 1 : index
    %c0_22 = arith.constant 0 : index
    %c0_23 = arith.constant 0 : index
    %c0_24 = arith.constant 0 : index
    %42 = vector.load %arg2[%c1_21, %c0_22, %c0_23, %c0_24] : memref<2x3x192x64xf32, #tpu.memory_space<vmem>>, vector<1x1x192x64xf32>
    %43 = vector.shape_cast %42 : vector<1x1x192x64xf32> to vector<192x64xf32>
    %cst_25 = arith.constant dense<0.000000e+00> : vector<16x16x64xf32>
    %44 = tpu.matmul %41, %43, %cst_25 {dimension_numbers = #tpu.dot_dimension_numbers<[2], [0], [0, 1], [1], [0, 0, 0, 1, 1, 1], [], []>} : vector<16x16x192xf32>, vector<192x64xf32>, vector<16x16x64xf32> -> vector<16x16x64xf32>
    %45 = arith.addf %37, %44 : vector<16x16x64xf32>
    %46 = vector.extract_strided_slice %36 {offsets = [2, 0, 0], sizes = [16, 16, 64], strides = [1, 1, 1]} : vector<20x20x64xf32> to vector<16x16x64xf32>
    %47 = vector.extract_strided_slice %36 {offsets = [2, 2, 0], sizes = [16, 16, 64], strides = [1, 1, 1]} : vector<20x20x64xf32> to vector<16x16x64xf32>
    %48 = vector.extract_strided_slice %36 {offsets = [2, 4, 0], sizes = [16, 16, 64], strides = [1, 1, 1]} : vector<20x20x64xf32> to vector<16x16x64xf32>
    %49 = tpu.concatenate %46, %47, %48 in 2 : vector<16x16x64xf32>, vector<16x16x64xf32>, vector<16x16x64xf32> -> vector<16x16x192xf32>
    %c1_26 = arith.constant 1 : index
    %c1_27 = arith.constant 1 : index
    %c0_28 = arith.constant 0 : index
    %c0_29 = arith.constant 0 : index
    %50 = vector.load %arg2[%c1_26, %c1_27, %c0_28, %c0_29] : memref<2x3x192x64xf32, #tpu.memory_space<vmem>>, vector<1x1x192x64xf32>
    %51 = vector.shape_cast %50 : vector<1x1x192x64xf32> to vector<192x64xf32>
    %cst_30 = arith.constant dense<0.000000e+00> : vector<16x16x64xf32>
    %52 = tpu.matmul %49, %51, %cst_30 {dimension_numbers = #tpu.dot_dimension_numbers<[2], [0], [0, 1], [1], [0, 0, 0, 1, 1, 1], [], []>} : vector<16x16x192xf32>, vector<192x64xf32>, vector<16x16x64xf32> -> vector<16x16x64xf32>
    %53 = arith.addf %45, %52 : vector<16x16x64xf32>
    %54 = vector.extract_strided_slice %36 {offsets = [4, 0, 0], sizes = [16, 16, 64], strides = [1, 1, 1]} : vector<20x20x64xf32> to vector<16x16x64xf32>
    %55 = vector.extract_strided_slice %36 {offsets = [4, 2, 0], sizes = [16, 16, 64], strides = [1, 1, 1]} : vector<20x20x64xf32> to vector<16x16x64xf32>
    %56 = vector.extract_strided_slice %36 {offsets = [4, 4, 0], sizes = [16, 16, 64], strides = [1, 1, 1]} : vector<20x20x64xf32> to vector<16x16x64xf32>
    %57 = tpu.concatenate %54, %55, %56 in 2 : vector<16x16x64xf32>, vector<16x16x64xf32>, vector<16x16x64xf32> -> vector<16x16x192xf32>
    %c1_31 = arith.constant 1 : index
    %c2_32 = arith.constant 2 : index
    %c0_33 = arith.constant 0 : index
    %c0_34 = arith.constant 0 : index
    %58 = vector.load %arg2[%c1_31, %c2_32, %c0_33, %c0_34] : memref<2x3x192x64xf32, #tpu.memory_space<vmem>>, vector<1x1x192x64xf32>
    %59 = vector.shape_cast %58 : vector<1x1x192x64xf32> to vector<192x64xf32>
    %cst_35 = arith.constant dense<0.000000e+00> : vector<16x16x64xf32>
    %60 = tpu.matmul %57, %59, %cst_35 {dimension_numbers = #tpu.dot_dimension_numbers<[2], [0], [0, 1], [1], [0, 0, 0, 1, 1, 1], [], []>} : vector<16x16x192xf32>, vector<192x64xf32>, vector<16x16x64xf32> -> vector<16x16x64xf32>
    %61 = arith.addf %53, %60 : vector<16x16x64xf32>
    %62 = tpu.concatenate %31, %61 in 2 : vector<16x16x64xf32>, vector<16x16x64xf32> -> vector<16x16x128xf32>
    %c0_36 = arith.constant 0 : index
    %c0_37 = arith.constant 0 : index
    %63 = vector.load %arg3[%c0_36, %c0_37] : memref<1x128xf32, #tpu.memory_space<vmem>>, vector<1x128xf32>
    %64 = vector.shape_cast %63 : vector<1x128xf32> to vector<1x1x128xf32>
    %65 = vector.broadcast %64 : vector<1x1x128xf32> to vector<16x16x128xf32>
    %66 = arith.addf %62, %65 : vector<16x16x128xf32>
    %c0_38 = arith.constant 0 : index
    %c0_39 = arith.constant 0 : index
    %c0_40 = arith.constant 0 : index
    %c0_41 = arith.constant 0 : index
    %67 = vector.load %arg4[%c0_38, %c0_39, %c0_40, %c0_41] : memref<1x16x16x128xf32, #tpu.memory_space<vmem>>, vector<1x16x16x128xf32>
    %68 = vector.shape_cast %67 : vector<1x16x16x128xf32> to vector<16x16x128xf32>
    %69 = vector.shape_cast %66 : vector<16x16x128xf32> to vector<1x16x16x128xf32>
    tpu.vector_store %arg4[%c0_38, %c0_39, %c0_40, %c0_41], %69 {strides = array<i32>} : memref<1x16x16x128xf32, #tpu.memory_space<vmem>>, vector<1x16x16x128xf32>,
    return
  }
  func.func @transform_0(%arg0: i32) -> (i32, i32, i32, i32) {
    %c0_i32 = arith.constant 0 : i32
    %c0_i32_0 = arith.constant 0 : i32
    %c0_i32_1 = arith.constant 0 : i32
    %c0_i32_2 = arith.constant 0 : i32
    return %arg0, %c0_i32, %c0_i32_0, %c0_i32_1 : i32, i32, i32, i32
  }
  func.func @transform_1(%arg0: i32) -> (i32, i32, i32, i32) {
    %c0_i32 = arith.constant 0 : i32
    %c0_i32_0 = arith.constant 0 : i32
    %c0_i32_1 = arith.constant 0 : i32
    %c0_i32_2 = arith.constant 0 : i32
    %c0_i32_3 = arith.constant 0 : i32
    return %c0_i32, %c0_i32_0, %c0_i32_1, %c0_i32_2 : i32, i32, i32, i32
  }
  func.func @transform_2(%arg0: i32) -> (i32, i32) {
    %c0_i32 = arith.constant 0 : i32
    %c0_i32_0 = arith.constant 0 : i32
    %c0_i32_1 = arith.constant 0 : i32
    return %c0_i32, %c0_i32_0 : i32, i32
  }
  func.func @transform_3(%arg0: i32) -> (i32, i32, i32, i32) {
    %c0_i32 = arith.constant 0 : i32
    %c0_i32_0 = arith.constant 0 : i32
    %c0_i32_1 = arith.constant 0 : i32
    %c0_i32_2 = arith.constant 0 : i32
    return %arg0, %c0_i32, %c0_i32_0, %c0_i32_1 : i32, i32, i32, i32
  }
}

</mosaic_0001>

<bundles_post_ra>
// kernel: tpu_custom_call.1
= control target key start
LH: loop header
LB: loop body
LE: loop exit
PB: predicated region body
PF: predicated region fallthrough
CT: control target
= control target key end

     0   :  { %8 = vsyncpa [#allocation3], 0  ;;  %s7070_s0 = inlined_call_operand.vmem [shape: f32[2,16,16,128], index: 0, kind: input, shape index: {}]   ;;  %s7071_s1 = inlined_call_operand.vmem [shape: f32[2,3,192,64], index: 1, kind: input, shape index: {}]   ;;  %s7072_s2 = inlined_call_operand.vmem [shape: f32[1,128], index: 2, kind: input, shape index: {}]   ;;  %s7073_s3 = inlined_call_operand.hbm [shape: f32[2,16,16,128], index: 3, kind: output, shape index: {}]  }
   0x1   :  { %10 = vsyncpa [#allocation3 + $0x1], 0  ;;  %s4191_s12 = smov 0   ;;  %s4193_s13 = smov 0  }
   0x2   :  { %s4195_s14 = smov 0   ;;  %s4197_s15 = smov 0  }
   0x3 LB: > { %s4212_s16 = sadd.s32 4294967295, %s4163_s15   ;;  %s3258_s17 = sadd.s32 4294967294, %s4163_s15   ;;  %s4163_s15 = sphi %s4197_s15, %s7746_s15   ;;  %s4159_s14 = sphi %s4195_s14, %s7745_s14   ;;  %s4155_s13 = sphi %s4193_s13, %s7744_s13   ;;  %s4151_s12 = sphi %s4191_s12, %s7743_s12  }
   0x4   : > { %s4216_s18 = sadd.s32 1, %s4163_s15   ;;  %s91_s19 = sadd.s32 1, %s4159_s14 }
   0x5   : > { %s88_s20 = ssub.s32 %s4163_s15, %s4216_s18  ;;  %p101_p0 = scmp.ne.s32.totalorder %s4159_s14, %s4155_s13 }
   0x6   : > { %p89_p1 = scmp.eq.s32.totalorder %s88_s20, 0  ;;  %p102_p2 = scmp.eq.s32.totalorder %s4212_s16, 1 }
   0x7   : > { %p107_p3 = scmp.ne.s32.totalorder %s4155_s13, %s4151_s12  ;;  %p108_p4 = scmp.eq.s32.totalorder %s3258_s17, 1 }
   0x8   : > { %s4227_s21 = scalar_select %p89_p1, %s4159_s14, %s91_s19  }
   0x9   : > { %p4229_p5 = por %p102_p2, %p101_p0  ;;  %p4233_p6 = por %p108_p4, %p107_p3 }
   0xa   : > { %p3261_p7 = scmp.ge.s32.totalorder %s4163_s15, 1  ;;  %p140_p8 = scmp.lt.s32.totalorder %s4163_s15, 3 }
   0xc   : > { %p141_p9 = pnand %p3261_p7, %p140_p8 }
   0xe   : > { %144 = sbr.rel (%p141_p9) target bundleno = 1048 (0x418), region = 32 }
  0x15   : > { %p164_p10 = scmp.lt.s32.totalorder %s4212_s16, 1  ;;  %vm234_vm0 = vcmask 1040384   ;;  %s4165_s29 = smov 64   ;;  %v7089_v45 = vmov 0.0|0.0   ;;  %v3433_v46 = vld [vmem:[%s7071_s1 + $0x300] sm:$0xff]  ;;  %v3434_v47 = vld [vmem:[%s7071_s1 + $0x308] sm:$0xff] }
  0x16   : > { %3693 = vmatprep.subr.bf16.mxu1 %v7089_v45  ;;  %3585 = vmatprep.subr.bf16.mxu0 %v7089_v45  ;;  %v3694_v48 = vpack.c.bf16 %v3434_v47, %v3433_v46  ;;  %v3435_v49 = vld [vmem:[%s7071_s1 + $0x310] sm:$0xff]  ;;  %v3436_v50 = vld [vmem:[%s7071_s1 + $0x318] sm:$0xff]  ;;  %v3437_v52 = vld [vmem:[%s7071_s1 + $0x320] sm:$0xff]  ;;  %vm1625_vm1 = vcmask 1041408   ;;  %vm659_vm2 = vcmask 523264   ;;  %vm1955_vm3 = vcmask 1043456  }
  0x17   : > { %s165_s24 = scalar_select %p164_p10, %s4212_s16, 1  ;;  %v3697_v51 = vpack.c.bf16 %v3436_v50, %v3435_v49  ;;  %v3438_v53 = vld [vmem:[%s7071_s1 + $0x328] sm:$0xff]  ;;  %v3439_v55 = vld [vmem:[%s7071_s1 + $0x330] sm:$0xff]  ;;  %v3440_v56 = vld [vmem:[%s7071_s1 + $0x338] sm:$0xff]  ;;  %vm578_vm4 = vcmask 1045504   ;;  %vm401_vm5 = vcmask 1046528  }
  0x18   : > { %3695 = vmatpush1.bf16.msra.mxu1 %v3694_v48  ;;  %v3700_v54 = vpack.c.bf16 %v3438_v53, %v3437_v52  ;;  %v3703_v57 = vpack.c.bf16 %v3440_v56, %v3439_v55  ;;  %v3441_v58 = vld [vmem:[%s7071_s1 + $0x340] sm:$0xff]  ;;  %v3442_v59 = vld [vmem:[%s7071_s1 + $0x348] sm:$0xff]  ;;  %v3443_v61 = vld [vmem:[%s7071_s1 + $0x350] sm:$0xff]  ;;  %s161_s5 = sand.u32 1, %s4155_s13   ;;  %s4168_s20 = smov [#allocation2]  }
  0x19   : > { %s3583_s25 = sshll.u32 %s165_s24, 8  ;;  %3696 = vmatprep.subr.bf16.mxu1 %v7089_v45  ;;  %v3706_v60 = vpack.c.bf16 %v3442_v59, %v3441_v58  ;;  %v3444_v62 = vld [vmem:[%s7071_s1 + $0x358] sm:$0xff]  ;;  %v3445_v46 = vld [vmem:[%s7071_s1 + $0x360] sm:$0xff]  ;;  %v3446_v47 = vld [vmem:[%s7071_s1 + $0x368] sm:$0xff]  ;;  %s3262_s6 = sshll.u32 %s161_s5, 8 }
  0x1a   : > { %s4244_s28 = scalar_lea.vmem %s7070_s0, %s3583_s25  ;;  %v3709_v63 = vpack.c.bf16 %v3444_v62, %v3443_v61  ;;  %v3712_v48 = vpack.c.bf16 %v3446_v47, %v3445_v46  ;;  %v3447_v49 = vld [vmem:[%s7071_s1 + $0x370] sm:$0xff]  ;;  %v3448_v50 = vld [vmem:[%s7071_s1 + $0x378] sm:$0xff]  ;;  %v3449_v52 = vld [vmem:[%s7071_s1 + $0x380] sm:$0xff]  ;;  %s6857_s8 = scalar_lea.vmem [#allocation2], %s3262_s6 }
  0x1b   : > { %v4247_v0 = vld [vmem:[%s4244_s28] sm:$0xff]  ;;  %v4250_v1 = vld [vmem:[%s4244_s28 + $0x10] sm:$0xff]  ;;  %v4253_v2 = vld [vmem:[%s4244_s28 + $0x8] sm:$0xff]  ;;  %s3196_s9 = sshll.u32 %s6857_s8, 4  ;;  %s4105_s24 = sshll.u32 %s4168_s20, 4  ;;  %s7023_s9 = int_to_ptr.vmem [resolvable:$true] %s3196_s9  ;;  %s4106_s24 = int_to_ptr.vmem [resolvable:$false] %s4105_s24 }
  0x1c   : > { %1561 = vrot.lane.b32.xlu0 %v4247_v0, %s4165_s29  ;;  %v7093_v3 = vrot.slane %v4247_v0, 7  ;;  %1565 = vrot.lane.b32.xlu1 %v4250_v1, %s4165_s29  ;;  %v7091_v4 = vrot.slane %v4250_v1, 7  ;;  %v7092_v5 = vrot.slane %v4253_v2, 7  ;;  %v4263_v6 = vld [vmem:[%s4244_s28 + $0x18] sm:$0xff]  ;;  %v4274_v9 = vld [vmem:[%s4244_s28 + $0x28] sm:$0xff]  ;;  %s4101_s19 = scalar_lea.vmem %s7023_s9, 4096  ;;  %p4108_p0 = scmp.lt.s32.totalorder %s7023_s9, %s4106_s24 }
  0x1d   : > { %v7088_v7 = vrot.slane %v4263_v6, 7  ;;  %v7086_v11 = vrot.slane %v4274_v9, 7  ;;  %v4289_v12 = vld [vmem:[%s4244_s28 + $0x20] sm:$0xff]  ;;  %v4292_v13 = vld [vmem:[%s4244_s28 + $0x38] sm:$0xff]  ;;  %v4295_v14 = vld [vmem:[%s4244_s28 + $0x30] sm:$0xff]  ;;  %3698 = vmatpush1.bf16.msra.mxu1 %v3697_v51  ;;  %v3715_v51 = vpack.c.bf16 %v3448_v50, %v3447_v49  ;;  %p4102_p11 = scmp.ne.s32.totalorder %s7023_s9, %s4101_s19  ;;  %s4107_s25 = scalar_lea.vmem %s4106_s24, 8192 }
  0x1e   : > { %v4271_v8 = vsel %vm234_vm0, %v7093_v3, %v7092_v5  ;;  %v4298_v15 = vld [vmem:[%s4244_s28 + $0x48] sm:$0xff]  ;;  %v7087_v16 = vrot.slane %v4289_v12, 7  ;;  %v7084_v17 = vrot.slane %v4292_v13, 7  ;;  %v7085_v18 = vrot.slane %v4295_v14, 7  ;;  %v4305_v20 = vld [vmem:[%s4244_s28 + $0x40] sm:$0xff]  ;;  %v4309_v22 = vld [vmem:[%s4244_s28 + $0x58] sm:$0xff]  ;;  %3699 = vmatprep.subr.bf16.mxu1 %v7089_v45  ;;  %p4109_p1 = scmp.lt.s32.totalorder %s4107_s25, %s4101_s19 }
  0x1f   : > { %v4285_v10 = vsel %vm234_vm0, %v7091_v4, %v7088_v7  ;;  %v7082_v19 = vrot.slane %v4298_v15, 7  ;;  %v7083_v21 = vrot.slane %v4305_v20, 7  ;;  %v4312_v23 = vld [vmem:[%s4244_s28 + $0x50] sm:$0xff]  ;;  %v7080_v26 = vrot.slane %v4309_v22, 7  ;;  %v4342_v29 = vld [vmem:[%s4244_s28 + $0x68] sm:$0xff]  ;;  %v4357_v32 = vld [vmem:[%s4244_s28 + $0x60] sm:$0xff]  ;;  %p4103_p12 = pnand %p4102_p11, %p4229_p5 }
  0x20   : > { %1563 = vrot.lane.b32.xlu0 %v4253_v2, %s4165_s29  ;;  %1567 = vrot.lane.b32.xlu1 %v4263_v6, %s4165_s29  ;;  %v4321_v24 = vsel %vm234_vm0, %v7087_v16, %v7086_v11  ;;  %v4330_v25 = vsel %vm234_vm0, %v7085_v18, %v7084_v17  ;;  %v7081_v27 = vrot.slane %v4312_v23, 7  ;;  %v7078_v30 = vrot.slane %v4342_v29, 7  ;;  %v4360_v33 = vld [vmem:[%s4244_s28 + $0x78] sm:$0xff]  ;;  %v4365_v36 = vld [vmem:[%s4244_s28 + $0x70] sm:$0xff]  ;;  %p4110_p2 = por %p4109_p1, %p4108_p0 }
  0x21   : > { %v4339_v28 = vsel %vm234_vm0, %v7083_v21, %v7082_v19  ;;  %v7079_v34 = vrot.slane %v4357_v32, 7  ;;  %v7076_v35 = vrot.slane %v4360_v33, 7  ;;  %v4368_v37 = vld [vmem:[%s4244_s28 + $0x88] sm:$0xff]  ;;  %v7077_v38 = vrot.slane %v4365_v36, 7  ;;  %v4373_v40 = vld [vmem:[%s4244_s28 + $0x80] sm:$0xff]  ;;  %3701 = vmatpush1.bf16.msra.mxu1 %v3700_v54  ;;  %v3451_v55 = vld [vmem:[%s7071_s1 + $0x390] sm:$0xff]  ;;  %p4104_p13 = pneg %p4103_p12 }
  0x22   : > { %v4354_v31 = vsel %vm234_vm0, %v7081_v27, %v7080_v26  ;;  %v7074_v39 = vrot.slane %v4368_v37, 7  ;;  %v7075_v42 = vrot.slane %v4373_v40, 7  ;;  %3702 = vmatprep.subr.bf16.mxu1 %v7089_v45  ;;  %v3450_v53 = vld [vmem:[%s7071_s1 + $0x388] sm:$0xff]  ;;  %v3452_v56 = vld [vmem:[%s7071_s1 + $0x398] sm:$0xff]  ;;  %v3453_v58 = vld [vmem:[%s7071_s1 + $0x3a0] sm:$0xff] }
  0x23   : > { %v4380_v41 = vsel %vm234_vm0, %v7079_v34, %v7078_v30  ;;  %v4392_v43 = vsel %vm234_vm0, %v7077_v38, %v7076_v35  ;;  %v3718_v54 = vpack.c.bf16 %v3450_v53, %v3449_v52  ;;  %v3454_v59 = vld [vmem:[%s7071_s1 + $0x3a8] sm:$0xff]  ;;  %v3455_v61 = vld [vmem:[%s7071_s1 + $0x3b0] sm:$0xff]  ;;  %v3456_v62 = vld [vmem:[%s7071_s1 + $0x3b8] sm:$0xff]  ;;  %p4111_p3 = pnand %p4110_p2, %p4104_p13 }
  0x24   : > { %1571 = vrot.lane.b32.xlu1 %v4274_v9, %s4165_s29  ;;  %1569 = vrot.lane.b32.xlu0 %v4289_v12, %s4165_s29  ;;  %7363 = vst [vmem:[#allocation5_spill] sm:$0xff] %v4380_v41  ;;  %7364 = vst [vmem:[#allocation6_spill] sm:$0xff] %v4392_v43  ;;  %v4399_v44 = vsel %vm234_vm0, %v7075_v42, %v7074_v39  ;;  %v4563_v30 = vld [vmem:[%s4244_s28 + $0xa8] sm:$0xff] }
  0x25   : > { %7365 = vst [vmem:[#allocation7_spill] sm:$0xff] %v4399_v44  ;;  %3704 = vmatpush1.bf16.msra.mxu1 %v3703_v57  ;;  %v3721_v57 = vpack.c.bf16 %v3452_v56, %v3451_v55 }
  0x26   : > { %3705 = vmatprep.subr.bf16.mxu1 %v7089_v45 }
  0x28   : > { %1575 = vrot.lane.b32.xlu1 %v4292_v13, %s4165_s29  ;;  %1573 = vrot.lane.b32.xlu0 %v4295_v14, %s4165_s29 }
  0x29   : > { %3707 = vmatpush1.bf16.msra.mxu1 %v3706_v60  ;;  %v3724_v60 = vpack.c.bf16 %v3454_v59, %v3453_v58 }
  0x2a   : > { %3708 = vmatprep.subr.bf16.mxu1 %v7089_v45 }
  0x2c   : > { %1579 = vrot.lane.b32.xlu1 %v4298_v15, %s4165_s29  ;;  %1577 = vrot.lane.b32.xlu0 %v4305_v20, %s4165_s29 }
  0x2d   : > { %3710 = vmatpush1.bf16.msra.mxu1 %v3709_v63  ;;  %v3727_v63 = vpack.c.bf16 %v3456_v62, %v3455_v61 }
  0x2e   : > { %3711 = vmatprep.subr.bf16.mxu1 %v7089_v45 }
  0x30   : > { %1583 = vrot.lane.b32.xlu1 %v4309_v22, %s4165_s29  ;;  %1581 = vrot.lane.b32.xlu0 %v4312_v23, %s4165_s29 }
  0x31   : > { %3713 = vmatpush1.bf16.msra.mxu1 %v3712_v48 }
  0x32   : > { %3714 = vmatprep.subr.bf16.mxu1 %v7089_v45 }
  0x34   : > { %1587 = vrot.lane.b32.xlu1 %v4342_v29, %s4165_s29  ;;  %1585 = vrot.lane.b32.xlu0 %v4357_v32, %s4165_s29 }
  0x35   : > { %3716 = vmatpush1.bf16.msra.mxu1 %v3715_v51 }
  0x36   : > { %3717 = vmatprep.subr.bf16.mxu1 %v7089_v45 }
  0x38   : > { %1591 = vrot.lane.b32.xlu1 %v4360_v33, %s4165_s29  ;;  %1589 = vrot.lane.b32.xlu0 %v4365_v36, %s4165_s29 }
  0x39   : > { %3719 = vmatpush1.bf16.msra.mxu1 %v3718_v54 }
  0x3a   : > { %3720 = vmatprep.subr.bf16.mxu1 %v7089_v45 }
  0x3c   : > { %1595 = vrot.lane.b32.xlu1 %v4368_v37, %s4165_s29  ;;  %1593 = vrot.lane.b32.xlu0 %v4373_v40, %s4165_s29 }
  0x3d   : > { %3722 = vmatpush1.bf16.msra.mxu1 %v3721_v57 }
  0x3e   : > { %3723 = vmatprep.subr.bf16.mxu1 %v7089_v45 }
  0x41   : > { %3725 = vmatpush1.bf16.msra.mxu1 %v3724_v60 }
  0x42   : > { %3726 = vmatprep.subr.bf16.mxu1 %v7089_v45 }
  0x45   : > { %3728 = vmatpush1.bf16.msra.mxu1 %v3727_v63 }
  0x46   : > { %3729 = vmatprep.subr.bf16.mxu1 %v7089_v45 }
  0x8e   : > { %v1562_v46 = vpop.permute.xlu0 %1561  ;;  %v1566_v47 = vpop.permute.xlu1 %1565 }
  0x8f   : > { %v1628_v48 = vrot.slane %v1562_v46, 6  ;;  %v1631_v55 = vrot.slane %v1566_v47, 6 }
  0x91   : > { %v4504_v52 = vsel %vm1625_vm1, 0.0, %v1628_v48 }
  0x92   : > { %v1564_v49 = vpop.permute.xlu0 %1563  ;;  %v1568_v51 = vpop.permute.xlu1 %1567  ;;  %v1795_v58 = vrot.slane %v4504_v52, 2  ;;  %v1961_v59 = vrot.slane %v4504_v52, 4 }
  0x93   : > { %v1629_v50 = vrot.slane %v1564_v49, 6  ;;  %v1632_v57 = vrot.slane %v1568_v51, 6 }
  0x95   : > { %v4507_v53 = vsel %vm1625_vm1, %v1628_v48, %v1629_v50  ;;  %v1744_v54 = vsel %vm1625_vm1, %v1629_v50, 0.0  ;;  %v4520_v50 = vsel %vm1625_vm1, %v1631_v55, %v1632_v57  ;;  %v4523_v51 = vsel %vm1625_vm1, %v1632_v57, 0.0 }
  0x96   : > { %v1798_v56 = vrot.slane %v1744_v54, 2  ;;  %v1962_v60 = vrot.slane %v4507_v53, 4  ;;  %v1796_v61 = vrot.slane %v4507_v53, 2  ;;  %v1964_v62 = vrot.slane %v1744_v54, 4  ;;  %v1572_v48 = vpop.permute.xlu1 %1571  ;;  %v1570_v49 = vpop.permute.xlu0 %1569 }
  0x97   : > { %v4529_v54 = vsel %vm1625_vm1, 0.0, %v1631_v55  ;;  %v1803_v57 = vrot.slane %v4523_v51, 2  ;;  %v1801_v42 = vrot.slane %v4520_v50, 2 }
  0x98   : > { %v4515_v63 = vsel %vm1955_vm3, %v1961_v59, %v1962_v60  ;;  %v1799_v46 = vsel %vm578_vm4, %v1796_v61, %v1798_v56  ;;  %v1797_v47 = vsel %vm578_vm4, %v1795_v58, %v1796_v61  ;;  %v4533_v56 = vld [vmem:[%s4244_s28 + $0x98] sm:$0xff]  ;;  %v4536_v58 = vld [vmem:[%s4244_s28 + $0x90] sm:$0xff]  ;;  %v1635_v59 = vrot.slane %v1572_v48, 6 }
  0x99   : > { %7366 = vst [vmem:[#allocation8_spill] sm:$0xff] %v4515_v63  ;;  %3457 = vmatprep.mubr.msk.f32.mxu1 %vm659_vm2, %v4515_v63  ;;  %1871 = vrot.lane.b32.xlu1 %v1799_v46, %s4165_s29  ;;  %v1634_v61 = vrot.slane %v1570_v49, 6  ;;  %v4539_v39 = vsel %vm1955_vm3, %v1962_v60, %v1964_v62  ;;  %v1800_v46 = vrot.slane %v4529_v54, 2  ;;  %v1804_v62 = vsel %vm578_vm4, %v1801_v42, %v1803_v57  ;;  %v4568_v57 = vld [vmem:[%s4244_s28 + $0xa0] sm:$0xff] }
  0x9a   : > { %1869 = vrot.lane.b32.xlu0 %v1797_v47, %s4165_s29  ;;  %7367 = vst [vmem:[#allocation9_spill] sm:$0xff] %v4539_v39  ;;  %v4549_v55 = vsel %vm1625_vm1, %v1635_v59, 0.0  ;;  %v1576_v48 = vpop.permute.xlu1 %1575  ;;  %v1574_v49 = vpop.permute.xlu0 %1573 }
  0x9b   : > { %v4552_v60 = vsel %vm1625_vm1, %v1634_v61, %v1635_v59  ;;  %v4556_v47 = vsel %vm1625_vm1, 0.0, %v1634_v61  ;;  %v1802_v35 = vsel %vm578_vm4, %v1800_v46, %v1801_v42  ;;  %v1808_v38 = vrot.slane %v4549_v55, 2 }
  0x9c   : > { %v1806_v59 = vrot.slane %v4552_v60, 2  ;;  %v1805_v34 = vrot.slane %v4556_v47, 2  ;;  %v1638_v61 = vrot.slane %v1576_v48, 6  ;;  %v1637_v26 = vrot.slane %v1574_v49, 6 }
  0x9d   : > { %1599 = vrot.lane.b32.xlu1 %v4533_v56, %s4165_s29 }
  0x9e   : > { %1597 = vrot.lane.b32.xlu0 %v4536_v58, %s4165_s29  ;;  %v1807_v42 = vsel %vm578_vm4, %v1805_v34, %v1806_v59  ;;  %v4577_v46 = vsel %vm1625_vm1, %v1638_v61, 0.0  ;;  %v4583_v48 = vsel %vm1625_vm1, 0.0, %v1637_v26  ;;  %v1580_v49 = vpop.permute.xlu1 %1579  ;;  %v1578_v27 = vpop.permute.xlu0 %1577 }
  0x9f   : > { %7368 = vst [vmem:[#allocation10_spill] sm:$0xff] %v4577_v46  ;;  %7370 = vst [vmem:[#allocation12_spill] sm:$0xff] %v4583_v48  ;;  %v1813_v19 = vrot.slane %v4577_v46, 2  ;;  %v1641_v21 = vrot.slane %v1580_v49, 6 }
  0xa1   : > { %1875 = vrot.lane.b32.xlu1 %v1804_v62, %s4165_s29  ;;  %v4580_v62 = vsel %vm1625_vm1, %v1637_v26, %v1638_v61  ;;  %v4594_v61 = vld [vmem:[%s4244_s28 + $0xb0] sm:$0xff]  ;;  %v1640_v26 = vrot.slane %v1578_v27, 6  ;;  %v4603_v17 = vsel %vm1625_vm1, %v1641_v21, 0.0 }
  0xa2   : > { %1873 = vrot.lane.b32.xlu0 %v1802_v35, %s4165_s29  ;;  %v1809_v35 = vsel %vm578_vm4, %v1806_v59, %v1808_v38  ;;  %7369 = vst [vmem:[#allocation11_spill] sm:$0xff] %v4580_v62  ;;  %v4589_v38 = vld [vmem:[%s4244_s28 + $0xb8] sm:$0xff]  ;;  %v1811_v34 = vrot.slane %v4580_v62, 2  ;;  %v1810_v59 = vrot.slane %v4583_v48, 2  ;;  %7371 = vst [vmem:[#allocation13_spill] sm:$0xff] %v4603_v17  ;;  %v1584_v27 = vpop.permute.xlu1 %1583  ;;  %v1582_v11 = vpop.permute.xlu0 %1581  ;;  %v1818_v16 = vrot.slane %v4603_v17, 2 }
  0xa3   : > { %v4606_v18 = vsel %vm1625_vm1, %v1640_v26, %v1641_v21  ;;  %v4609_v49 = vsel %vm1625_vm1, 0.0, %v1640_v26  ;;  %v4620_v21 = vld [vmem:[%s4244_s28 + $0xc0] sm:$0xff]  ;;  %v1644_v7 = vrot.slane %v1584_v27, 6  ;;  %v1643_v26 = vrot.slane %v1582_v11, 6 }
  0xa4   : > { %7372 = vst [vmem:[#allocation14_spill] sm:$0xff] %v4606_v18  ;;  %7373 = vst [vmem:[#allocation15_spill] sm:$0xff] %v4609_v49  ;;  %v7390_v48 = vrot.slane %v4250_v1, 7 }
  0xa5   : > { %1603 = vrot.lane.b32.xlu1 %v4563_v30, %s4165_s29  ;;  %v4629_v45 = vsel %vm1625_vm1, %v1644_v7, 0.0  ;;  %v4632_v4 = vsel %vm1625_vm1, %v1643_v26, %v1644_v7  ;;  %v4635_v27 = vsel %vm1625_vm1, 0.0, %v1643_v26  ;;  %v4646_v7 = vld [vmem:[%s4244_s28 + $0xd0] sm:$0xff] }
  0xa6   : > { %1601 = vrot.lane.b32.xlu0 %v4568_v57, %s4165_s29  ;;  %7374 = vst [vmem:[#allocation16_spill] sm:$0xff] %v4629_v45  ;;  %7375 = vst [vmem:[#allocation17_spill] sm:$0xff] %v4632_v4  ;;  %v1588_v11 = vpop.permute.xlu1 %1587  ;;  %v1586_v5 = vpop.permute.xlu0 %1585  ;;  %v1823_v3 = vrot.slane %v4629_v45, 2 }
  0xa7   : > { %7376 = vst [vmem:[#allocation18_spill] sm:$0xff] %v4635_v27  ;;  %7377 = vst [vmem:[#allocation19_spill] sm:$0xff] %v4646_v7  ;;  %v1647_v63 = vrot.slane %v1588_v11, 6  ;;  %v1646_v26 = vrot.slane %v1586_v5, 6 }
  0xa9   : > { %1879 = vrot.lane.b32.xlu1 %v1809_v35, %s4165_s29  ;;  %v1814_v35 = vsel %vm578_vm4, %v1811_v34, %v1813_v19  ;;  %v4615_v19 = vld [vmem:[%s4244_s28 + $0xc8] sm:$0xff]  ;;  %v4655_v45 = vsel %vm1625_vm1, %v1647_v63, 0.0  ;;  %v4661_v11 = vsel %vm1625_vm1, 0.0, %v1646_v26 }
  0xaa   : > { %1877 = vrot.lane.b32.xlu0 %v1807_v42, %s4165_s29  ;;  %v1812_v42 = vsel %vm578_vm4, %v1810_v59, %v1811_v34  ;;  %v1816_v34 = vrot.slane %v4606_v18, 2  ;;  %v1815_v59 = vrot.slane %v4609_v49, 2  ;;  %7378 = vst [vmem:[#allocation20_spill] sm:$0xff] %v4655_v45  ;;  %7380 = vst [vmem:[#allocation22_spill] sm:$0xff] %v4661_v11  ;;  %v1592_v5 = vpop.permute.xlu1 %1591  ;;  %v1828_v17 = vrot.slane %v4655_v45, 2  ;;  %v4672_v18 = vld [vmem:[%s4244_s28 + $0xe0] sm:$0xff] }
  0xab   : > { %7382 = vst [vmem:[#allocation24_spill] sm:$0xff] %v4672_v18 }
  0xad   : > { %1607 = vrot.lane.b32.xlu1 %v4589_v38, %s4165_s29 }
  0xae   : > { %1605 = vrot.lane.b32.xlu0 %v4594_v61, %s4165_s29 }
  0xb1   : > { %1883 = vrot.lane.b32.xlu1 %v1814_v35, %s4165_s29  ;;  %v1819_v35 = vsel %vm578_vm4, %v1816_v34, %v1818_v16  ;;  %v4641_v16 = vld [vmem:[%s4244_s28 + $0xd8] sm:$0xff] }
  0xb2   : > { %1881 = vrot.lane.b32.xlu0 %v1812_v42, %s4165_s29  ;;  %v1817_v42 = vsel %vm578_vm4, %v1815_v59, %v1816_v34  ;;  %v1821_v34 = vrot.slane %v4632_v4, 2  ;;  %v1820_v59 = vrot.slane %v4635_v27, 2  ;;  %v4658_v4 = vsel %vm1625_vm1, %v1646_v26, %v1647_v63  ;;  %v1590_v27 = vpop.permute.xlu0 %1589 }
  0xb3   : > { %7379 = vst [vmem:[#allocation21_spill] sm:$0xff] %v4658_v4  ;;  %v1650_v63 = vrot.slane %v1592_v5, 6  ;;  %v1649_v26 = vrot.slane %v1590_v27, 6  ;;  %v1596_v5 = vpop.permute.xlu1 %1595 }
  0xb5   : > { %1611 = vrot.lane.b32.xlu1 %v4615_v19, %s4165_s29  ;;  %v4689_v27 = vsel %vm1625_vm1, 0.0, %v1649_v26 }
  0xb6   : > { %1609 = vrot.lane.b32.xlu0 %v4620_v21, %s4165_s29  ;;  %7385 = vst [vmem:[#allocation26_spill] sm:$0xff] %v4689_v27  ;;  %v1594_v49 = vpop.permute.xlu0 %1593 }
  0xb7   : > { %v1652_v62 = vrot.slane %v1594_v49, 6 }
  0xb9   : > { %1887 = vrot.lane.b32.xlu1 %v1819_v35, %s4165_s29  ;;  %v1824_v35 = vsel %vm578_vm4, %v1821_v34, %v1823_v3  ;;  %v4667_v3 = vld [vmem:[%s4244_s28 + $0xe8] sm:$0xff]  ;;  %v4741_v1 = vsel %vm1625_vm1, 0.0, %v1652_v62 }
  0xba   : > { %1885 = vrot.lane.b32.xlu0 %v1817_v42, %s4165_s29  ;;  %v1822_v42 = vsel %vm578_vm4, %v1820_v59, %v1821_v34  ;;  %7381 = vst [vmem:[#allocation23_spill] sm:$0xff] %v4667_v3  ;;  %v1826_v34 = vrot.slane %v4658_v4, 2  ;;  %v1825_v59 = vrot.slane %v4661_v11, 2  ;;  %v4686_v11 = vsel %vm1625_vm1, %v1649_v26, %v1650_v63 }
  0xbb   : > { %7384 = vst [vmem:[#allocation25_spill] sm:$0xff] %v4686_v11  ;;  %v1830_v26 = vrot.slane %v4689_v27, 2 }
  0xbc   : > { %v1827_v4 = vsel %vm578_vm4, %v1825_v59, %v1826_v34  ;;  %v408_v59 = vrot.slane %v4271_v8, 1 }
  0xbd   : > { %1615 = vrot.lane.b32.xlu1 %v4641_v16, %s4165_s29 }
  0xbe   : > { %1613 = vrot.lane.b32.xlu0 %v4646_v7, %s4165_s29  ;;  %v4726_v7 = vsel %vm234_vm0, 0.0, %v7390_v48 }
  0xc1   : > { %1891 = vrot.lane.b32.xlu1 %v1824_v35, %s4165_s29  ;;  %v1829_v35 = vsel %vm578_vm4, %v1826_v34, %v1828_v17  ;;  %v7386_v17 = vrot.slane %v4253_v2, 7  ;;  %v4700_v34 = vld [vmem:[%s4244_s28 + $0xf8] sm:$0xff]  ;;  %v3265_v2 = vld [vmem:[%s7071_s1 + $0xc0] sm:$0xff] }
  0xc2   : > { %1889 = vrot.lane.b32.xlu0 %v1822_v42, %s4165_s29  ;;  %v7383_v42 = vrot.slane %v4247_v0, 7  ;;  %7387 = vst [vmem:[#allocation27_spill] sm:$0xff] %v4700_v34 }
  0xc3   : > { %v4696_v0 = vsel %vm234_vm0, %v7386_v17, 0.0  ;;  %v3266_v17 = vld [vmem:[%s7071_s1 + $0xc8] sm:$0xff] }
  0xc4   : > { %v4682_v45 = vsel %vm234_vm0, 0.0, %v7383_v42  ;;  %v4705_v42 = vld [vmem:[%s4244_s28 + $0xf0] sm:$0xff] }
  0xc5   : > { %1619 = vrot.lane.b32.xlu1 %v4667_v3, %s4165_s29  ;;  %v407_v46 = vrot.slane %v4682_v45, 1  ;;  %7388 = vst [vmem:[#allocation28_spill] sm:$0xff] %v4705_v42  ;;  %v3586_v3 = vpack.c.bf16 %v3266_v17, %v3265_v2  ;;  %v3267_v2 = vld [vmem:[%s7071_s1 + $0xd0] sm:$0xff] }
  0xc6   : > { %1617 = vrot.lane.b32.xlu0 %v4672_v18, %s4165_s29  ;;  %v1653_v18 = vrot.slane %v1596_v5, 6  ;;  %v7391_v5 = vmov 0.0|0.0  }
  0xc7   : > { %v409_v27 = vsel %vm401_vm5, %v407_v46, %v408_v59  ;;  %3587 = vmatpush1.bf16.msra.mxu0 %v3586_v3  ;;  %v3268_v46 = vld [vmem:[%s7071_s1 + $0xd8] sm:$0xff] }
  0xc8   : > { %3588 = vmatprep.subr.bf16.mxu0 %v7391_v5  ;;  %v4738_v3 = vsel %vm1625_vm1, %v1652_v62, %v1653_v18  ;;  %v3589_v48 = vpack.c.bf16 %v3268_v46, %v3267_v2  ;;  %v1835_v62 = vrot.slane %v4741_v1, 2 }
  0xc9   : > { %1895 = vrot.lane.b32.xlu1 %v1829_v35, %s4165_s29  ;;  %v1831_v35 = vrot.slane %v4686_v11, 2  ;;  %v410_v11 = vrot.slane %v4696_v0, 1 }
  0xca   : > { %1893 = vrot.lane.b32.xlu0 %v1827_v4, %s4165_s29  ;;  %v4715_v4 = vsel %vm1625_vm1, %v1650_v63, 0.0 }
  0xcb   : > { %7389 = vst [vmem:[#allocation29_spill] sm:$0xff] %v4715_v4  ;;  %v1833_v63 = vrot.slane %v4715_v4, 2  ;;  %v1832_v49 = vsel %vm578_vm4, %v1830_v26, %v1831_v35  ;;  %v412_v26 = vrot.slane %v4726_v7, 1  ;;  %v411_v17 = vsel %vm401_vm5, %v408_v59, %v410_v11  ;;  %3590 = vmatpush1.bf16.msra.mxu0 %v3589_v48  ;;  %v3269_v11 = vld [vmem:[%s7071_s1 + $0xe0] sm:$0xff]  ;;  %v3270_v59 = vld [vmem:[%s7071_s1 + $0xe8] sm:$0xff] }
  0xcc   : > { %v413_v4 = vrot.slane %v4285_v10, 1  ;;  %3591 = vmatprep.subr.bf16.mxu0 %v7391_v5 }
  0xcd   : > { %1623 = vrot.lane.b32.xlu1 %v4700_v34, %s4165_s29  ;;  %v1834_v2 = vsel %vm578_vm4, %v1831_v35, %v1833_v63 }
  0xce   : > { %1621 = vrot.lane.b32.xlu0 %v4705_v42, %s4165_s29  ;;  %v7392_v42 = vrot.slane %v4263_v6, 7  ;;  %v4764_v6 = vsel %vm1625_vm1, %v1653_v18, 0.0  ;;  %v414_v63 = vsel %vm401_vm5, %v412_v26, %v413_v4  ;;  %v3272_v26 = vld [vmem:[%s7071_s1 + $0xf8] sm:$0xff] }
  0xcf   : > { %7393 = vst [vmem:[#allocation30_spill] sm:$0xff] %v4764_v6  ;;  %v1838_v48 = vrot.slane %v4764_v6, 2 }
  0xd0   : > { %v4751_v34 = vsel %vm234_vm0, %v7392_v42, 0.0  ;;  %v3592_v42 = vpack.c.bf16 %v3270_v59, %v3269_v11  ;;  %v3274_v11 = vld [vmem:[%s7071_s1 + $0x108] sm:$0xff] }
  0xd1   : > { %486 = vrot.lane.b32.xlu1 %v409_v27, %s4165_s29  ;;  %v1836_v27 = vrot.slane %v4738_v3, 2  ;;  %v415_v35 = vrot.slane %v4751_v34, 1 }
  0xd2   : > { %1897 = vrot.lane.b32.xlu0 %v1832_v49, %s4165_s29  ;;  %3593 = vmatpush1.bf16.msra.mxu0 %v3592_v42  ;;  %v7394_v49 = vrot.slane %v4289_v12, 7  ;;  %v3273_v12 = vld [vmem:[%s7071_s1 + $0x100] sm:$0xff]  ;;  %v418_v42 = vrot.slane %v4321_v24, 1 }
  0xd3   : > { %v1837_v18 = vsel %vm578_vm4, %v1835_v62, %v1836_v27  ;;  %3594 = vmatprep.subr.bf16.mxu0 %v7391_v5  ;;  %v416_v62 = vsel %vm401_vm5, %v413_v4, %v415_v35  ;;  %v1839_v6 = vsel %vm578_vm4, %v1836_v27, %v1838_v48  ;;  %v3276_v4 = vld [vmem:[%s7071_s1 + $0x118] sm:$0xff]  ;;  %v7396_v48 = vrot.slane %v4295_v14, 7 }
  0xd4   : > { %v4773_v46 = vsel %vm234_vm0, 0.0, %v7394_v49  ;;  %v3598_v49 = vpack.c.bf16 %v3274_v11, %v3273_v12  ;;  %v3278_v12 = vld [vmem:[%s7071_s1 + $0x128] sm:$0xff]  ;;  %v423_v14 = vrot.slane %v4330_v25, 1 }
  0xd5   : > { %488 = vrot.lane.b32.xlu1 %v411_v17, %s4165_s29  ;;  %v3271_v17 = vld [vmem:[%s7071_s1 + $0xf0] sm:$0xff]  ;;  %v417_v59 = vrot.slane %v4773_v46, 1 }
  0xd6   : > { %1899 = vrot.lane.b32.xlu0 %v1834_v2, %s4165_s29  ;;  %v3595_v2 = vpack.c.bf16 %v3272_v26, %v3271_v17  ;;  %v7395_v17 = vrot.slane %v4274_v9, 7 }
  0xd7   : > { %v419_v9 = vsel %vm401_vm5, %v417_v59, %v418_v42  ;;  %v7397_v59 = vrot.slane %v4292_v13, 7 }
  0xd8   : > { %3596 = vmatpush1.bf16.msra.mxu0 %v3595_v2  ;;  %v4798_v26 = vsel %vm234_vm0, %v7395_v17, 0.0  ;;  %v3277_v2 = vld [vmem:[%s7071_s1 + $0x120] sm:$0xff]  ;;  %v3279_v17 = vld [vmem:[%s7071_s1 + $0x130] sm:$0xff] }
  0xd9   : > { %490 = vrot.lane.b32.xlu1 %v414_v63, %s4165_s29  ;;  %3597 = vmatprep.subr.bf16.mxu0 %v7391_v5  ;;  %v3275_v63 = vld [vmem:[%s7071_s1 + $0x110] sm:$0xff]  ;;  %v420_v35 = vrot.slane %v4798_v26, 1 }
  0xda   : > { %1901 = vrot.lane.b32.xlu0 %v1837_v18, %s4165_s29  ;;  %v3601_v27 = vpack.c.bf16 %v3276_v4, %v3275_v63  ;;  %v4815_v18 = vsel %vm234_vm0, 0.0, %v7396_v48  ;;  %v587_v63 = vrot.slane %v4696_v0, 2  ;;  %v3281_v48 = vld [vmem:[%s7071_s1 + $0x140] sm:$0xff]  ;;  %v3282_v0 = vld [vmem:[%s7071_s1 + $0x148] sm:$0xff] }
  0xdb   : > { %v422_v11 = vrot.slane %v4815_v18, 1 }
  0xdc   : > { %3599 = vmatpush1.bf16.msra.mxu0 %v3598_v49  ;;  %v4831_v49 = vsel %vm234_vm0, %v7397_v59, 0.0  ;;  %v428_v59 = vrot.slane %v4339_v28, 1 }
  0xdd   : > { %492 = vrot.lane.b32.xlu1 %v416_v62, %s4165_s29  ;;  %3600 = vmatprep.subr.bf16.mxu0 %v7391_v5  ;;  %v3604_v62 = vpack.c.bf16 %v3278_v12, %v3277_v2  ;;  %v425_v4 = vrot.slane %v4831_v49, 1  ;;  %v424_v13 = vsel %vm401_vm5, %v422_v11, %v423_v14  ;;  %v584_v2 = vrot.slane %v4682_v45, 2 }
  0xde   : > { %1903 = vrot.lane.b32.xlu0 %v1839_v6, %s4165_s29  ;;  %v421_v6 = vsel %vm401_vm5, %v418_v42, %v420_v35  ;;  %v3280_v42 = vld [vmem:[%s7071_s1 + $0x138] sm:$0xff]  ;;  %v585_v12 = vrot.slane %v4271_v8, 2 }
  0xdf   : > { %v3607_v35 = vpack.c.bf16 %v3280_v42, %v3279_v17  ;;  %v426_v11 = vsel %vm401_vm5, %v423_v14, %v425_v4  ;;  %v3610_v17 = vpack.c.bf16 %v3282_v0, %v3281_v48  ;;  %v7401_v42 = vrot.slane %v4298_v15, 7  ;;  %v3283_v14 = vld [vmem:[%s7071_s1 + $0x150] sm:$0xff]  ;;  %v3285_v0 = vld [vmem:[%s7071_s1 + $0x160] sm:$0xff] }
  0xe0   : > { %3602 = vmatpush1.bf16.msra.mxu0 %v3601_v27 }
  0xe1   : > { %494 = vrot.lane.b32.xlu1 %v419_v9, %s4165_s29  ;;  %3603 = vmatprep.subr.bf16.mxu0 %v7391_v5  ;;  %v7398_v9 = vrot.slane %v4305_v20, 7  ;;  %v4860_v20 = vsel %vm578_vm4, %v584_v2, %v585_v12  ;;  %v3286_v2 = vld [vmem:[%s7071_s1 + $0x168] sm:$0xff] }
  0xe2   : > { %7399 = vst [vmem:[#allocation31_spill] sm:$0xff] %v4860_v20  ;;  %3289 = vmatprep.mubr.msk.f32.mxu0 %vm659_vm2, %v4860_v20 }
  0xe3   : > { %v4847_v27 = vsel %vm234_vm0, 0.0, %v7398_v9  ;;  %v7402_v9 = vrot.slane %v4312_v23, 7  ;;  %v433_v23 = vrot.slane %v4354_v31, 1 }
  0xe4   : > { %3605 = vmatpush1.bf16.msra.mxu0 %v3604_v62  ;;  %v427_v62 = vrot.slane %v4847_v27, 1 }
  0xe5   : > { %496 = vrot.lane.b32.xlu1 %v421_v6, %s4165_s29  ;;  %3606 = vmatprep.subr.bf16.mxu0 %v7391_v5  ;;  %v4863_v6 = vsel %vm578_vm4, %v585_v12, %v587_v63  ;;  %v3284_v63 = vld [vmem:[%s7071_s1 + $0x158] sm:$0xff]  ;;  %v4888_v48 = vsel %vm234_vm0, 0.0, %v7402_v9 }
  0xe6   : > { %7400 = vst [vmem:[#allocation32_spill] sm:$0xff] %v4863_v6  ;;  %v3613_v15 = vpack.c.bf16 %v3284_v63, %v3283_v14  ;;  %v3287_v14 = vld [vmem:[%s7071_s1 + $0x170] sm:$0xff] }
  0xe8   : > { %3608 = vmatpush1.bf16.msra.mxu0 %v3607_v35  ;;  %v429_v35 = vsel %vm401_vm5, %v427_v62, %v428_v59  ;;  %v3616_v62 = vpack.c.bf16 %v3286_v2, %v3285_v0  ;;  %v438_v2 = vrot.slane %v4380_v41, 1 }
  0xe9   : > { %498 = vrot.lane.b32.xlu1 %v424_v13, %s4165_s29  ;;  %v4873_v13 = vsel %vm234_vm0, %v7401_v42, 0.0  ;;  %3609 = vmatprep.subr.bf16.mxu0 %v7391_v5 }
  0xea   : > { %v430_v4 = vrot.slane %v4873_v13, 1 }
  0xec   : > { %3611 = vmatpush1.bf16.msra.mxu0 %v3610_v17  ;;  %v431_v12 = vsel %vm401_vm5, %v428_v59, %v430_v4  ;;  %v7403_v17 = vrot.slane %v4309_v22, 7  ;;  %v3288_v59 = vld [vmem:[%s7071_s1 + $0x178] sm:$0xff] }
  0xed   : > { %500 = vrot.lane.b32.xlu1 %v426_v11, %s4165_s29  ;;  %3612 = vmatprep.subr.bf16.mxu0 %v7391_v5  ;;  %v432_v11 = vrot.slane %v4888_v48, 1  ;;  %v3619_v22 = vpack.c.bf16 %v3288_v59, %v3287_v14  ;;  %v443_v59 = vrot.slane %v4392_v43, 1 }
  0xee   : > { %v4904_v42 = vsel %vm234_vm0, %v7403_v17, 0.0 }
  0xef   : > { %v435_v63 = vrot.slane %v4904_v42, 1  ;;  %v434_v4 = vsel %vm401_vm5, %v432_v11, %v433_v23 }
  0xf0   : > { %3614 = vmatpush1.bf16.msra.mxu0 %v3613_v15 }
  0xf1   : > { %502 = vrot.lane.b32.xlu1 %v429_v35, %s4165_s29  ;;  %3615 = vmatprep.subr.bf16.mxu0 %v7391_v5  ;;  %v7404_v35 = vrot.slane %v4357_v32, 7  ;;  %v436_v9 = vsel %vm401_vm5, %v433_v23, %v435_v63  ;;  %v7407_v23 = vrot.slane %v4365_v36, 7  ;;  %v7409_v63 = vrot.slane %v4360_v33, 7  ;;  %v3410_v33 = vld [vmem:[%s7071_s1 + $0x248] sm:$0xff] }
  0xf3   : > { %v4919_v15 = vsel %vm234_vm0, 0.0, %v7404_v35  ;;  %v4938_v17 = vsel %vm234_vm0, 0.0, %v7407_v23  ;;  %v7411_v35 = vrot.slane %v4373_v40, 7  ;;  %v265_v23 = vrot.slane %v4533_v56, 7 }
  0xf4   : > { %3617 = vmatpush1.bf16.msra.mxu0 %v3616_v62  ;;  %v437_v0 = vrot.slane %v4919_v15, 1  ;;  %7408 = vst [vmem:[#allocation34_spill] sm:$0xff] %v4938_v17  ;;  %v442_v14 = vrot.slane %v4938_v17, 1  ;;  %v1966_v56 = vrot.slane %v4529_v54, 4  ;;  %v7458_v17 = vld [vmem:[#allocation28_spill] sm:$0xff] }
  0xf5   : > { %504 = vrot.lane.b32.xlu1 %v431_v12, %s4165_s29  ;;  %3618 = vmatprep.subr.bf16.mxu0 %v7391_v5  ;;  %v7405_v12 = vrot.slane %v4342_v29, 7 }
  0xf6   : > { %v439_v62 = vsel %vm401_vm5, %v437_v0, %v438_v2  ;;  %v3409_v0 = vld [vmem:[%s7071_s1 + $0x240] sm:$0xff] }
  0xf7   : > { %v4929_v11 = vsel %vm234_vm0, %v7405_v12, 0.0 }
  0xf8   : > { %3620 = vmatpush1.bf16.msra.mxu0 %v3619_v22  ;;  %7406 = vst [vmem:[#allocation33_spill] sm:$0xff] %v4929_v11  ;;  %v440_v32 = vrot.slane %v4929_v11, 1  ;;  %v444_v22 = vsel %vm401_vm5, %v442_v14, %v443_v59  ;;  %v7460_v11 = vld [vmem:[#allocation14_spill] sm:$0xff] }
  0xf9   : > { %506 = vrot.lane.b32.xlu1 %v434_v4, %s4165_s29  ;;  %3621 = vmatprep.subr.bf16.mxu0 %v7391_v5  ;;  %v4947_v4 = vsel %vm234_vm0, %v7409_v63, 0.0  ;;  %v3730_v63 = vpack.c.bf16 %v3410_v33, %v3409_v0  ;;  %v1967_v0 = vrot.slane %v4520_v50, 4 }
  0xfa   : > { %v441_v29 = vsel %vm401_vm5, %v438_v2, %v440_v32  ;;  %7410 = vst [vmem:[#allocation35_spill] sm:$0xff] %v4947_v4  ;;  %v445_v36 = vrot.slane %v4947_v4, 1  ;;  %v7413_v2 = vrot.slane %v4368_v37, 7  ;;  %v3411_v37 = vld [vmem:[%s7071_s1 + $0x250] sm:$0xff]  ;;  %v7447_v4 = vld [vmem:[#allocation24_spill] sm:$0xff] }
  0xfc   : > { %v4967_v12 = vsel %vm234_vm0, %v7413_v2, 0.0  ;;  %v446_v40 = vsel %vm401_vm5, %v443_v59, %v445_v36 }
  0xfd   : > { %508 = vrot.lane.b32.xlu1 %v436_v9, %s4165_s29  ;;  %v4955_v9 = vsel %vm234_vm0, 0.0, %v7411_v35  ;;  %7414 = vst [vmem:[#allocation37_spill] sm:$0xff] %v4967_v12  ;;  %v450_v59 = vrot.slane %v4967_v12, 1 }
  0xfe   : > { %7412 = vst [vmem:[#allocation36_spill] sm:$0xff] %v4955_v9  ;;  %v447_v32 = vrot.slane %v4955_v9, 1  ;;  %v7427_v9 = vrot.slane %v4594_v61, 7 }
 0x101   : > { %510 = vrot.lane.b32.xlu1 %v439_v62, %s4165_s29  ;;  %v448_v62 = vrot.slane %v4399_v44, 1 }
 0x103   : > { %v449_v33 = vsel %vm401_vm5, %v447_v32, %v448_v62 }
 0x105   : > { %512 = vrot.lane.b32.xlu1 %v441_v29, %s4165_s29  ;;  %v264_v29 = vrot.slane %v4536_v58, 7  ;;  %v268_v58 = vrot.slane %v4563_v30, 7 }
 0x107   : > { %v4992_v2 = vsel %vm234_vm0, %v264_v29, %v265_v23  ;;  %v4995_v20 = vsel %vm234_vm0, 0.0, %v264_v29  ;;  %v1969_v29 = vrot.slane %v4523_v51, 4  ;;  %v5023_v51 = vsel %vm1955_vm3, %v1966_v56, %v1967_v0 }
 0x108   : > { %7416 = vst [vmem:[#allocation39_spill] sm:$0xff] %v4992_v2  ;;  %7417 = vst [vmem:[#allocation40_spill] sm:$0xff] %v4995_v20 }
 0x109   : > { %514 = vrot.lane.b32.xlu1 %v444_v22, %s4165_s29  ;;  %v3412_v22 = vld [vmem:[%s7071_s1 + $0x258] sm:$0xff]  ;;  %7421 = vst [vmem:[#allocation44_spill] sm:$0xff] %v5023_v51 }
 0x10a   : > { %v3733_v30 = vpack.c.bf16 %v3412_v22, %v3411_v37 }
 0x10b   : > { %v1872_v14 = vpop.permute.xlu1 %1871 }
 0x10c   : > { %v1870_v35 = vpop.permute.xlu0 %1869 }
 0x10d   : > { %v4983_v36 = vsel %vm659_vm2, %v4504_v52, %v1870_v35  ;;  %516 = vrot.lane.b32.xlu1 %v446_v40, %s4165_s29  ;;  %v5001_v35 = vsel %vm234_vm0, %v265_v23, 0.0  ;;  %v5008_v52 = vsel %vm234_vm0, %v268_v58, 0.0  ;;  %v3414_v23 = vld [vmem:[%s7071_s1 + $0x268] sm:$0xff] }
 0x10e   : > { %7415 = vst [vmem:[#allocation38_spill] sm:$0xff] %v4983_v36  ;;  %2280 = vmatmul.mubr.f32.vlgmr.msra.gmra.mrb[0].mxu1 %v4983_v36  ;;  %7418 = vst [vmem:[#allocation41_spill] sm:$0xff] %v5001_v35  ;;  %v271_v36 = vrot.slane %v4589_v38, 7  ;;  %v3413_v38 = vld [vmem:[%s7071_s1 + $0x260] sm:$0xff]  ;;  %v455_v37 = vrot.slane %v5001_v35, 1  ;;  %v1971_v35 = vrot.slane %v4556_v47, 4 }
 0x10f   : > { %3458 = vmatprep.mubr.msk.f32.mxu1 %vm659_vm2, %v4539_v39  ;;  %v1600_v40 = vpop.permute.xlu1 %1599  ;;  %3731 = vmatpush1.bf16.msra.mxu1 %v3730_v63  ;;  %7419 = vst [vmem:[#allocation42_spill] sm:$0xff] %v5008_v52  ;;  %v5012_v63 = vsel %vm659_vm2, %v4507_v53, %v1872_v14  ;;  %v452_v53 = vrot.slane %v4995_v20, 1  ;;  %v453_v14 = vrot.slane %v4992_v2, 1  ;;  %v3415_v2 = vld [vmem:[%s7071_s1 + $0x270] sm:$0xff] }
 0x110   : > { %v1656_v12 = vrot.slane %v1600_v40, 6  ;;  %v1598_v44 = vpop.permute.xlu0 %1597  ;;  %3732 = vmatprep.subr.bf16.mxu1 %v7391_v5  ;;  %7420 = vst [vmem:[#allocation43_spill] sm:$0xff] %v5012_v63 }
 0x111   : > { %v1655_v39 = vrot.slane %v1598_v44, 6  ;;  %518 = vrot.lane.b32.xlu1 %v449_v33, %s4165_s29  ;;  %v451_v44 = vsel %vm401_vm5, %v448_v62, %v450_v59  ;;  %v5041_v62 = vsel %vm234_vm0, %v271_v36, 0.0 }
 0x112   : > { %2285 = vmatmul.mubr.f32.gmra.mrb[2].mxu1 %v5012_v63  ;;  %v5030_v22 = vsel %vm1625_vm1, %v1656_v12, 0.0  ;;  %7423 = vst [vmem:[#allocation46_spill] sm:$0xff] %v5041_v62 }
 0x113   : > { %7422 = vst [vmem:[#allocation45_spill] sm:$0xff] %v5030_v22  ;;  %v5033_v33 = vsel %vm1625_vm1, %v1655_v39, %v1656_v12  ;;  %v5036_v40 = vsel %vm1625_vm1, 0.0, %v1655_v39  ;;  %3459 = vmatprep.mubr.msk.f32.mxu1 %vm659_vm2, %v5023_v51  ;;  %v1876_v56 = vpop.permute.xlu1 %1875  ;;  %3734 = vmatpush1.bf16.msra.mxu1 %v3733_v30  ;;  %v3736_v12 = vpack.c.bf16 %v3414_v23, %v3413_v38  ;;  %v3416_v38 = vld [vmem:[%s7071_s1 + $0x278] sm:$0xff]  ;;  %v1843_v23 = vrot.slane %v5030_v22, 2 }
 0x114   : > { %v1840_v59 = vrot.slane %v5036_v40, 2  ;;  %v1874_v32 = vpop.permute.xlu0 %1873  ;;  %v1841_v63 = vrot.slane %v5033_v33, 2  ;;  %3735 = vmatprep.subr.bf16.mxu1 %v7391_v5  ;;  %v5053_v30 = vsel %vm1955_vm3, %v1967_v0, %v1969_v29  ;;  %v454_v0 = vsel %vm401_vm5, %v452_v53, %v453_v14 }
 0x115   : > { %v5050_v51 = vsel %vm659_vm2, %v4529_v54, %v1874_v32  ;;  %7425 = vst [vmem:[#allocation48_spill] sm:$0xff] %v5053_v30  ;;  %520 = vrot.lane.b32.xlu1 %v451_v44, %s4165_s29  ;;  %v1972_v32 = vrot.slane %v4552_v60, 4  ;;  %v460_v29 = vrot.slane %v5008_v52, 1  ;;  %v7426_v44 = vrot.slane %v4568_v57, 7 }
 0x116   : > { %7424 = vst [vmem:[#allocation47_spill] sm:$0xff] %v5050_v51  ;;  %2290 = vmatmul.mubr.f32.gmra.mrb[4].mxu1 %v5050_v51  ;;  %v1842_v54 = vsel %vm578_vm4, %v1840_v59, %v1841_v63  ;;  %v5077_v22 = vsel %vm234_vm0, %v7427_v9, %v271_v36  ;;  %v7428_v59 = vrot.slane %v4615_v19, 7  ;;  %v3739_v52 = vpack.c.bf16 %v3416_v38, %v3415_v2  ;;  %v3418_v2 = vld [vmem:[%s7071_s1 + $0x288] sm:$0xff] }
 0x117   : > { %v5071_v39 = vsel %vm234_vm0, %v7426_v44, %v268_v58  ;;  %1905 = vrot.lane.b32.xlu0 %v1842_v54, %s4165_s29  ;;  %3460 = vmatprep.mubr.msk.f32.mxu1 %vm659_vm2, %v5053_v30  ;;  %v1604_v53 = vpop.permute.xlu1 %1603  ;;  %v277_v58 = vrot.slane %v4641_v16, 7  ;;  %v1974_v9 = vrot.slane %v4549_v55, 4  ;;  %v5092_v30 = vsel %vm659_vm2, %v4520_v50, %v1876_v56  ;;  %v3417_v16 = vld [vmem:[%s7071_s1 + $0x280] sm:$0xff] }
 0x118   : > { %v5085_v51 = vsel %vm234_vm0, %v7428_v59, 0.0  ;;  %v1659_v44 = vrot.slane %v1604_v53, 6  ;;  %v1602_v20 = vpop.permute.xlu0 %1601  ;;  %3737 = vmatpush1.bf16.msra.mxu1 %v3736_v12  ;;  %7430 = vst [vmem:[#allocation50_spill] sm:$0xff] %v5092_v30  ;;  %v1844_v50 = vsel %vm578_vm4, %v1841_v63, %v1843_v23  ;;  %v456_v56 = vsel %vm401_vm5, %v453_v14, %v455_v37  ;;  %v7433_v12 = vld [vmem:[#allocation19_spill] sm:$0xff] }
 0x119   : > { %7429 = vst [vmem:[#allocation49_spill] sm:$0xff] %v5085_v51  ;;  %v1658_v54 = vrot.slane %v1602_v20, 6  ;;  %522 = vrot.lane.b32.xlu1 %v454_v0, %s4165_s29  ;;  %3738 = vmatprep.subr.bf16.mxu1 %v7391_v5  ;;  %v5103_v55 = vsel %vm234_vm0, %v277_v58, 0.0  ;;  %v5108_v20 = vsel %vm1955_vm3, %v1971_v35, %v1972_v32  ;;  %v7159_v23 = vrot.slane %v5071_v39, 1 }
 0x11a   : > { %7431 = vst [vmem:[#allocation51_spill] sm:$0xff] %v5103_v55  ;;  %2295 = vmatmul.mubr.f32.gmra.mrb[6].mxu1 %v5092_v30  ;;  %7432 = vst [vmem:[#allocation52_spill] sm:$0xff] %v5108_v20  ;;  %v5113_v0 = vsel %vm1625_vm1, %v1659_v44, 0.0  ;;  %v3742_v38 = vpack.c.bf16 %v3418_v2, %v3417_v16  ;;  %v7438_v30 = vld [vmem:[#allocation23_spill] sm:$0xff]  ;;  %v3420_v16 = vld [vmem:[%s7071_s1 + $0x298] sm:$0xff] }
 0x11b   : > { %7434 = vst [vmem:[#allocation19_spill] sm:$0xff] %v5113_v0  ;;  %v5116_v53 = vsel %vm1625_vm1, %v1658_v54, %v1659_v44  ;;  %v5119_v59 = vsel %vm1625_vm1, 0.0, %v1658_v54  ;;  %1907 = vrot.lane.b32.xlu0 %v1844_v50, %s4165_s29  ;;  %3461 = vmatprep.mubr.msk.f32.mxu1 %vm659_vm2, %v5108_v20  ;;  %v1880_v35 = vpop.permute.xlu1 %1879  ;;  %v7437_v44 = vld [vmem:[#allocation12_spill] sm:$0xff]  ;;  %v5134_v20 = vsel %vm1955_vm3, %v1972_v32, %v1974_v9  ;;  %v1848_v2 = vrot.slane %v5113_v0, 2  ;;  %v7441_v32 = vld [vmem:[#allocation11_spill] sm:$0xff] }
 0x11c   : > { %7435 = vst [vmem:[#allocation53_spill] sm:$0xff] %v5116_v53  ;;  %7436 = vst [vmem:[#allocation54_spill] sm:$0xff] %v5119_v59  ;;  %v1845_v63 = vrot.slane %v5119_v59, 2  ;;  %v1878_v14 = vpop.permute.xlu0 %1877  ;;  %v1846_v37 = vrot.slane %v5116_v53, 2  ;;  %3740 = vmatpush1.bf16.msra.mxu1 %v3739_v52  ;;  %v1976_v36 = vrot.slane %v7437_v44, 4  ;;  %v3419_v52 = vld [vmem:[%s7071_s1 + $0x290] sm:$0xff] }
 0x11d   : > { %v5131_v50 = vsel %vm659_vm2, %v4556_v47, %v1878_v14  ;;  %7440 = vst [vmem:[#allocation23_spill] sm:$0xff] %v5134_v20  ;;  %524 = vrot.lane.b32.xlu1 %v456_v56, %s4165_s29  ;;  %3741 = vmatprep.subr.bf16.mxu1 %v7391_v5  ;;  %v1977_v9 = vrot.slane %v7441_v32, 4  ;;  %v461_v56 = vsel %vm401_vm5, %v7159_v23, %v460_v29  ;;  %v470_v14 = vrot.slane %v5085_v51, 1 }
 0x11e   : > { %7439 = vst [vmem:[#allocation12_spill] sm:$0xff] %v5131_v50  ;;  %2300 = vmatmul.mubr.f32.gmra.mrb[8].mxu1 %v5131_v50  ;;  %v1847_v47 = vsel %vm578_vm4, %v1845_v63, %v1846_v37  ;;  %v7442_v54 = vrot.slane %v4615_v19, 7  ;;  %v7443_v53 = vrot.slane %v4620_v21, 7  ;;  %v7444_v50 = vrot.slane %v7433_v12, 7 }
 0x11f   : > { %1909 = vrot.lane.b32.xlu0 %v1847_v47, %s4165_s29  ;;  %3462 = vmatprep.mubr.msk.f32.mxu1 %vm659_vm2, %v5134_v20  ;;  %v1608_v29 = vpop.permute.xlu1 %1607  ;;  %v7445_v19 = vrot.slane %v7438_v30, 7  ;;  %v7166_v0 = vrot.slane %v5077_v22, 1  ;;  %v3745_v51 = vpack.c.bf16 %v3420_v16, %v3419_v52  ;;  %v5178_v20 = vsel %vm659_vm2, %v4552_v60, %v1880_v35  ;;  %v7450_v52 = vld [vmem:[#allocation10_spill] sm:$0xff] }
 0x120   : > { %v5157_v59 = vsel %vm234_vm0, %v7443_v53, %v7442_v54  ;;  %v5163_v63 = vsel %vm234_vm0, %v7444_v50, %v277_v58  ;;  %v1662_v53 = vrot.slane %v1608_v29, 6  ;;  %v1606_v54 = vpop.permute.xlu0 %1605  ;;  %3743 = vmatpush1.bf16.msra.mxu1 %v3742_v38  ;;  %v7448_v50 = vld [vmem:[#allocation27_spill] sm:$0xff]  ;;  %7449 = vst [vmem:[#allocation24_spill] sm:$0xff] %v5178_v20  ;;  %v3421_v29 = vld [vmem:[%s7071_s1 + $0x2a0] sm:$0xff]  ;;  %v3422_v38 = vld [vmem:[%s7071_s1 + $0x2a8] sm:$0xff]  ;;  %v1979_v16 = vrot.slane %v7450_v52, 4 }
 0x121   : > { %v5171_v23 = vsel %vm234_vm0, %v7445_v19, 0.0  ;;  %v283_v43 = vrot.slane %v7448_v50, 7  ;;  %v1661_v47 = vrot.slane %v1606_v54, 6  ;;  %528 = vrot.lane.b32.xlu1 %v461_v56, %s4165_s29  ;;  %3744 = vmatprep.subr.bf16.mxu1 %v7391_v5  ;;  %v1849_v19 = vsel %vm578_vm4, %v1846_v37, %v1848_v2  ;;  %v3423_v58 = vld [vmem:[%s7071_s1 + $0x2b0] sm:$0xff] }
 0x122   : > { %7446 = vst [vmem:[#allocation11_spill] sm:$0xff] %v5171_v23  ;;  %2305 = vmatmul.mubr.f32.gmra.mrb[10].mxu1 %v5178_v20  ;;  %v5192_v60 = vsel %vm1955_vm3, %v1976_v36, %v1977_v9  ;;  %v7452_v35 = vrot.slane %v5041_v62, 1  ;;  %v5203_v50 = vsel %vm1625_vm1, %v1662_v53, 0.0  ;;  %v3748_v20 = vpack.c.bf16 %v3422_v38, %v3421_v29 }
 0x123   : > { %7451 = vst [vmem:[#allocation27_spill] sm:$0xff] %v5192_v60  ;;  %v5200_v54 = vsel %vm234_vm0, %v283_v43, 0.0  ;;  %7454 = vst [vmem:[#allocation55_spill] sm:$0xff] %v5203_v50  ;;  %v5206_v52 = vsel %vm1625_vm1, %v1661_v47, %v1662_v53  ;;  %v5209_v37 = vsel %vm1625_vm1, 0.0, %v1661_v47  ;;  %1911 = vrot.lane.b32.xlu0 %v1849_v19, %s4165_s29  ;;  %3463 = vmatprep.mubr.msk.f32.mxu1 %vm659_vm2, %v5192_v60  ;;  %v1884_v36 = vpop.permute.xlu1 %1883  ;;  %v7457_v53 = vld [vmem:[#allocation15_spill] sm:$0xff]  ;;  %v1982_v60 = vrot.slane %v7460_v11, 4 }
 0x124   : > { %v466_v56 = vsel %vm401_vm5, %v7166_v0, %v7452_v35  ;;  %7453 = vst [vmem:[#allocation10_spill] sm:$0xff] %v5200_v54  ;;  %7455 = vst [vmem:[#allocation56_spill] sm:$0xff] %v5206_v52  ;;  %v1850_v2 = vrot.slane %v5209_v37, 2  ;;  %v1882_v35 = vpop.permute.xlu0 %1881  ;;  %v1851_v0 = vrot.slane %v5206_v52, 2  ;;  %3746 = vmatpush1.bf16.msra.mxu1 %v3745_v51  ;;  %v1981_v62 = vrot.slane %v7457_v53, 4  ;;  %v3424_v51 = vld [vmem:[%s7071_s1 + $0x2b8] sm:$0xff] }
 0x125   : > { %7456 = vst [vmem:[#allocation57_spill] sm:$0xff] %v5209_v37  ;;  %v5221_v19 = vsel %vm659_vm2, %v7437_v44, %v1882_v35  ;;  %532 = vrot.lane.b32.xlu1 %v466_v56, %s4165_s29  ;;  %3747 = vmatprep.subr.bf16.mxu1 %v7391_v5  ;;  %v1853_v29 = vrot.slane %v5203_v50, 2  ;;  %v5236_v38 = vsel %vm1955_vm3, %v1977_v9, %v1979_v16  ;;  %v7462_v56 = vrot.slane %v5157_v59, 1 }
 0x126   : > { %7459 = vst [vmem:[#allocation15_spill] sm:$0xff] %v5221_v19  ;;  %2310 = vmatmul.mubr.f32.gmra.mrb[12].mxu1 %v5221_v19  ;;  %v1852_v44 = vsel %vm578_vm4, %v1850_v2, %v1851_v0  ;;  %7461 = vst [vmem:[#allocation28_spill] sm:$0xff] %v5236_v38  ;;  %v480_v47 = vrot.slane %v5171_v23, 1  ;;  %v7463_v50 = vrot.slane %v7438_v30, 7  ;;  %v7464_v19 = vrot.slane %v7447_v4, 7  ;;  %v3425_v30 = vld [vmem:[%s7071_s1 + $0x2c0] sm:$0xff] }
 0x127   : > { %v471_v35 = vsel %vm401_vm5, %v7462_v56, %v470_v14  ;;  %1913 = vrot.lane.b32.xlu0 %v1852_v44, %s4165_s29  ;;  %3464 = vmatprep.mubr.msk.f32.mxu1 %vm659_vm2, %v5236_v38  ;;  %v1612_v52 = vpop.permute.xlu1 %1611  ;;  %v7187_v37 = vrot.slane %v5163_v63, 1  ;;  %v3751_v14 = vpack.c.bf16 %v3424_v51, %v3423_v58  ;;  %v7465_v56 = vld [vmem:[#allocation13_spill] sm:$0xff]  ;;  %v721_v44 = vrot.slane %v5200_v54, 1 }
 0x128   : > { %v5250_v2 = vsel %vm234_vm0, %v7464_v19, %v7463_v50  ;;  %v1665_v9 = vrot.slane %v1612_v52, 6  ;;  %v1610_v16 = vpop.permute.xlu0 %1609  ;;  %3749 = vmatpush1.bf16.msra.mxu1 %v3748_v20  ;;  %v1984_v23 = vrot.slane %v7465_v56, 4  ;;  %v5257_v38 = vsel %vm659_vm2, %v7441_v32, %v1884_v36  ;;  %v3426_v20 = vld [vmem:[%s7071_s1 + $0x2c8] sm:$0xff] }
 0x129   : > { %v1664_v41 = vrot.slane %v1610_v16, 6  ;;  %7466 = vst [vmem:[#allocation14_spill] sm:$0xff] %v5257_v38  ;;  %536 = vrot.lane.b32.xlu1 %v471_v35, %s4165_s29  ;;  %3750 = vmatprep.subr.bf16.mxu1 %v7391_v5  ;;  %v7467_v58 = vrot.slane %v7458_v17, 7  ;;  %v1854_v32 = vsel %vm578_vm4, %v1851_v0, %v1853_v29  ;;  %v5275_v52 = vsel %vm1955_vm3, %v1981_v62, %v1982_v60 }
 0x12a   : > { %2315 = vmatmul.mubr.f32.gmra.mrb[14].mxu1 %v5257_v38  ;;  %7468 = vst [vmem:[#allocation13_spill] sm:$0xff] %v5275_v52  ;;  %v7469_v36 = vrot.slane %v5103_v55, 1  ;;  %v5283_v51 = vsel %vm1625_vm1, %v1665_v9, 0.0  ;;  %v7201_v56 = vrot.slane %v5250_v2, 1  ;;  %v7477_v55 = vld [vmem:[#allocation16_spill] sm:$0xff] }
 0x12b   : > { %v5270_v50 = vsel %vm234_vm0, %v7467_v58, %v283_v43  ;;  %7470 = vst [vmem:[#allocation58_spill] sm:$0xff] %v5283_v51  ;;  %v5286_v35 = vsel %vm1625_vm1, %v1664_v41, %v1665_v9  ;;  %v5289_v43 = vsel %vm1625_vm1, 0.0, %v1664_v41  ;;  %1915 = vrot.lane.b32.xlu0 %v1854_v32, %s4165_s29  ;;  %3465 = vmatprep.mubr.msk.f32.mxu1 %vm659_vm2, %v5275_v52  ;;  %v1888_v62 = vpop.permute.xlu1 %1887  ;;  %v7472_v9 = vld [vmem:[#allocation18_spill] sm:$0xff] }
 0x12c   : > { %v476_v19 = vsel %vm401_vm5, %v7187_v37, %v7469_v36  ;;  %7471 = vst [vmem:[#allocation59_spill] sm:$0xff] %v5286_v35  ;;  %v1855_v0 = vrot.slane %v5289_v43, 2  ;;  %v1886_v29 = vpop.permute.xlu0 %1885  ;;  %v1856_v16 = vrot.slane %v5286_v35, 2  ;;  %3752 = vmatpush1.bf16.msra.mxu1 %v3751_v14  ;;  %v3754_v58 = vpack.c.bf16 %v3426_v20, %v3425_v30  ;;  %v3427_v14 = vld [vmem:[%s7071_s1 + $0x2d0] sm:$0xff] }
 0x12d   : > { %v1986_v36 = vrot.slane %v7472_v9, 4  ;;  %v5300_v41 = vsel %vm659_vm2, %v7457_v53, %v1886_v29  ;;  %v5303_v32 = vsel %vm1955_vm3, %v1982_v60, %v1984_v23  ;;  %540 = vrot.lane.b32.xlu1 %v476_v19, %s4165_s29  ;;  %v7190_v37 = vmov 0.0   ;;  %3753 = vmatprep.subr.bf16.mxu1 %v7391_v5  ;;  %v3428_v53 = vld [vmem:[%s7071_s1 + $0x2d8] sm:$0xff]  ;;  %v7475_v60 = vld [vmem:[#allocation17_spill] sm:$0xff] }
 0x12e   : > { %7473 = vst [vmem:[#allocation18_spill] sm:$0xff] %v5300_v41  ;;  %7474 = vst [vmem:[#allocation60_spill] sm:$0xff] %v5303_v32  ;;  %v5307_v52 = vrot.slane %v7190_v37, 7  ;;  %v1858_v30 = vrot.slane %v5283_v51, 2  ;;  %2320 = vmatmul.mubr.f32.gmra.mrb[16].mxu1 %v5300_v41  ;;  %v1857_v23 = vsel %vm578_vm4, %v1855_v0, %v1856_v16  ;;  %v1987_v20 = vrot.slane %v7475_v60, 4 }
 0x12f   : > { %v481_v19 = vsel %vm401_vm5, %v7201_v56, %v480_v47  ;;  %1917 = vrot.lane.b32.xlu0 %v1857_v23, %s4165_s29  ;;  %3466 = vmatprep.mubr.msk.f32.mxu1 %vm659_vm2, %v5303_v32  ;;  %v1616_v29 = vpop.permute.xlu1 %1615  ;;  %v7200_v0 = vrot.slane %v5270_v50, 1  ;;  %v3757_v54 = vpack.c.bf16 %v3428_v53, %v3427_v14  ;;  %v1989_v51 = vrot.slane %v7477_v55, 4  ;;  %v3429_v23 = vld [vmem:[%s7071_s1 + $0x2e0] sm:$0xff] }
 0x130   : > { %v5328_v37 = vsel %vm234_vm0, %v5307_v52, 0.0  ;;  %v1668_v38 = vrot.slane %v1616_v29, 6  ;;  %v1614_v41 = vpop.permute.xlu0 %1613  ;;  %3755 = vmatpush1.bf16.msra.mxu1 %v3754_v58  ;;  %v5334_v47 = vsel %vm659_vm2, %v7460_v11, %v1888_v62  ;;  %v3430_v58 = vld [vmem:[%s7071_s1 + $0x2e8] sm:$0xff]  ;;  %v1859_v55 = vsel %vm578_vm4, %v1856_v16, %v1858_v30 }
 0x131   : > { %7476 = vst [vmem:[#allocation17_spill] sm:$0xff] %v5328_v37  ;;  %v1667_v35 = vrot.slane %v1614_v41, 6  ;;  %7478 = vst [vmem:[#allocation16_spill] sm:$0xff] %v5334_v47  ;;  %544 = vrot.lane.b32.xlu1 %v481_v19, %s4165_s29  ;;  %3756 = vmatprep.subr.bf16.mxu1 %v7391_v5  ;;  %v5347_v41 = vsel %vm1955_vm3, %v1986_v36, %v1987_v20  ;;  %v722_v11 = vsel %vm401_vm5, %v7200_v0, %v721_v44 }
 0x132   : > { %2325 = vmatmul.mubr.f32.gmra.mrb[18].mxu1 %v5334_v47  ;;  %7479 = vst [vmem:[#allocation61_spill] sm:$0xff] %v5347_v41  ;;  %v405_v62 = vrot.slane %v5328_v37, 1  ;;  %v5354_v14 = vsel %vm1625_vm1, %v1668_v38, 0.0  ;;  %v3760_v0 = vpack.c.bf16 %v3430_v58, %v3429_v23  ;;  %v7484_v23 = vrot.slane %v5307_v52, 1 }
 0x133   : > { %v5357_v53 = vsel %vm1625_vm1, %v1667_v35, %v1668_v38  ;;  %v5360_v19 = vsel %vm1625_vm1, 0.0, %v1667_v35  ;;  %1919 = vrot.lane.b32.xlu0 %v1859_v55, %s4165_s29  ;;  %3467 = vmatprep.mubr.msk.f32.mxu1 %vm659_vm2, %v5347_v41  ;;  %v1892_v16 = vpop.permute.xlu1 %1891  ;;  %v7480_v38 = vld [vmem:[#allocation22_spill] sm:$0xff]  ;;  %v7482_v55 = vld [vmem:[#allocation21_spill] sm:$0xff]  ;;  %v1863_v41 = vrot.slane %v5354_v14, 2 }
 0x134   : > { %v1860_v36 = vrot.slane %v5360_v19, 2  ;;  %v1890_v44 = vpop.permute.xlu0 %1889  ;;  %v1861_v30 = vrot.slane %v5357_v53, 2  ;;  %3758 = vmatpush1.bf16.msra.mxu1 %v3757_v54  ;;  %v1991_v56 = vrot.slane %v7480_v38, 4  ;;  %v1992_v47 = vrot.slane %v7482_v55, 4 }
 0x135   : > { %v5371_v35 = vsel %vm659_vm2, %v7472_v9, %v1890_v44  ;;  %725 = vrot.lane.b32.xlu1 %v722_v11, %s4165_s29  ;;  %3759 = vmatprep.subr.bf16.mxu1 %v7391_v5  ;;  %v5380_v54 = vsel %vm1955_vm3, %v1987_v20, %v1989_v51  ;;  %v406_v9 = vsel %vm401_vm5, %v7484_v23, %v405_v62  ;;  %v3432_v51 = vld [vmem:[%s7071_s1 + $0x2f8] sm:$0xff] }
 0x136   : > { %7481 = vst [vmem:[#allocation22_spill] sm:$0xff] %v5371_v35  ;;  %2330 = vmatmul.mubr.f32.gmra.mrb[20].mxu1 %v5371_v35  ;;  %v1862_v29 = vsel %vm578_vm4, %v1860_v36, %v1861_v30  ;;  %7483 = vst [vmem:[#allocation21_spill] sm:$0xff] %v5380_v54  ;;  %v3431_v36 = vld [vmem:[%s7071_s1 + $0x2f0] sm:$0xff]  ;;  %v5396_v62 = vsel %vm659_vm2, %v7475_v60, %v1892_v16  ;;  %v7486_v23 = vld [vmem:[#allocation20_spill] sm:$0xff] }
 0x137   : > { %1921 = vrot.lane.b32.xlu0 %v1862_v29, %s4165_s29  ;;  %3468 = vmatprep.mubr.msk.f32.mxu1 %vm659_vm2, %v5380_v54  ;;  %v1620_v58 = vpop.permute.xlu1 %1619  ;;  %7485 = vst [vmem:[#allocation62_spill] sm:$0xff] %v5396_v62  ;;  %v3763_v29 = vpack.c.bf16 %v3432_v51, %v3431_v36  ;;  %v5404_v54 = vsel %vm1955_vm3, %v1991_v56, %v1992_v47  ;;  %v7489_v36 = vld [vmem:[#allocation26_spill] sm:$0xff] }
 0x138   : > { %v1671_v11 = vrot.slane %v1620_v58, 6  ;;  %v1618_v44 = vpop.permute.xlu0 %1617  ;;  %3761 = vmatpush1.bf16.msra.mxu1 %v3760_v0  ;;  %v1994_v0 = vrot.slane %v7486_v23, 4  ;;  %v1864_v58 = vsel %vm578_vm4, %v1861_v30, %v1863_v41  ;;  %7487 = vst [vmem:[#allocation20_spill] sm:$0xff] %v5404_v54  ;;  %v1996_v51 = vrot.slane %v7489_v36, 4 }
 0x139   : > { %v1670_v20 = vrot.slane %v1618_v44, 6  ;;  %484 = vrot.lane.b32.xlu1 %v406_v9, %s4165_s29  ;;  %3762 = vmatprep.subr.bf16.mxu1 %v7391_v5 }
 0x13a   : > { %2335 = vmatmul.mubr.f32.gmra.mrb[22].mxu1 %v5396_v62  ;;  %v5407_v44 = vsel %vm1625_vm1, %v1671_v11, 0.0 }
 0x13b   : > { %7488 = vst [vmem:[#allocation63_spill] sm:$0xff] %v5407_v44  ;;  %v5410_v60 = vsel %vm1625_vm1, %v1670_v20, %v1671_v11  ;;  %v5413_v16 = vsel %vm1625_vm1, 0.0, %v1670_v20  ;;  %1923 = vrot.lane.b32.xlu0 %v1864_v58, %s4165_s29  ;;  %3469 = vmatprep.mubr.msk.f32.mxu1 %vm659_vm2, %v5404_v54  ;;  %v1896_v9 = vpop.permute.xlu1 %1895  ;;  %v2093_v20 = vrot.slane %v5407_v44, 2  ;;  %v5430_v58 = vsel %vm1955_vm3, %v1992_v47, %v1994_v0  ;;  %v7492_v54 = vld [vmem:[#allocation25_spill] sm:$0xff]  ;;  %v693_v0 = vld [vmem:[%s7071_s1 + $0x8] sm:$0xff] }
 0x13c   : > { %v2090_v41 = vrot.slane %v5413_v16, 2  ;;  %v1894_v30 = vpop.permute.xlu0 %1893  ;;  %v2091_v56 = vrot.slane %v5410_v60, 2  ;;  %3764 = vmatpush1.bf16.msra.mxu1 %v3763_v29  ;;  %7491 = vst [vmem:[#allocation64_spill] sm:$0xff] %v5430_v58  ;;  %v1997_v62 = vrot.slane %v7492_v54, 4  ;;  %v5438_v37 = vsel %vm659_vm2, %v7482_v55, %v1896_v9  ;;  %v692_v47 = vld [vmem:[%s7071_s1] sm:$0xff] }
 0x13d   : > { %v5423_v11 = vsel %vm659_vm2, %v7480_v38, %v1894_v30  ;;  %3765 = vmatprep.subr.bf16.mxu1 %v7391_v5  ;;  %7493 = vst [vmem:[#allocation25_spill] sm:$0xff] %v5438_v37  ;;  %v589_v9 = vrot.slane %v4726_v7, 2  ;;  %v3622_v44 = vpack.c.bf16 %v693_v0, %v692_v47  ;;  %v695_v47 = vld [vmem:[%s7071_s1 + $0x18] sm:$0xff] }
 0x13e   : > { %7490 = vst [vmem:[#allocation26_spill] sm:$0xff] %v5423_v11  ;;  %2340 = vmatmul.mubr.f32.gmra.mrb[24].mxu1 %v5423_v11  ;;  %v2092_v23 = vsel %vm578_vm4, %v2090_v41, %v2091_v56  ;;  %v7494_v11 = vmov 0.0   ;;  %v5453_v55 = vsel %vm1955_vm3, %v1996_v51, %v1997_v62  ;;  %v2001_v51 = vrot.slane %v4741_v1, 4 }
 0x13f   : > { %2100 = vrot.lane.b32.xlu0 %v2092_v23, %s4165_s29  ;;  %3470 = vmatprep.mubr.msk.f32.mxu1 %vm659_vm2, %v5430_v58  ;;  %v1624_v38 = vpop.permute.xlu1 %1623  ;;  %v5441_v41 = vrot.slane %v7494_v11, 6  ;;  %v7495_v23 = vld [vmem:[#allocation29_spill] sm:$0xff] }
 0x140   : > { %v1674_v29 = vrot.slane %v1624_v38, 6  ;;  %v1622_v30 = vpop.permute.xlu0 %1621  ;;  %v1999_v58 = vrot.slane %v7495_v23, 4  ;;  %v2094_v38 = vsel %vm578_vm4, %v2091_v56, %v2093_v20  ;;  %7496 = vst [vmem:[#allocation29_spill] sm:$0xff] %v5453_v55 }
 0x141   : > { %v1673_v35 = vrot.slane %v1622_v30, 6 }
 0x142   : > { %2345 = vmatmul.mubr.f32.gmra.mrb[26].mxu1 %v5438_v37  ;;  %v5457_v11 = vsel %vm1625_vm1, %v1674_v29, 0.0 }
 0x143   : > { %7497 = vst [vmem:[#allocation65_spill] sm:$0xff] %v5457_v11  ;;  %v5460_v30 = vsel %vm1625_vm1, %v1673_v35, %v1674_v29  ;;  %v5463_v32 = vsel %vm1625_vm1, 0.0, %v1673_v35  ;;  %2102 = vrot.lane.b32.xlu0 %v2094_v38, %s4165_s29  ;;  %3471 = vmatprep.mubr.msk.f32.mxu1 %vm659_vm2, %v5453_v55  ;;  %v487_v56 = vpop.permute.xlu1 %486  ;;  %v5477_v35 = vsel %vm1625_vm1, 0.0, %v5441_v41  ;;  %v590_v55 = vrot.slane %v4285_v10, 2 }
 0x144   : > { %7498 = vst [vmem:[#allocation66_spill] sm:$0xff] %v5460_v30  ;;  %7499 = vst [vmem:[#allocation67_spill] sm:$0xff] %v5463_v32  ;;  %v2095_v20 = vrot.slane %v5463_v32, 2  ;;  %v1898_v23 = vpop.permute.xlu0 %1897  ;;  %v2096_v37 = vrot.slane %v5460_v30, 2  ;;  %v5481_v38 = vsel %vm659_vm2, %v4682_v45, %v487_v56  ;;  %v694_v32 = vld [vmem:[%s7071_s1 + $0x10] sm:$0xff]  ;;  %v2002_v45 = vrot.slane %v4738_v3, 4 }
 0x145   : > { %v5473_v29 = vsel %vm659_vm2, %v7489_v36, %v1898_v23  ;;  %7501 = vst [vmem:[#allocation69_spill] sm:$0xff] %v5481_v38  ;;  %v2098_v36 = vrot.slane %v5457_v11, 2  ;;  %v5494_v23 = vsel %vm1955_vm3, %v1997_v62, %v1999_v58  ;;  %890 = vmatmul.mubr.f32.vlgmr.msra.gmra.mrb[0].mxu0 %v5481_v38  ;;  %v1790_v11 = vrot.slane %v5477_v35, 2 }
 0x146   : > { %7500 = vst [vmem:[#allocation68_spill] sm:$0xff] %v5473_v29  ;;  %2350 = vmatmul.mubr.f32.gmra.mrb[28].mxu1 %v5473_v29  ;;  %v2097_v0 = vsel %vm578_vm4, %v2095_v20, %v2096_v37  ;;  %7502 = vst [vmem:[#allocation70_spill] sm:$0xff] %v5494_v23  ;;  %v1791_v29 = vrot.slane %v5441_v41, 2  ;;  %3290 = vmatprep.mubr.msk.f32.mxu0 %vm659_vm2, %v4863_v6  ;;  %v3625_v58 = vpack.c.bf16 %v695_v47, %v694_v32  ;;  %v7503_v6 = vld [vmem:[#allocation30_spill] sm:$0xff] }
 0x147   : > { %2104 = vrot.lane.b32.xlu0 %v2097_v0, %s4165_s29  ;;  %3472 = vmatprep.mubr.msk.f32.mxu1 %vm659_vm2, %v5494_v23  ;;  %v489_v56 = vpop.permute.xlu1 %488  ;;  %v592_v20 = vrot.slane %v4751_v34, 2  ;;  %v5516_v23 = vsel %vm1625_vm1, %v5441_v41, 0.0  ;;  %v5519_v38 = vsel %vm578_vm4, %v589_v9, %v590_v55  ;;  %v2099_v32 = vsel %vm578_vm4, %v2096_v37, %v2098_v36  ;;  %v696_v37 = vld [vmem:[%s7071_s1 + $0x20] sm:$0xff]  ;;  %v697_v9 = vld [vmem:[%s7071_s1 + $0x28] sm:$0xff] }
 0x148   : > { %v1900_v30 = vpop.permute.xlu0 %1899  ;;  %v5507_v62 = vsel %vm659_vm2, %v4271_v8, %v489_v56  ;;  %3623 = vmatpush1.bf16.msra.mxu0 %v3622_v44  ;;  %v2004_v8 = vrot.slane %v7503_v6, 4  ;;  %v5526_v34 = vsel %vm1955_vm3, %v2001_v51, %v2002_v45  ;;  %v1793_v51 = vrot.slane %v5516_v23, 2 }
 0x149   : > { %v5512_v0 = vsel %vm659_vm2, %v7492_v54, %v1900_v30  ;;  %3624 = vmatprep.subr.bf16.mxu0 %v7391_v5  ;;  %7504 = vst [vmem:[#allocation30_spill] sm:$0xff] %v5526_v34  ;;  %895 = vmatmul.mubr.f32.gmra.mrb[2].mxu0 %v5507_v62  ;;  %v7505_v54 = vrot.slane %v4568_v57, 7  ;;  %v1792_v57 = vsel %vm578_vm4, %v1790_v11, %v1791_v29  ;;  %v594_v56 = vrot.slane %v4773_v46, 2 }
 0x14a   : > { %2355 = vmatmul.mubr.f32.gmra.mrb[30].mxu1 %v5512_v0  ;;  %3291 = vmatprep.mubr.msk.f32.mxu0 %vm659_vm2, %v5519_v38  ;;  %v3628_v36 = vpack.c.bf16 %v697_v9, %v696_v37  ;;  %v595_v11 = vrot.slane %v4321_v24, 2  ;;  %v1794_v37 = vsel %vm578_vm4, %v1791_v29, %v1793_v51  ;;  %v7508_v29 = vrot.slane %v4620_v21, 7 }
 0x14b   : > { %v5532_v44 = vsel %vm234_vm0, 0.0, %v7505_v54  ;;  %2106 = vrot.lane.b32.xlu0 %v2099_v32, %s4165_s29  ;;  %3473 = vmatprep.mubr.msk.f32.mxu1 %vm659_vm2, %v5526_v34  ;;  %v491_v6 = vpop.permute.xlu1 %490  ;;  %v5557_v54 = vsel %vm578_vm4, %v590_v55, %v592_v20  ;;  %v2006_v34 = vrot.slane %v5036_v40, 4  ;;  %v597_v20 = vrot.slane %v4798_v26, 2 }
 0x14c   : > { %v1902_v30 = vpop.permute.xlu0 %1901  ;;  %v5549_v47 = vsel %vm659_vm2, %v4726_v7, %v491_v6  ;;  %3626 = vmatpush1.bf16.msra.mxu0 %v3625_v58  ;;  %v5564_v7 = vsel %vm1955_vm3, %v2002_v45, %v2004_v8  ;;  %v7239_v58 = vrot.slane %v5033_v33, 4  ;;  %v7507_v8 = vrot.slane %v4594_v61, 7 }
 0x14d   : > { %7506 = vst [vmem:[#allocation71_spill] sm:$0xff] %v5549_v47  ;;  %v5554_v32 = vsel %vm659_vm2, %v4741_v1, %v1902_v30  ;;  %3627 = vmatprep.subr.bf16.mxu0 %v7391_v5  ;;  %900 = vmatmul.mubr.f32.gmra.mrb[4].mxu0 %v5549_v47  ;;  %v457_v1 = vrot.slane %v5532_v44, 1  ;;  %v5590_v26 = vsel %vm578_vm4, %v594_v56, %v595_v11  ;;  %v599_v61 = vrot.slane %v4815_v18, 2 }
 0x14e   : > { %2360 = vmatmul.mubr.f32.gmra.mrb[32].mxu1 %v5554_v32  ;;  %3292 = vmatprep.mubr.msk.f32.mxu0 %vm659_vm2, %v5557_v54  ;;  %v5583_v9 = vsel %vm234_vm0, 0.0, %v7507_v8  ;;  %v5620_v56 = vsel %vm578_vm4, %v595_v11, %v597_v20  ;;  %v602_v8 = vrot.slane %v4831_v49, 2  ;;  %v7510_v20 = vrot.slane %v7433_v12, 7 }
 0x14f   : > { %1865 = vrot.lane.b32.xlu0 %v1792_v57, %s4165_s29  ;;  %3474 = vmatprep.mubr.msk.f32.mxu1 %vm659_vm2, %v5564_v7  ;;  %v493_v55 = vpop.permute.xlu1 %492  ;;  %v7509_v57 = vrot.slane %v5071_v39, 1  ;;  %v604_v12 = vrot.slane %v4847_v27, 2 }
 0x150   : > { %v1904_v6 = vpop.permute.xlu0 %1903  ;;  %v5578_v45 = vsel %vm659_vm2, %v4285_v10, %v493_v55  ;;  %3629 = vmatpush1.bf16.msra.mxu0 %v3628_v36  ;;  %v5597_v10 = vsel %vm1955_vm3, %v2006_v34, %v7239_v58  ;;  %v462_v36 = vrot.slane %v5583_v9, 1  ;;  %v600_v55 = vrot.slane %v4330_v25, 2 }
 0x151   : > { %v5587_v30 = vsel %vm659_vm2, %v4738_v3, %v1904_v6  ;;  %3630 = vmatprep.subr.bf16.mxu0 %v7391_v5  ;;  %905 = vmatmul.mubr.f32.gmra.mrb[6].mxu0 %v5578_v45  ;;  %v5604_v3 = vsel %vm234_vm0, 0.0, %v7508_v29  ;;  %v459_v51 = vsel %vm401_vm5, %v457_v1, %v7509_v57  ;;  %v698_v6 = vld [vmem:[%s7071_s1 + $0x30] sm:$0xff]  ;;  %v699_v1 = vld [vmem:[%s7071_s1 + $0x38] sm:$0xff]  ;;  %v5638_v29 = vsel %vm234_vm0, 0.0, %v7510_v20 }
 0x152   : > { %2365 = vmatmul.mubr.f32.gmra.mrb[34].mxu1 %v5587_v30  ;;  %3293 = vmatprep.mubr.msk.f32.mxu0 %vm659_vm2, %v5590_v26  ;;  %v7511_v57 = vrot.slane %v5077_v22, 1 }
 0x153   : > { %1867 = vrot.lane.b32.xlu0 %v1794_v37, %s4165_s29  ;;  %3475 = vmatprep.mubr.msk.f32.mxu1 %vm659_vm2, %v5597_v10  ;;  %v495_v34 = vpop.permute.xlu1 %494  ;;  %v3631_v37 = vpack.c.bf16 %v699_v1, %v698_v6  ;;  %v7513_v6 = vrot.slane %v7447_v4, 7  ;;  %v701_v4 = vld [vmem:[%s7071_s1 + $0x48] sm:$0xff] }
 0x154   : > { %v5617_v21 = vsel %vm659_vm2, %v4773_v46, %v495_v34  ;;  %v467_v46 = vrot.slane %v5604_v3, 1  ;;  %v464_v34 = vsel %vm401_vm5, %v462_v36, %v7511_v57  ;;  %v605_v57 = vrot.slane %v4339_v28, 2 }
 0x155   : > { %910 = vmatmul.mubr.f32.gmra.mrb[8].mxu0 %v5617_v21  ;;  %v5656_v1 = vsel %vm234_vm0, 0.0, %v7513_v6  ;;  %v607_v6 = vrot.slane %v4873_v13, 2  ;;  %v703_v13 = vld [vmem:[%s7071_s1 + $0x58] sm:$0xff] }
 0x156   : > { %3294 = vmatprep.mubr.msk.f32.mxu0 %vm659_vm2, %v5620_v56  ;;  %3632 = vmatpush1.bf16.msra.mxu0 %v3631_v37 }
 0x157   : > { %526 = vrot.lane.b32.xlu0 %v459_v51, %s4165_s29  ;;  %v497_v11 = vpop.permute.xlu1 %496  ;;  %v5648_v51 = vsel %vm578_vm4, %v599_v61, %v600_v55  ;;  %3633 = vmatprep.subr.bf16.mxu0 %v7391_v5  ;;  %v472_v61 = vrot.slane %v5638_v29, 1 }
 0x158   : > { %v5645_v49 = vsel %vm659_vm2, %v4321_v24, %v497_v11  ;;  %7512 = vst [vmem:[#allocation72_spill] sm:$0xff] %v5648_v51  ;;  %v7514_v24 = vrot.slane %v5157_v59, 1  ;;  %v700_v11 = vld [vmem:[%s7071_s1 + $0x40] sm:$0xff] }
 0x159   : > { %915 = vmatmul.mubr.f32.gmra.mrb[10].mxu0 %v5645_v49 }
 0x15a   : > { %v469_v36 = vsel %vm401_vm5, %v467_v46, %v7514_v24  ;;  %3295 = vmatprep.mubr.msk.f32.mxu0 %vm659_vm2, %v5648_v51  ;;  %v5676_v46 = vsel %vm578_vm4, %v600_v55, %v602_v8  ;;  %v7516_v24 = vrot.slane %v7458_v17, 7  ;;  %v702_v55 = vld [vmem:[%s7071_s1 + $0x50] sm:$0xff]  ;;  %v7517_v17 = vrot.slane %v5163_v63, 1 }
 0x15b   : > { %530 = vrot.lane.b32.xlu0 %v464_v34, %s4165_s29  ;;  %v499_v37 = vpop.permute.xlu1 %498  ;;  %7515 = vst [vmem:[#allocation73_spill] sm:$0xff] %v5676_v46  ;;  %v3634_v34 = vpack.c.bf16 %v701_v4, %v700_v11  ;;  %v5704_v11 = vsel %vm578_vm4, %v604_v12, %v605_v57  ;;  %v3637_v4 = vpack.c.bf16 %v703_v13, %v702_v55  ;;  %v704_v12 = vld [vmem:[%s7071_s1 + $0x60] sm:$0xff]  ;;  %v705_v13 = vld [vmem:[%s7071_s1 + $0x68] sm:$0xff] }
 0x15c   : > { %v5673_v20 = vsel %vm659_vm2, %v4815_v18, %v499_v37  ;;  %v5684_v58 = vsel %vm234_vm0, 0.0, %v7516_v24  ;;  %v477_v18 = vrot.slane %v5656_v1, 1  ;;  %v474_v8 = vsel %vm401_vm5, %v472_v61, %v7517_v17  ;;  %7519 = vst [vmem:[#allocation75_spill] sm:$0xff] %v5704_v11 }
 0x15d   : > { %920 = vmatmul.mubr.f32.gmra.mrb[12].mxu0 %v5673_v20  ;;  %v609_v24 = vrot.slane %v4888_v48, 2  ;;  %v3640_v17 = vpack.c.bf16 %v705_v13, %v704_v12 }
 0x15e   : > { %3296 = vmatprep.mubr.msk.f32.mxu0 %vm659_vm2, %v5676_v46  ;;  %3635 = vmatpush1.bf16.msra.mxu0 %v3634_v34  ;;  %v7520_v46 = vrot.slane %v5250_v2, 1  ;;  %v5721_v34 = vsel %vm234_vm0, 0.0, %v5307_v52 }
 0x15f   : > { %534 = vrot.lane.b32.xlu0 %v469_v36, %s4165_s29  ;;  %v501_v37 = vpop.permute.xlu1 %500  ;;  %3636 = vmatprep.subr.bf16.mxu0 %v7391_v5 }
 0x160   : > { %v5701_v36 = vsel %vm659_vm2, %v4330_v25, %v501_v37  ;;  %v479_v61 = vsel %vm401_vm5, %v477_v18, %v7520_v46  ;;  %v718_v25 = vrot.slane %v5684_v58, 1  ;;  %v5728_v46 = vsel %vm578_vm4, %v605_v57, %v607_v6  ;;  %v706_v6 = vld [vmem:[%s7071_s1 + $0x70] sm:$0xff] }
 0x161   : > { %7518 = vst [vmem:[#allocation74_spill] sm:$0xff] %v5701_v36  ;;  %925 = vmatmul.mubr.f32.gmra.mrb[14].mxu0 %v5701_v36  ;;  %7522 = vst [vmem:[#allocation77_spill] sm:$0xff] %v5728_v46  ;;  %v610_v18 = vrot.slane %v4354_v31, 2 }
 0x162   : > { %3297 = vmatprep.mubr.msk.f32.mxu0 %vm659_vm2, %v5704_v11  ;;  %3638 = vmatpush1.bf16.msra.mxu0 %v3637_v4  ;;  %v707_v4 = vld [vmem:[%s7071_s1 + $0x78] sm:$0xff] }
 0x163   : > { %538 = vrot.lane.b32.xlu0 %v474_v8, %s4165_s29  ;;  %v503_v37 = vpop.permute.xlu1 %502  ;;  %3639 = vmatprep.subr.bf16.mxu0 %v7391_v5  ;;  %v612_v8 = vrot.slane %v4904_v42, 2  ;;  %v5755_v12 = vsel %vm578_vm4, %v609_v24, %v610_v18  ;;  %v3643_v13 = vpack.c.bf16 %v707_v4, %v706_v6  ;;  %v709_v24 = vld [vmem:[%s7071_s1 + $0x88] sm:$0xff] }
 0x164   : > { %v5725_v55 = vsel %vm659_vm2, %v4847_v27, %v503_v37  ;;  %v402_v27 = vrot.slane %v5721_v34, 1  ;;  %v7523_v37 = vrot.slane %v5270_v50, 1  ;;  %7525 = vst [vmem:[#allocation79_spill] sm:$0xff] %v5755_v12 }
 0x165   : > { %7521 = vst [vmem:[#allocation76_spill] sm:$0xff] %v5725_v55  ;;  %930 = vmatmul.mubr.f32.gmra.mrb[16].mxu0 %v5725_v55  ;;  %v7526_v55 = vrot.slane %v5307_v52, 1 }
 0x166   : > { %3298 = vmatprep.mubr.msk.f32.mxu0 %vm659_vm2, %v5728_v46  ;;  %v720_v42 = vsel %vm401_vm5, %v718_v25, %v7523_v37  ;;  %3641 = vmatpush1.bf16.msra.mxu0 %v3640_v17  ;;  %v614_v46 = vrot.slane %v4919_v15, 2 }
 0x167   : > { %542 = vrot.lane.b32.xlu0 %v479_v61, %s4165_s29  ;;  %v505_v57 = vpop.permute.xlu1 %504  ;;  %3642 = vmatprep.subr.bf16.mxu0 %v7391_v5  ;;  %v404_v25 = vsel %vm401_vm5, %v402_v27, %v7526_v55  ;;  %v7529_v55 = vld [vmem:[#allocation5_spill] sm:$0xff] }
 0x168   : > { %v5752_v61 = vsel %vm659_vm2, %v4339_v28, %v505_v57  ;;  %v708_v28 = vld [vmem:[%s7071_s1 + $0x80] sm:$0xff]  ;;  %v5777_v57 = vsel %vm578_vm4, %v610_v18, %v612_v8  ;;  %v615_v27 = vrot.slane %v7529_v55, 2  ;;  %v711_v18 = vld [vmem:[%s7071_s1 + $0x98] sm:$0xff] }
 0x169   : > { %7524 = vst [vmem:[#allocation78_spill] sm:$0xff] %v5752_v61  ;;  %935 = vmatmul.mubr.f32.gmra.mrb[18].mxu0 %v5752_v61  ;;  %7528 = vst [vmem:[#allocation81_spill] sm:$0xff] %v5777_v57  ;;  %v3646_v6 = vpack.c.bf16 %v709_v24, %v708_v28  ;;  %v7530_v8 = vld [vmem:[#allocation33_spill] sm:$0xff]  ;;  %v7533_v28 = vld [vmem:[#allocation34_spill] sm:$0xff] }
 0x16a   : > { %3299 = vmatprep.mubr.msk.f32.mxu0 %vm659_vm2, %v5755_v12  ;;  %3644 = vmatpush1.bf16.msra.mxu0 %v3643_v13  ;;  %v619_v24 = vrot.slane %v7533_v28, 2 }
 0x16b   : > { %723 = vrot.lane.b32.xlu0 %v720_v42, %s4165_s29  ;;  %v507_v37 = vpop.permute.xlu1 %506  ;;  %3645 = vmatprep.subr.bf16.mxu0 %v7391_v5  ;;  %v617_v42 = vrot.slane %v7530_v8, 2 }
 0x16c   : > { %v5774_v17 = vsel %vm659_vm2, %v4888_v48, %v507_v37  ;;  %v710_v48 = vld [vmem:[%s7071_s1 + $0x90] sm:$0xff] }
 0x16d   : > { %7527 = vst [vmem:[#allocation80_spill] sm:$0xff] %v5774_v17  ;;  %940 = vmatmul.mubr.f32.gmra.mrb[20].mxu0 %v5774_v17  ;;  %v3649_v37 = vpack.c.bf16 %v711_v18, %v710_v48  ;;  %v7536_v48 = vld [vmem:[#allocation6_spill] sm:$0xff] }
 0x16e   : > { %3300 = vmatprep.mubr.msk.f32.mxu0 %vm659_vm2, %v5777_v57  ;;  %3647 = vmatpush1.bf16.msra.mxu0 %v3646_v6  ;;  %v620_v18 = vrot.slane %v7536_v48, 2 }
 0x16f   : > { %482 = vrot.lane.b32.xlu0 %v404_v25, %s4165_s29  ;;  %v509_v4 = vpop.permute.xlu1 %508  ;;  %v5797_v25 = vsel %vm578_vm4, %v614_v46, %v615_v27  ;;  %3648 = vmatprep.subr.bf16.mxu0 %v7391_v5  ;;  %v713_v46 = vld [vmem:[%s7071_s1 + $0xa8] sm:$0xff] }
 0x170   : > { %v5794_v13 = vsel %vm659_vm2, %v4354_v31, %v509_v4  ;;  %7532 = vst [vmem:[#allocation33_spill] sm:$0xff] %v5797_v25  ;;  %v712_v31 = vld [vmem:[%s7071_s1 + $0xa0] sm:$0xff]  ;;  %v5815_v4 = vsel %vm578_vm4, %v615_v27, %v617_v42  ;;  %v7537_v27 = vld [vmem:[#allocation35_spill] sm:$0xff] }
 0x171   : > { %7531 = vst [vmem:[#allocation5_spill] sm:$0xff] %v5794_v13  ;;  %945 = vmatmul.mubr.f32.gmra.mrb[22].mxu0 %v5794_v13  ;;  %7535 = vst [vmem:[#allocation82_spill] sm:$0xff] %v5815_v4  ;;  %v3652_v8 = vpack.c.bf16 %v713_v46, %v712_v31  ;;  %v622_v42 = vrot.slane %v7537_v27, 2  ;;  %v5834_v31 = vsel %vm578_vm4, %v619_v24, %v620_v18 }
 0x172   : > { %3301 = vmatprep.mubr.msk.f32.mxu0 %vm659_vm2, %v5797_v25  ;;  %3650 = vmatpush1.bf16.msra.mxu0 %v3649_v37  ;;  %7539 = vst [vmem:[#allocation35_spill] sm:$0xff] %v5834_v31 }
 0x173   : > { %v511_v57 = vpop.permute.xlu1 %510  ;;  %3651 = vmatprep.subr.bf16.mxu0 %v7391_v5 }
 0x174   : > { %v5812_v6 = vsel %vm659_vm2, %v4919_v15, %v511_v57  ;;  %v714_v15 = vld [vmem:[%s7071_s1 + $0xb0] sm:$0xff]  ;;  %v715_v57 = vld [vmem:[%s7071_s1 + $0xb8] sm:$0xff] }
 0x175   : > { %7534 = vst [vmem:[#allocation34_spill] sm:$0xff] %v5812_v6  ;;  %950 = vmatmul.mubr.f32.gmra.mrb[24].mxu0 %v5812_v6  ;;  %v3655_v46 = vpack.c.bf16 %v715_v57, %v714_v15  ;;  %v7540_v6 = vld [vmem:[#allocation36_spill] sm:$0xff]  ;;  %v7544_v15 = vld [vmem:[#allocation37_spill] sm:$0xff] }
 0x176   : > { %3302 = vmatprep.mubr.msk.f32.mxu0 %vm659_vm2, %v5815_v4  ;;  %3653 = vmatpush1.bf16.msra.mxu0 %v3652_v8  ;;  %v624_v13 = vrot.slane %v7540_v6, 2  ;;  %v627_v57 = vrot.slane %v7544_v15, 2 }
 0x177   : > { %v513_v25 = vpop.permute.xlu1 %512  ;;  %3654 = vmatprep.subr.bf16.mxu0 %v7391_v5 }
 0x178   : > { %v5831_v37 = vsel %vm659_vm2, %v7529_v55, %v513_v25  ;;  %v5846_v55 = vsel %vm578_vm4, %v620_v18, %v622_v42  ;;  %v7543_v25 = vld [vmem:[#allocation7_spill] sm:$0xff]  ;;  %v7547_v42 = vld [vmem:[#allocation40_spill] sm:$0xff] }
 0x179   : > { %7538 = vst [vmem:[#allocation6_spill] sm:$0xff] %v5831_v37  ;;  %955 = vmatmul.mubr.f32.gmra.mrb[26].mxu0 %v5831_v37  ;;  %7542 = vst [vmem:[#allocation83_spill] sm:$0xff] %v5846_v55  ;;  %v625_v24 = vrot.slane %v7543_v25, 2 }
 0x17a   : > { %3303 = vmatprep.mubr.msk.f32.mxu0 %vm659_vm2, %v5834_v31  ;;  %3656 = vmatpush1.bf16.msra.mxu0 %v3655_v46  ;;  %v629_v46 = vrot.slane %v7547_v42, 2 }
 0x17b   : > { %v515_v4 = vpop.permute.xlu1 %514  ;;  %3657 = vmatprep.subr.bf16.mxu0 %v7391_v5  ;;  %v5870_v15 = vsel %vm578_vm4, %v625_v24, %v627_v57 }
 0x17c   : > { %v5843_v27 = vsel %vm659_vm2, %v7533_v28, %v515_v4  ;;  %v5859_v4 = vsel %vm578_vm4, %v624_v13, %v625_v24  ;;  %7549 = vst [vmem:[#allocation84_spill] sm:$0xff] %v5870_v15  ;;  %v7551_v13 = vld [vmem:[#allocation45_spill] sm:$0xff] }
 0x17d   : > { %7541 = vst [vmem:[#allocation36_spill] sm:$0xff] %v5843_v27  ;;  %960 = vmatmul.mubr.f32.gmra.mrb[28].mxu0 %v5843_v27  ;;  %7546 = vst [vmem:[#allocation37_spill] sm:$0xff] %v5859_v4  ;;  %v2009_v27 = vrot.slane %v7551_v13, 4 }
 0x17e   : > { %3304 = vmatprep.mubr.msk.f32.mxu0 %vm659_vm2, %v5846_v55 }
 0x17f   : > { %v517_v8 = vpop.permute.xlu1 %516 }
 0x180   : > { %v5856_v28 = vsel %vm659_vm2, %v7536_v48, %v517_v8  ;;  %v7550_v48 = vld [vmem:[#allocation39_spill] sm:$0xff] }
 0x181   : > { %7545 = vst [vmem:[#allocation7_spill] sm:$0xff] %v5856_v28  ;;  %965 = vmatmul.mubr.f32.gmra.mrb[30].mxu0 %v5856_v28  ;;  %v630_v8 = vrot.slane %v7550_v48, 2 }
 0x182   : > { %3305 = vmatprep.mubr.msk.f32.mxu0 %vm659_vm2, %v5859_v4  ;;  %v7552_v4 = vld [vmem:[#allocation41_spill] sm:$0xff] }
 0x183   : > { %v519_v18 = vpop.permute.xlu1 %518  ;;  %v632_v31 = vrot.slane %v7552_v4, 2  ;;  %v7556_v4 = vrot.slane %v5033_v33, 4 }
 0x184   : > { %v5867_v55 = vsel %vm659_vm2, %v7540_v6, %v519_v18  ;;  %v5883_v6 = vsel %vm578_vm4, %v629_v46, %v630_v8  ;;  %v7555_v18 = vld [vmem:[#allocation54_spill] sm:$0xff] }
 0x185   : > { %7548 = vst [vmem:[#allocation40_spill] sm:$0xff] %v5867_v55  ;;  %970 = vmatmul.mubr.f32.gmra.mrb[32].mxu0 %v5867_v55  ;;  %7554 = vst [vmem:[#allocation45_spill] sm:$0xff] %v5883_v6  ;;  %v2011_v13 = vrot.slane %v7555_v18, 4 }
 0x186   : > { %3306 = vmatprep.mubr.msk.f32.mxu0 %vm659_vm2, %v5870_v15  ;;  %v5895_v15 = vsel %vm1955_vm3, %v7556_v4, %v2009_v27  ;;  %v7280_v27 = vrot.slane %v5071_v39, 2 }
 0x187   : > { %v521_v28 = vpop.permute.xlu1 %520 }
 0x188   : > { %v5880_v37 = vsel %vm659_vm2, %v7543_v25, %v521_v28  ;;  %v7557_v25 = vld [vmem:[#allocation53_spill] sm:$0xff] }
 0x189   : > { %7553 = vst [vmem:[#allocation39_spill] sm:$0xff] %v5880_v37  ;;  %v1906_v24 = vpop.permute.xlu0 %1905  ;;  %975 = vmatmul.mubr.f32.gmra.mrb[34].mxu0 %v5880_v37  ;;  %v2012_v28 = vrot.slane %v7557_v25, 4  ;;  %v5908_v37 = vsel %vm578_vm4, %v630_v8, %v632_v31 }
 0x18a   : > { %v5887_v57 = vsel %vm659_vm2, %v5036_v40, %v1906_v24  ;;  %3307 = vmatprep.mubr.msk.f32.mxu0 %vm659_vm2, %v5883_v6  ;;  %v634_v40 = vrot.slane %v5532_v44, 2  ;;  %7559 = vst [vmem:[#allocation54_spill] sm:$0xff] %v5908_v37  ;;  %v7560_v6 = vld [vmem:[#allocation19_spill] sm:$0xff] }
 0x18b   : > { %2370 = vmatmul.mubr.f32.gmra.mrb[36].mxu1 %v5887_v57  ;;  %v523_v46 = vpop.permute.xlu1 %522  ;;  %v2014_v17 = vrot.slane %v7560_v6, 4  ;;  %v5919_v12 = vsel %vm1955_vm3, %v2011_v13, %v2012_v28  ;;  %v7563_v13 = vld [vmem:[#allocation57_spill] sm:$0xff] }
 0x18c   : > { %3476 = vmatprep.mubr.msk.f32.mxu1 %vm659_vm2, %v5895_v15  ;;  %v5905_v24 = vsel %vm659_vm2, %v7547_v42, %v523_v46  ;;  %v5932_v31 = vsel %vm578_vm4, %v634_v40, %v7280_v27  ;;  %v2016_v46 = vrot.slane %v7563_v13, 4 }
 0x18d   : > { %7558 = vst [vmem:[#allocation41_spill] sm:$0xff] %v5905_v24  ;;  %v1908_v4 = vpop.permute.xlu0 %1907  ;;  %980 = vmatmul.mubr.f32.gmra.mrb[36].mxu0 %v5905_v24  ;;  %7562 = vst [vmem:[#allocation19_spill] sm:$0xff] %v5932_v31  ;;  %v7568_v24 = vld [vmem:[#allocation58_spill] sm:$0xff] }
 0x18e   : > { %v5913_v55 = vsel %vm659_vm2, %v5033_v33, %v1908_v4  ;;  %3308 = vmatprep.mubr.msk.f32.mxu0 %vm659_vm2, %v5908_v37  ;;  %v5942_v4 = vsel %vm1955_vm3, %v2012_v28, %v2014_v17 }
 0x18f   : > { %2375 = vmatmul.mubr.f32.gmra.mrb[38].mxu1 %v5913_v55  ;;  %v525_v42 = vpop.permute.xlu1 %524 }
 0x190   : > { %3477 = vmatprep.mubr.msk.f32.mxu1 %vm659_vm2, %v5919_v12  ;;  %v5927_v33 = vsel %vm659_vm2, %v7550_v48, %v525_v42  ;;  %v7564_v48 = vld [vmem:[#allocation56_spill] sm:$0xff] }
 0x191   : > { %7561 = vst [vmem:[#allocation53_spill] sm:$0xff] %v5927_v33  ;;  %v1910_v8 = vpop.permute.xlu0 %1909  ;;  %985 = vmatmul.mubr.f32.gmra.mrb[38].mxu0 %v5927_v33  ;;  %v2017_v42 = vrot.slane %v7564_v48, 4  ;;  %v2021_v33 = vrot.slane %v5289_v43, 4 }
 0x192   : > { %v5936_v6 = vsel %vm659_vm2, %v7555_v18, %v1910_v8  ;;  %3309 = vmatprep.mubr.msk.f32.mxu0 %vm659_vm2, %v5932_v31  ;;  %v7565_v8 = vld [vmem:[#allocation55_spill] sm:$0xff] }
 0x193   : > { %2380 = vmatmul.mubr.f32.gmra.mrb[40].mxu1 %v5936_v6  ;;  %v2019_v27 = vrot.slane %v7565_v8, 4  ;;  %v5956_v17 = vsel %vm1955_vm3, %v2016_v46, %v2017_v42 }
 0x194   : > { %3478 = vmatprep.mubr.msk.f32.mxu1 %vm659_vm2, %v5942_v4 }
 0x195   : > { %v1912_v40 = vpop.permute.xlu0 %1911 }
 0x196   : > { %v5951_v18 = vsel %vm659_vm2, %v7557_v25, %v1912_v40  ;;  %v5967_v25 = vsel %vm1955_vm3, %v2017_v42, %v2019_v27  ;;  %v7567_v40 = vld [vmem:[#allocation59_spill] sm:$0xff] }
 0x197   : > { %2385 = vmatmul.mubr.f32.gmra.mrb[42].mxu1 %v5951_v18  ;;  %7566 = vst [vmem:[#allocation57_spill] sm:$0xff] %v5967_v25  ;;  %v2022_v8 = vrot.slane %v7567_v40, 4 }
 0x198   : > { %3479 = vmatprep.mubr.msk.f32.mxu1 %vm659_vm2, %v5956_v17 }
 0x199   : > { %v1914_v28 = vpop.permute.xlu0 %1913 }
 0x19a   : > { %v5962_v31 = vsel %vm659_vm2, %v7563_v13, %v1914_v28  ;;  %v2024_v13 = vrot.slane %v7568_v24, 4  ;;  %v5979_v28 = vsel %vm1955_vm3, %v2021_v33, %v2022_v8 }
 0x19b   : > { %2390 = vmatmul.mubr.f32.gmra.mrb[44].mxu1 %v5962_v31 }
 0x19c   : > { %3480 = vmatprep.mubr.msk.f32.mxu1 %vm659_vm2, %v5967_v25  ;;  %v2026_v25 = vrot.slane %v5360_v19, 4  ;;  %v5991_v24 = vsel %vm1955_vm3, %v2022_v8, %v2024_v13 }
 0x19d   : > { %v1916_v46 = vpop.permute.xlu0 %1915  ;;  %7570 = vst [vmem:[#allocation55_spill] sm:$0xff] %v5991_v24 }
 0x19e   : > { %v5974_v37 = vsel %vm659_vm2, %v7564_v48, %v1916_v46  ;;  %v2027_v48 = vrot.slane %v5357_v53, 4 }
 0x19f   : > { %2395 = vmatmul.mubr.f32.gmra.mrb[46].mxu1 %v5974_v37 }
 0x1a0   : > { %3481 = vmatprep.mubr.msk.f32.mxu1 %vm659_vm2, %v5979_v28 }
 0x1a1   : > { %v1918_v27 = vpop.permute.xlu0 %1917 }
 0x1a2   : > { %v5985_v42 = vsel %vm659_vm2, %v5289_v43, %v1918_v27  ;;  %v2029_v43 = vrot.slane %v5354_v14, 4  ;;  %v6002_v27 = vsel %vm1955_vm3, %v2026_v25, %v2027_v48 }
 0x1a3   : > { %7569 = vst [vmem:[#allocation56_spill] sm:$0xff] %v5985_v42  ;;  %2400 = vmatmul.mubr.f32.gmra.mrb[48].mxu1 %v5985_v42  ;;  %7572 = vst [vmem:[#allocation58_spill] sm:$0xff] %v6002_v27 }
 0x1a4   : > { %3482 = vmatprep.mubr.msk.f32.mxu1 %vm659_vm2, %v5991_v24  ;;  %v2112_v24 = vrot.slane %v5413_v16, 4  ;;  %v6014_v14 = vsel %vm1955_vm3, %v2027_v48, %v2029_v43 }
 0x1a5   : > { %v1920_v33 = vpop.permute.xlu0 %1919  ;;  %7574 = vst [vmem:[#allocation86_spill] sm:$0xff] %v6014_v14 }
 0x1a6   : > { %v5997_v46 = vsel %vm659_vm2, %v7567_v40, %v1920_v33  ;;  %v2113_v40 = vrot.slane %v5410_v60, 4 }
 0x1a7   : > { %7571 = vst [vmem:[#allocation59_spill] sm:$0xff] %v5997_v46  ;;  %2405 = vmatmul.mubr.f32.gmra.mrb[50].mxu1 %v5997_v46  ;;  %v7579_v46 = vld [vmem:[#allocation66_spill] sm:$0xff] }
 0x1a8   : > { %3483 = vmatprep.mubr.msk.f32.mxu1 %vm659_vm2, %v6002_v27  ;;  %v7575_v27 = vld [vmem:[#allocation63_spill] sm:$0xff] }
 0x1a9   : > { %v1922_v8 = vpop.permute.xlu0 %1921 }
 0x1aa   : > { %v6008_v13 = vsel %vm659_vm2, %v5360_v19, %v1922_v8  ;;  %v2115_v19 = vrot.slane %v7575_v27, 4  ;;  %v6025_v8 = vsel %vm1955_vm3, %v2112_v24, %v2113_v40 }
 0x1ab   : > { %7573 = vst [vmem:[#allocation85_spill] sm:$0xff] %v6008_v13  ;;  %2410 = vmatmul.mubr.f32.gmra.mrb[52].mxu1 %v6008_v13  ;;  %7576 = vst [vmem:[#allocation63_spill] sm:$0xff] %v6025_v8 }
 0x1ac   : > { %3484 = vmatprep.mubr.msk.f32.mxu1 %vm659_vm2, %v6014_v14  ;;  %v7578_v14 = vld [vmem:[#allocation67_spill] sm:$0xff]  ;;  %v6037_v27 = vsel %vm1955_vm3, %v2113_v40, %v2115_v19  ;;  %v1956_v19 = vrot.slane %v5477_v35, 4 }
 0x1ad   : > { %v1924_v25 = vpop.permute.xlu0 %1923  ;;  %v2117_v13 = vrot.slane %v7578_v14, 4  ;;  %7580 = vst [vmem:[#allocation67_spill] sm:$0xff] %v6037_v27 }
 0x1ae   : > { %v6020_v33 = vsel %vm659_vm2, %v5357_v53, %v1924_v25  ;;  %v2118_v53 = vrot.slane %v7579_v46, 4 }
 0x1af   : > { %2415 = vmatmul.mubr.f32.gmra.mrb[54].mxu1 %v6020_v33 }
 0x1b0   : > { %3485 = vmatprep.mubr.msk.f32.mxu1 %vm659_vm2, %v6025_v8  ;;  %v7582_v8 = vld [vmem:[#allocation65_spill] sm:$0xff] }
 0x1b1   : > { %v2101_v48 = vpop.permute.xlu0 %2100 }
 0x1b2   : > { %v6031_v43 = vsel %vm659_vm2, %v5413_v16, %v2101_v48  ;;  %v2120_v16 = vrot.slane %v7582_v8, 4  ;;  %v6048_v48 = vsel %vm1955_vm3, %v2117_v13, %v2118_v53 }
 0x1b3   : > { %7577 = vst [vmem:[#allocation87_spill] sm:$0xff] %v6031_v43  ;;  %2420 = vmatmul.mubr.f32.gmra.mrb[56].mxu1 %v6031_v43  ;;  %7583 = vst [vmem:[#allocation65_spill] sm:$0xff] %v6048_v48 }
 0x1b4   : > { %3486 = vmatprep.mubr.msk.f32.mxu1 %vm659_vm2, %v6037_v27  ;;  %v1957_v27 = vrot.slane %v5441_v41, 4 }
 0x1b5   : > { %v2103_v24 = vpop.permute.xlu0 %2102 }
 0x1b6   : > { %v6043_v25 = vsel %vm659_vm2, %v5410_v60, %v2103_v24  ;;  %v6060_v60 = vsel %vm1955_vm3, %v2118_v53, %v2120_v16  ;;  %v6065_v8 = vsel %vm1955_vm3, %v1956_v19, %v1957_v27  ;;  %v3521_v24 = vld [vmem:[%s7071_s1 + $0x3c0] sm:$0xff] }
 0x1b7   : > { %7581 = vst [vmem:[#allocation66_spill] sm:$0xff] %v6043_v25  ;;  %2425 = vmatmul.mubr.f32.gmra.mrb[58].mxu1 %v6043_v25  ;;  %7585 = vst [vmem:[#allocation89_spill] sm:$0xff] %v6060_v60 }
 0x1b8   : > { %3487 = vmatprep.mubr.msk.f32.mxu1 %vm659_vm2, %v6048_v48  ;;  %7586 = vst [vmem:[#allocation90_spill] sm:$0xff] %v6065_v8 }
 0x1b9   : > { %v2105_v40 = vpop.permute.xlu0 %2104 }
 0x1ba   : > { %v6056_v43 = vsel %vm659_vm2, %v7578_v14, %v2105_v40  ;;  %v3522_v14 = vld [vmem:[%s7071_s1 + $0x3c8] sm:$0xff]  ;;  %v1959_v40 = vrot.slane %v5516_v23, 4  ;;  %v3524_v23 = vld [vmem:[%s7071_s1 + $0x3d8] sm:$0xff] }
 0x1bb   : > { %7584 = vst [vmem:[#allocation88_spill] sm:$0xff] %v6056_v43  ;;  %2430 = vmatmul.mubr.f32.gmra.mrb[60].mxu1 %v6056_v43  ;;  %v3766_v16 = vpack.c.bf16 %v3522_v14, %v3521_v24  ;;  %v3523_v43 = vld [vmem:[%s7071_s1 + $0x3d0] sm:$0xff] }
 0x1bc   : > { %3488 = vmatprep.mubr.msk.f32.mxu1 %vm659_vm2, %v6060_v60  ;;  %v6082_v60 = vsel %vm1955_vm3, %v1957_v27, %v1959_v40  ;;  %v3769_v27 = vpack.c.bf16 %v3524_v23, %v3523_v43  ;;  %v639_v43 = vrot.slane %v5583_v9, 2  ;;  %v529_v23 = vpop.permute.xlu1 %528 }
 0x1bd   : > { %v2107_v13 = vpop.permute.xlu0 %2106  ;;  %7588 = vst [vmem:[#allocation92_spill] sm:$0xff] %v6082_v60 }
 0x1be   : > { %v6076_v53 = vsel %vm659_vm2, %v7579_v46, %v2107_v13  ;;  %v7590_v13 = vld [vmem:[#allocation42_spill] sm:$0xff] }
 0x1bf   : > { %7587 = vst [vmem:[#allocation91_spill] sm:$0xff] %v6076_v53  ;;  %2435 = vmatmul.mubr.f32.gmra.mrb[62].mxu1 %v6076_v53  ;;  %v637_v24 = vrot.slane %v7590_v13, 2 }
 0x1c0   : > { %3489 = vmatprep.mubr.msk.f32.mxu1 %vm659_vm2, %v6065_v8 }
 0x1c1   : > { %v1866_v19 = vpop.permute.xlu0 %1865 }
 0x1c2   : > { %v6092_v46 = vsel %vm659_vm2, %v5477_v35, %v1866_v19  ;;  %v3525_v35 = vld [vmem:[%s7071_s1 + $0x3e0] sm:$0xff] }
 0x1c3   : > { %7589 = vst [vmem:[#allocation93_spill] sm:$0xff] %v6092_v46  ;;  %2509 = vmatmul.mubr.f32.vlgmr.msra.gmra.mrb[0].mxu1 %v6092_v46 }
 0x1c4   : > { %3767 = vmatpush1.bf16.msra.mxu1 %v3766_v16  ;;  %3490 = vmatprep.mubr.msk.f32.mxu1 %vm659_vm2, %v6082_v60  ;;  %v3526_v16 = vld [vmem:[%s7071_s1 + $0x3e8] sm:$0xff] }
 0x1c5   : > { %v1868_v14 = vpop.permute.xlu0 %1867  ;;  %3768 = vmatprep.subr.bf16.mxu1 %v7391_v5  ;;  %v3772_v53 = vpack.c.bf16 %v3526_v16, %v3525_v35 }
 0x1c6   : > { %v6101_v40 = vsel %vm659_vm2, %v5441_v41, %v1868_v14  ;;  %v7592_v41 = vrot.slane %v5071_v39, 2  ;;  %v640_v14 = vrot.slane %v5077_v22, 2 }
 0x1c7   : > { %7591 = vst [vmem:[#allocation42_spill] sm:$0xff] %v6101_v40  ;;  %2514 = vmatmul.mubr.f32.gmra.mrb[2].mxu1 %v6101_v40 }
 0x1c8   : > { %3491 = vmatprep.mubr.msk.f32.mxu1 %vm659_vm2, %v6065_v8  ;;  %3770 = vmatpush1.bf16.msra.mxu1 %v3769_v27  ;;  %v6116_v13 = vsel %vm578_vm4, %v7592_v41, %v637_v24  ;;  %v3527_v27 = vld [vmem:[%s7071_s1 + $0x3f0] sm:$0xff]  ;;  %v3528_v8 = vld [vmem:[%s7071_s1 + $0x3f8] sm:$0xff]  ;;  %v7593_v24 = vld [vmem:[#allocation46_spill] sm:$0xff] }
 0x1c9   : > { %v527_v19 = vpop.permute.xlu0 %526  ;;  %3771 = vmatprep.subr.bf16.mxu1 %v7391_v5  ;;  %v642_v35 = vrot.slane %v7593_v24, 2  ;;  %v3775_v41 = vpack.c.bf16 %v3528_v8, %v3527_v27  ;;  %v645_v27 = vrot.slane %v5157_v59, 2 }
 0x1ca   : > { %v6122_v48 = vsel %vm659_vm2, %v5532_v44, %v527_v19  ;;  %v6138_v44 = vsel %vm659_vm2, %v5071_v39, %v529_v23  ;;  %v6142_v19 = vsel %vm578_vm4, %v639_v43, %v640_v14  ;;  %v7594_v39 = vld [vmem:[#allocation8_spill] sm:$0xff]  ;;  %v533_v43 = vpop.permute.xlu1 %532 }
 0x1cb   : > { %990 = vmatmul.mubr.f32.gmra.mrb[40].mxu0 %v6122_v48  ;;  %2519 = vmatmul.mubr.f32.gmra.mrb[4].mxu1 %v6092_v46  ;;  %v3529_v46 = vld [vmem:[%s7071_s1 + $0x400] sm:$0xff]  ;;  %v6163_v23 = vsel %vm578_vm4, %v640_v14, %v642_v35 }
 0x1cc   : > { %3310 = vmatprep.mubr.msk.f32.mxu0 %vm659_vm2, %v6116_v13  ;;  %3492 = vmatprep.mubr.msk.f32.mxu1 %vm659_vm2, %v6082_v60  ;;  %v3530_v60 = vld [vmem:[%s7071_s1 + $0x408] sm:$0xff]  ;;  %7596 = vst [vmem:[#allocation8_spill] sm:$0xff] %v6163_v23  ;;  %v7598_v14 = vld [vmem:[#allocation9_spill] sm:$0xff] }
 0x1cd   : > { %v531_v16 = vpop.permute.xlu0 %530  ;;  %3773 = vmatpush1.bf16.msra.mxu1 %v3772_v53  ;;  %v644_v53 = vrot.slane %v5604_v3, 2  ;;  %v3778_v24 = vpack.c.bf16 %v3530_v60, %v3529_v46  ;;  %v6181_v60 = vsel %vm659_vm2, %v5077_v22, %v533_v43  ;;  %v7600_v46 = vld [vmem:[#allocation49_spill] sm:$0xff]  ;;  %v7602_v22 = vld [vmem:[#allocation43_spill] sm:$0xff]  ;;  %v7603_v43 = vld [vmem:[#allocation44_spill] sm:$0xff] }
 0x1ce   : > { %3774 = vmatprep.subr.bf16.mxu1 %v7391_v5  ;;  %v6159_v8 = vsel %vm659_vm2, %v5583_v9, %v531_v16  ;;  %v3532_v9 = vld [vmem:[%s7071_s1 + $0x418] sm:$0xff]  ;;  %v7597_v16 = vld [vmem:[#allocation38_spill] sm:$0xff]  ;;  %v647_v35 = vrot.slane %v7600_v46, 2  ;;  %v650_v46 = vrot.slane %v5163_v63, 2 }
 0x1cf   : > { %995 = vmatmul.mubr.f32.gmra.mrb[42].mxu0 %v6138_v44  ;;  %2524 = vmatmul.mubr.f32.gmra.mrb[6].mxu1 %v6101_v40  ;;  %7595 = vst [vmem:[#allocation46_spill] sm:$0xff] %v6159_v8  ;;  %7599 = vst [vmem:[#allocation38_spill] sm:$0xff] %v6181_v60  ;;  %v6185_v40 = vsel %vm578_vm4, %v644_v53, %v645_v27 }
 0x1d0   : > { %3493 = vmatprep.mubr.msk.f32.mxu1 %vm659_vm2, %v7594_v39  ;;  %3311 = vmatprep.mubr.msk.f32.mxu0 %vm659_vm2, %v6142_v19  ;;  %v3531_v39 = vld [vmem:[%s7071_s1 + $0x410] sm:$0xff]  ;;  %7601 = vst [vmem:[#allocation9_spill] sm:$0xff] %v6185_v40 }
 0x1d1   : > { %3776 = vmatpush1.bf16.msra.mxu1 %v3775_v41  ;;  %v535_v41 = vpop.permute.xlu0 %534  ;;  %v3781_v25 = vpack.c.bf16 %v3532_v9, %v3531_v39  ;;  %v537_v39 = vpop.permute.xlu1 %536  ;;  %v6206_v9 = vsel %vm578_vm4, %v645_v27, %v647_v35  ;;  %v7607_v27 = vld [vmem:[#allocation48_spill] sm:$0xff]  ;;  %v7609_v35 = vld [vmem:[#allocation51_spill] sm:$0xff] }
 0x1d2   : > { %3777 = vmatprep.subr.bf16.mxu1 %v7391_v5  ;;  %v6202_v53 = vsel %vm659_vm2, %v5604_v3, %v535_v41  ;;  %7605 = vst [vmem:[#allocation43_spill] sm:$0xff] %v6206_v9  ;;  %v3536_v3 = vld [vmem:[%s7071_s1 + $0x438] sm:$0xff]  ;;  %v7606_v41 = vld [vmem:[#allocation47_spill] sm:$0xff] }
 0x1d3   : > { %1000 = vmatmul.mubr.f32.gmra.mrb[44].mxu0 %v6159_v8  ;;  %2529 = vmatmul.mubr.f32.gmra.mrb[8].mxu1 %v7597_v16  ;;  %v3533_v16 = vld [vmem:[%s7071_s1 + $0x420] sm:$0xff]  ;;  %7604 = vst [vmem:[#allocation49_spill] sm:$0xff] %v6202_v53 }
 0x1d4   : > { %3494 = vmatprep.mubr.msk.f32.mxu1 %vm659_vm2, %v7598_v14  ;;  %3312 = vmatprep.mubr.msk.f32.mxu0 %vm659_vm2, %v6163_v23  ;;  %v3534_v14 = vld [vmem:[%s7071_s1 + $0x428] sm:$0xff]  ;;  %v7630_v8 = vld [vmem:[#allocation13_spill] sm:$0xff] }
 0x1d5   : > { %3779 = vmatpush1.bf16.msra.mxu1 %v3778_v24  ;;  %v649_v24 = vrot.slane %v5638_v29, 2  ;;  %v7629_v23 = vld [vmem:[#allocation14_spill] sm:$0xff] }
 0x1d6   : > { %3780 = vmatprep.subr.bf16.mxu1 %v7391_v5 }
 0x1d7   : > { %1005 = vmatmul.mubr.f32.gmra.mrb[46].mxu0 %v6181_v60  ;;  %2534 = vmatmul.mubr.f32.gmra.mrb[10].mxu1 %v7602_v22  ;;  %v3784_v22 = vpack.c.bf16 %v3534_v14, %v3533_v16  ;;  %v652_v16 = vrot.slane %v7609_v35, 2  ;;  %v539_v14 = vpop.permute.xlu0 %538  ;;  %v655_v35 = vrot.slane %v5250_v2, 2 }
 0x1d8   : > { %3495 = vmatprep.mubr.msk.f32.mxu1 %vm659_vm2, %v7603_v43  ;;  %3313 = vmatprep.mubr.msk.f32.mxu0 %vm659_vm2, %v6185_v40  ;;  %v3535_v43 = vld [vmem:[%s7071_s1 + $0x430] sm:$0xff]  ;;  %v6228_v40 = vsel %vm578_vm4, %v649_v24, %v650_v46  ;;  %v6245_v24 = vsel %vm659_vm2, %v5638_v29, %v539_v14  ;;  %v3540_v29 = vld [vmem:[%s7071_s1 + $0x458] sm:$0xff] }
 0x1d9   : > { %3782 = vmatpush1.bf16.msra.mxu1 %v3781_v25  ;;  %v6224_v25 = vsel %vm659_vm2, %v5157_v59, %v537_v39  ;;  %7610 = vst [vmem:[#allocation47_spill] sm:$0xff] %v6228_v40  ;;  %v7611_v59 = vld [vmem:[#allocation50_spill] sm:$0xff]  ;;  %v7612_v39 = vld [vmem:[#allocation52_spill] sm:$0xff]  ;;  %7613 = vst [vmem:[#allocation48_spill] sm:$0xff] %v6245_v24 }
 0x1da   : > { %3783 = vmatprep.subr.bf16.mxu1 %v7391_v5  ;;  %7608 = vst [vmem:[#allocation44_spill] sm:$0xff] %v6224_v25  ;;  %v7615_v14 = vld [vmem:[#allocation12_spill] sm:$0xff] }
 0x1db   : > { %1010 = vmatmul.mubr.f32.gmra.mrb[48].mxu0 %v6202_v53  ;;  %2539 = vmatmul.mubr.f32.gmra.mrb[12].mxu1 %v7606_v41  ;;  %v3787_v53 = vpack.c.bf16 %v3536_v3, %v3535_v43  ;;  %v3537_v41 = vld [vmem:[%s7071_s1 + $0x440] sm:$0xff]  ;;  %v541_v43 = vpop.permute.xlu1 %540  ;;  %v6249_v3 = vsel %vm578_vm4, %v650_v46, %v652_v16  ;;  %v7616_v46 = vld [vmem:[#allocation23_spill] sm:$0xff] }
 0x1dc   : > { %3496 = vmatprep.mubr.msk.f32.mxu1 %vm659_vm2, %v7607_v27  ;;  %3314 = vmatprep.mubr.msk.f32.mxu0 %vm659_vm2, %v6206_v9  ;;  %v3538_v27 = vld [vmem:[%s7071_s1 + $0x448] sm:$0xff]  ;;  %7614 = vst [vmem:[#allocation51_spill] sm:$0xff] %v6249_v3  ;;  %v7618_v16 = vld [vmem:[#allocation11_spill] sm:$0xff]  ;;  %v3541_v9 = vld [vmem:[%s7071_s1 + $0x460] sm:$0xff] }
 0x1dd   : > { %3785 = vmatpush1.bf16.msra.mxu1 %v3784_v22  ;;  %v654_v22 = vrot.slane %v5656_v1, 2 }
 0x1de   : > { %3786 = vmatprep.subr.bf16.mxu1 %v7391_v5 }
 0x1df   : > { %1015 = vmatmul.mubr.f32.gmra.mrb[50].mxu0 %v6224_v25  ;;  %2544 = vmatmul.mubr.f32.gmra.mrb[14].mxu1 %v7611_v59  ;;  %v3790_v59 = vpack.c.bf16 %v3538_v27, %v3537_v41  ;;  %v657_v41 = vrot.slane %v7618_v16, 2  ;;  %v543_v27 = vpop.permute.xlu0 %542  ;;  %v6271_v25 = vsel %vm578_vm4, %v654_v22, %v655_v35  ;;  %v729_v22 = vrot.slane %v5684_v58, 2 }
 0x1e0   : > { %3497 = vmatprep.mubr.msk.f32.mxu1 %vm659_vm2, %v7612_v39  ;;  %3315 = vmatprep.mubr.msk.f32.mxu0 %vm659_vm2, %v6228_v40  ;;  %v3539_v40 = vld [vmem:[%s7071_s1 + $0x450] sm:$0xff]  ;;  %7619 = vst [vmem:[#allocation52_spill] sm:$0xff] %v6271_v25  ;;  %v730_v16 = vrot.slane %v5270_v50, 2 }
 0x1e1   : > { %3788 = vmatpush1.bf16.msra.mxu1 %v3787_v53  ;;  %v6267_v53 = vsel %vm659_vm2, %v5163_v63, %v541_v43  ;;  %v7620_v63 = vld [vmem:[#allocation24_spill] sm:$0xff]  ;;  %v7621_v43 = vld [vmem:[#allocation27_spill] sm:$0xff] }
 0x1e2   : > { %3789 = vmatprep.subr.bf16.mxu1 %v7391_v5  ;;  %7617 = vst [vmem:[#allocation50_spill] sm:$0xff] %v6267_v53  ;;  %v6314_v60 = vsel %vm578_vm4, %v729_v22, %v730_v16 }
 0x1e3   : > { %1020 = vmatmul.mubr.f32.gmra.mrb[52].mxu0 %v6245_v24  ;;  %2549 = vmatmul.mubr.f32.gmra.mrb[16].mxu1 %v7615_v14  ;;  %v3793_v24 = vpack.c.bf16 %v3540_v29, %v3539_v40  ;;  %v6288_v40 = vsel %vm659_vm2, %v5656_v1, %v543_v27  ;;  %v6292_v29 = vsel %vm578_vm4, %v655_v35, %v657_v41  ;;  %v3544_v1 = vld [vmem:[%s7071_s1 + $0x478] sm:$0xff]  ;;  %v7624_v27 = vld [vmem:[#allocation15_spill] sm:$0xff]  ;;  %v724_v41 = vpop.permute.xlu0 %723 }
 0x1e4   : > { %3498 = vmatprep.mubr.msk.f32.mxu1 %vm659_vm2, %v7616_v46  ;;  %3316 = vmatprep.mubr.msk.f32.mxu0 %vm659_vm2, %v6249_v3  ;;  %v3542_v3 = vld [vmem:[%s7071_s1 + $0x468] sm:$0xff]  ;;  %7622 = vst [vmem:[#allocation12_spill] sm:$0xff] %v6288_v40  ;;  %7623 = vst [vmem:[#allocation23_spill] sm:$0xff] %v6292_v29  ;;  %v7625_v35 = vld [vmem:[#allocation28_spill] sm:$0xff] }
 0x1e5   : > { %3791 = vmatpush1.bf16.msra.mxu1 %v3790_v59  ;;  %v545_v59 = vpop.permute.xlu1 %544  ;;  %7628 = vst [vmem:[#allocation24_spill] sm:$0xff] %v6314_v60 }
 0x1e6   : > { %3792 = vmatprep.subr.bf16.mxu1 %v7391_v5 }
 0x1e7   : > { %1025 = vmatmul.mubr.f32.gmra.mrb[54].mxu0 %v6267_v53  ;;  %2554 = vmatmul.mubr.f32.gmra.mrb[18].mxu1 %v7620_v63  ;;  %v3796_v53 = vpack.c.bf16 %v3542_v3, %v3541_v9  ;;  %v6310_v9 = vsel %vm659_vm2, %v5250_v2, %v545_v59  ;;  %v6325_v2 = vsel %vm659_vm2, %v5684_v58, %v724_v41  ;;  %v580_v59 = vrot.slane %v5307_v52, 2  ;;  %v7637_v41 = vld [vmem:[#allocation17_spill] sm:$0xff] }
 0x1e8   : > { %3499 = vmatprep.mubr.msk.f32.mxu1 %vm659_vm2, %v7621_v43  ;;  %3317 = vmatprep.mubr.msk.f32.mxu0 %vm659_vm2, %v6271_v25  ;;  %v3543_v25 = vld [vmem:[%s7071_s1 + $0x470] sm:$0xff]  ;;  %7626 = vst [vmem:[#allocation11_spill] sm:$0xff] %v6310_v9  ;;  %7631 = vst [vmem:[#allocation27_spill] sm:$0xff] %v6325_v2 }
 0x1e9   : > { %3794 = vmatpush1.bf16.msra.mxu1 %v3793_v24  ;;  %v7627_v24 = vld [vmem:[#allocation10_spill] sm:$0xff]  ;;  %v726_v22 = vpop.permute.xlu1 %725 }
 0x1ea   : > { %3795 = vmatprep.subr.bf16.mxu1 %v7391_v5  ;;  %v732_v3 = vrot.slane %v7627_v24, 2  ;;  %v7634_v24 = vld [vmem:[#allocation60_spill] sm:$0xff]  ;;  %v6340_v58 = vsel %vm659_vm2, %v5270_v50, %v726_v22  ;;  %v7639_v50 = vld [vmem:[#allocation61_spill] sm:$0xff] }
 0x1eb   : > { %1030 = vmatmul.mubr.f32.gmra.mrb[56].mxu0 %v6288_v40  ;;  %2559 = vmatmul.mubr.f32.gmra.mrb[20].mxu1 %v7624_v27  ;;  %v3799_v40 = vpack.c.bf16 %v3544_v1, %v3543_v25  ;;  %v579_v25 = vrot.slane %v5721_v34, 2  ;;  %v7633_v1 = vld [vmem:[#allocation18_spill] sm:$0xff]  ;;  %7635 = vst [vmem:[#allocation28_spill] sm:$0xff] %v6340_v58 }
 0x1ec   : > { %3500 = vmatprep.mubr.msk.f32.mxu1 %vm659_vm2, %v7625_v35  ;;  %3318 = vmatprep.mubr.msk.f32.mxu0 %vm659_vm2, %v6292_v29  ;;  %v3356_v29 = vld [vmem:[%s7071_s1 + $0x198] sm:$0xff] }
 0x1ed   : > { %3797 = vmatpush1.bf16.msra.mxu1 %v3796_v53  ;;  %v6328_v53 = vsel %vm578_vm4, %v730_v16, %v732_v3  ;;  %v483_v16 = vpop.permute.xlu0 %482  ;;  %v6343_v3 = vsel %vm578_vm4, %v579_v25, %v580_v59  ;;  %v485_v25 = vpop.permute.xlu1 %484 }
 0x1ee   : > { %3798 = vmatprep.subr.bf16.mxu1 %v7391_v5  ;;  %7632 = vst [vmem:[#allocation15_spill] sm:$0xff] %v6328_v53  ;;  %7636 = vst [vmem:[#allocation10_spill] sm:$0xff] %v6343_v3  ;;  %v6358_v22 = vsel %vm659_vm2, %v5721_v34, %v483_v16  ;;  %v7642_v34 = vld [vmem:[#allocation22_spill] sm:$0xff]  ;;  %v7643_v16 = vld [vmem:[#allocation21_spill] sm:$0xff] }
 0x1ef   : > { %1035 = vmatmul.mubr.f32.gmra.mrb[58].mxu0 %v6310_v9  ;;  %2564 = vmatmul.mubr.f32.gmra.mrb[22].mxu1 %v7629_v23  ;;  %7640 = vst [vmem:[#allocation14_spill] sm:$0xff] %v6358_v22 }
 0x1f0   : > { %3501 = vmatprep.mubr.msk.f32.mxu1 %vm659_vm2, %v7630_v8  ;;  %3319 = vmatprep.mubr.msk.f32.mxu0 %vm659_vm2, %v6314_v60  ;;  %v3354_v60 = vld [vmem:[%s7071_s1 + $0x188] sm:$0xff] }
 0x1f1   : > { %3800 = vmatpush1.bf16.msra.mxu1 %v3799_v40  ;;  %v582_v40 = vrot.slane %v7637_v41, 2 }
 0x1f3   : > { %1040 = vmatmul.mubr.f32.gmra.mrb[60].mxu0 %v6325_v2  ;;  %2569 = vmatmul.mubr.f32.gmra.mrb[24].mxu1 %v7633_v1  ;;  %v3353_v2 = vld [vmem:[%s7071_s1 + $0x180] sm:$0xff]  ;;  %v6363_v41 = vsel %vm578_vm4, %v580_v59, %v582_v40  ;;  %v3358_v40 = vld [vmem:[%s7071_s1 + $0x1a8] sm:$0xff] }
 0x1f4   : > { %3502 = vmatprep.mubr.msk.f32.mxu1 %vm659_vm2, %v7634_v24  ;;  %3320 = vmatprep.mubr.msk.f32.mxu0 %vm659_vm2, %v6328_v53  ;;  %v7638_v53 = vld [vmem:[#allocation16_spill] sm:$0xff]  ;;  %7641 = vst [vmem:[#allocation13_spill] sm:$0xff] %v6363_v41  ;;  %v3658_v9 = vpack.c.bf16 %v3354_v60, %v3353_v2  ;;  %v6379_v60 = vsel %vm659_vm2, %v5307_v52, %v485_v25  ;;  %v3357_v59 = vld [vmem:[%s7071_s1 + $0x1a0] sm:$0xff]  ;;  %v7647_v52 = vld [vmem:[#allocation31_spill] sm:$0xff] }
 0x1f5   : > { %7644 = vst [vmem:[#allocation18_spill] sm:$0xff] %v6379_v60  ;;  %v7648_v25 = vld [vmem:[#allocation69_spill] sm:$0xff] }
 0x1f7   : > { %1045 = vmatmul.mubr.f32.gmra.mrb[62].mxu0 %v6340_v58  ;;  %2574 = vmatmul.mubr.f32.gmra.mrb[26].mxu1 %v7638_v53  ;;  %v3355_v58 = vld [vmem:[%s7071_s1 + $0x190] sm:$0xff] }
 0x1f8   : > { %3503 = vmatprep.mubr.msk.f32.mxu1 %vm659_vm2, %v7639_v50  ;;  %3321 = vmatprep.mubr.msk.f32.mxu0 %vm659_vm2, %v6343_v3  ;;  %v3661_v2 = vpack.c.bf16 %v3356_v29, %v3355_v58  ;;  %v3664_v29 = vpack.c.bf16 %v3358_v40, %v3357_v59  ;;  %v3360_v58 = vld [vmem:[%s7071_s1 + $0x1b8] sm:$0xff]  ;;  %v3361_v59 = vld [vmem:[%s7071_s1 + $0x1c0] sm:$0xff]  ;;  %v3362_v40 = vld [vmem:[%s7071_s1 + $0x1c8] sm:$0xff] }
 0x1f9   : > { %v7650_v3 = vld [vmem:[#allocation64_spill] sm:$0xff] }
 0x1fb   : > { %1119 = vmatmul.mubr.f32.vlgmr.msra.gmra.mrb[0].mxu0 %v6358_v22  ;;  %2579 = vmatmul.mubr.f32.gmra.mrb[28].mxu1 %v7642_v34  ;;  %v7645_v22 = vld [vmem:[#allocation62_spill] sm:$0xff] }
 0x1fc   : > { %3504 = vmatprep.mubr.msk.f32.mxu1 %vm659_vm2, %v7643_v16  ;;  %3322 = vmatprep.mubr.msk.f32.mxu0 %vm659_vm2, %v6363_v41  ;;  %v7646_v41 = vld [vmem:[#allocation20_spill] sm:$0xff] }
 0x1fd   : > { %3659 = vmatpush1.bf16.msra.mxu0 %v3658_v9  ;;  %v3359_v9 = vld [vmem:[%s7071_s1 + $0x1b0] sm:$0xff] }
 0x1fe   : > { %3660 = vmatprep.subr.bf16.mxu0 %v7391_v5 }
 0x1ff   : > { %1124 = vmatmul.mubr.f32.gmra.mrb[2].mxu0 %v6379_v60  ;;  %2584 = vmatmul.mubr.f32.gmra.mrb[30].mxu1 %v7645_v22  ;;  %v7649_v60 = vld [vmem:[#allocation26_spill] sm:$0xff] }
 0x200   : > { %3505 = vmatprep.mubr.msk.f32.mxu1 %vm659_vm2, %v7646_v41  ;;  %3323 = vmatprep.mubr.msk.f32.mxu0 %vm659_vm2, %v7647_v52  ;;  %v7651_v52 = vld [vmem:[#allocation32_spill] sm:$0xff] }
 0x201   : > { %3662 = vmatpush1.bf16.msra.mxu0 %v3661_v2  ;;  %v3667_v2 = vpack.c.bf16 %v3360_v58, %v3359_v9  ;;  %v3363_v9 = vld [vmem:[%s7071_s1 + $0x1d0] sm:$0xff]  ;;  %v7654_v58 = vld [vmem:[#allocation68_spill] sm:$0xff] }
 0x202   : > { %3663 = vmatprep.subr.bf16.mxu0 %v7391_v5 }
 0x203   : > { %1129 = vmatmul.mubr.f32.gmra.mrb[4].mxu0 %v7648_v25  ;;  %2589 = vmatmul.mubr.f32.gmra.mrb[32].mxu1 %v7649_v60  ;;  %v7652_v25 = vld [vmem:[#allocation25_spill] sm:$0xff] }
 0x204   : > { %3506 = vmatprep.mubr.msk.f32.mxu1 %vm659_vm2, %v7650_v3  ;;  %3324 = vmatprep.mubr.msk.f32.mxu0 %vm659_vm2, %v7651_v52  ;;  %v7653_v3 = vld [vmem:[#allocation29_spill] sm:$0xff]  ;;  %v7655_v52 = vld [vmem:[#allocation70_spill] sm:$0xff] }
 0x205   : > { %3665 = vmatpush1.bf16.msra.mxu0 %v3664_v29  ;;  %v3670_v29 = vpack.c.bf16 %v3362_v40, %v3361_v59  ;;  %v3365_v59 = vld [vmem:[%s7071_s1 + $0x1e0] sm:$0xff]  ;;  %v3366_v40 = vld [vmem:[%s7071_s1 + $0x1e8] sm:$0xff] }
 0x206   : > { %3666 = vmatprep.subr.bf16.mxu0 %v7391_v5 }
 0x207   : > { %1134 = vmatmul.mubr.f32.gmra.mrb[6].mxu0 %v5507_v62  ;;  %2594 = vmatmul.mubr.f32.gmra.mrb[34].mxu1 %v7652_v25  ;;  %v3364_v62 = vld [vmem:[%s7071_s1 + $0x1d8] sm:$0xff] }
 0x208   : > { %3507 = vmatprep.mubr.msk.f32.mxu1 %vm659_vm2, %v7653_v3  ;;  %3325 = vmatprep.mubr.msk.f32.mxu0 %vm659_vm2, %v5519_v38 }
 0x209   : > { %3668 = vmatpush1.bf16.msra.mxu0 %v3667_v2  ;;  %v3673_v2 = vpack.c.bf16 %v3364_v62, %v3363_v9  ;;  %v3367_v9 = vld [vmem:[%s7071_s1 + $0x1f0] sm:$0xff]  ;;  %v3368_v62 = vld [vmem:[%s7071_s1 + $0x1f8] sm:$0xff] }
 0x20a   : > { %3669 = vmatprep.subr.bf16.mxu0 %v7391_v5 }
 0x20b   : > { %1139 = vmatmul.mubr.f32.gmra.mrb[8].mxu0 %v5549_v47  ;;  %2599 = vmatmul.mubr.f32.gmra.mrb[36].mxu1 %v7654_v58  ;;  %v7656_v47 = vld [vmem:[#allocation30_spill] sm:$0xff] }
 0x20c   : > { %3508 = vmatprep.mubr.msk.f32.mxu1 %vm659_vm2, %v7655_v52  ;;  %3326 = vmatprep.mubr.msk.f32.mxu0 %vm659_vm2, %v5557_v54 }
 0x20d   : > { %3671 = vmatpush1.bf16.msra.mxu0 %v3670_v29  ;;  %v3676_v29 = vpack.c.bf16 %v3366_v40, %v3365_v59  ;;  %v3369_v59 = vld [vmem:[%s7071_s1 + $0x200] sm:$0xff]  ;;  %v3370_v40 = vld [vmem:[%s7071_s1 + $0x208] sm:$0xff] }
 0x20e   : > { %3672 = vmatprep.subr.bf16.mxu0 %v7391_v5 }
 0x20f   : > { %1144 = vmatmul.mubr.f32.gmra.mrb[10].mxu0 %v5578_v45  ;;  %2604 = vmatmul.mubr.f32.gmra.mrb[38].mxu1 %v5512_v0 }
 0x210   : > { %3509 = vmatprep.mubr.msk.f32.mxu1 %vm659_vm2, %v7656_v47  ;;  %3327 = vmatprep.mubr.msk.f32.mxu0 %vm659_vm2, %v5590_v26 }
 0x211   : > { %3674 = vmatpush1.bf16.msra.mxu0 %v3673_v2  ;;  %v3679_v2 = vpack.c.bf16 %v3368_v62, %v3367_v9  ;;  %v3371_v9 = vld [vmem:[%s7071_s1 + $0x210] sm:$0xff]  ;;  %v3372_v62 = vld [vmem:[%s7071_s1 + $0x218] sm:$0xff] }
 0x212   : > { %3675 = vmatprep.subr.bf16.mxu0 %v7391_v5 }
 0x213   : > { %1149 = vmatmul.mubr.f32.gmra.mrb[12].mxu0 %v5617_v21  ;;  %2609 = vmatmul.mubr.f32.gmra.mrb[40].mxu1 %v5554_v32 }
 0x214   : > { %3510 = vmatprep.mubr.msk.f32.mxu1 %vm659_vm2, %v5564_v7  ;;  %3328 = vmatprep.mubr.msk.f32.mxu0 %vm659_vm2, %v5620_v56 }
 0x215   : > { %3677 = vmatpush1.bf16.msra.mxu0 %v3676_v29  ;;  %v3682_v29 = vpack.c.bf16 %v3370_v40, %v3369_v59  ;;  %v3373_v59 = vld [vmem:[%s7071_s1 + $0x220] sm:$0xff]  ;;  %v3374_v40 = vld [vmem:[%s7071_s1 + $0x228] sm:$0xff] }
 0x216   : > { %3678 = vmatprep.subr.bf16.mxu0 %v7391_v5 }
 0x217   : > { %1154 = vmatmul.mubr.f32.gmra.mrb[14].mxu0 %v5645_v49  ;;  %2614 = vmatmul.mubr.f32.gmra.mrb[42].mxu1 %v5587_v30 }
 0x218   : > { %3511 = vmatprep.mubr.msk.f32.mxu1 %vm659_vm2, %v5597_v10  ;;  %3329 = vmatprep.mubr.msk.f32.mxu0 %vm659_vm2, %v5648_v51  ;;  %v7657_v51 = vld [vmem:[#allocation73_spill] sm:$0xff] }
 0x219   : > { %3680 = vmatpush1.bf16.msra.mxu0 %v3679_v2  ;;  %v3685_v2 = vpack.c.bf16 %v3372_v62, %v3371_v9  ;;  %v3375_v9 = vld [vmem:[%s7071_s1 + $0x230] sm:$0xff]  ;;  %v3376_v62 = vld [vmem:[%s7071_s1 + $0x238] sm:$0xff] }
 0x21a   : > { %3681 = vmatprep.subr.bf16.mxu0 %v7391_v5 }
 0x21b   : > { %1159 = vmatmul.mubr.f32.gmra.mrb[16].mxu0 %v5673_v20  ;;  %2619 = vmatmul.mubr.f32.gmra.mrb[44].mxu1 %v5887_v57 }
 0x21c   : > { %3512 = vmatprep.mubr.msk.f32.mxu1 %vm659_vm2, %v5895_v15  ;;  %3330 = vmatprep.mubr.msk.f32.mxu0 %vm659_vm2, %v7657_v51 }
 0x21d   : > { %3683 = vmatpush1.bf16.msra.mxu0 %v3682_v29  ;;  %v3688_v29 = vpack.c.bf16 %v3374_v40, %v3373_v59  ;;  %v7660_v59 = vld [vmem:[#allocation79_spill] sm:$0xff]  ;;  %v7661_v40 = vld [vmem:[#allocation80_spill] sm:$0xff] }
 0x21e   : > { %3684 = vmatprep.subr.bf16.mxu0 %v7391_v5 }
 0x21f   : > { %1164 = vmatmul.mubr.f32.gmra.mrb[18].mxu0 %v5701_v36  ;;  %2624 = vmatmul.mubr.f32.gmra.mrb[46].mxu1 %v5913_v55  ;;  %v7658_v36 = vld [vmem:[#allocation76_spill] sm:$0xff] }
 0x220   : > { %3513 = vmatprep.mubr.msk.f32.mxu1 %vm659_vm2, %v5919_v12  ;;  %3331 = vmatprep.mubr.msk.f32.mxu0 %vm659_vm2, %v5704_v11  ;;  %v7659_v11 = vld [vmem:[#allocation77_spill] sm:$0xff] }
 0x221   : > { %3686 = vmatpush1.bf16.msra.mxu0 %v3685_v2  ;;  %v3691_v2 = vpack.c.bf16 %v3376_v62, %v3375_v9  ;;  %v7665_v9 = vld [vmem:[#allocation33_spill] sm:$0xff]  ;;  %v7666_v62 = vld [vmem:[#allocation34_spill] sm:$0xff] }
 0x222   : > { %3687 = vmatprep.subr.bf16.mxu0 %v7391_v5 }
 0x223   : > { %1169 = vmatmul.mubr.f32.gmra.mrb[20].mxu0 %v7658_v36  ;;  %2629 = vmatmul.mubr.f32.gmra.mrb[48].mxu1 %v5936_v6 }
 0x224   : > { %3514 = vmatprep.mubr.msk.f32.mxu1 %vm659_vm2, %v5942_v4  ;;  %3332 = vmatprep.mubr.msk.f32.mxu0 %vm659_vm2, %v7659_v11  ;;  %v7662_v11 = vld [vmem:[#allocation57_spill] sm:$0xff] }
 0x225   : > { %3689 = vmatpush1.bf16.msra.mxu0 %v3688_v29  ;;  %v7663_v29 = vld [vmem:[#allocation81_spill] sm:$0xff] }
 0x226   : > { %3690 = vmatprep.subr.bf16.mxu0 %v7391_v5  ;;  %v7664_v5 = vld [vmem:[#allocation5_spill] sm:$0xff] }
 0x227   : > { %1174 = vmatmul.mubr.f32.gmra.mrb[22].mxu0 %v5752_v61  ;;  %2634 = vmatmul.mubr.f32.gmra.mrb[50].mxu1 %v5951_v18  ;;  %v7672_v61 = vld [vmem:[#allocation35_spill] sm:$0xff] }
 0x228   : > { %3515 = vmatprep.mubr.msk.f32.mxu1 %vm659_vm2, %v5956_v17  ;;  %3333 = vmatprep.mubr.msk.f32.mxu0 %vm659_vm2, %v7660_v59  ;;  %v7671_v59 = vld [vmem:[#allocation58_spill] sm:$0xff] }
 0x229   : > { %3692 = vmatpush1.bf16.msra.mxu0 %v3691_v2  ;;  %v7667_v2 = vld [vmem:[#allocation55_spill] sm:$0xff] }
 0x22b   : > { %1179 = vmatmul.mubr.f32.gmra.mrb[24].mxu0 %v7661_v40  ;;  %2639 = vmatmul.mubr.f32.gmra.mrb[52].mxu1 %v5962_v31  ;;  %v7668_v40 = vld [vmem:[#allocation82_spill] sm:$0xff] }
 0x22c   : > { %3516 = vmatprep.mubr.msk.f32.mxu1 %vm659_vm2, %v7662_v11  ;;  %3334 = vmatprep.mubr.msk.f32.mxu0 %vm659_vm2, %v7663_v29  ;;  %v7669_v29 = vld [vmem:[#allocation6_spill] sm:$0xff] }
 0x22f   : > { %1184 = vmatmul.mubr.f32.gmra.mrb[26].mxu0 %v7664_v5  ;;  %2644 = vmatmul.mubr.f32.gmra.mrb[54].mxu1 %v5974_v37  ;;  %v7670_v5 = vld [vmem:[#allocation59_spill] sm:$0xff] }
 0x230   : > { %3517 = vmatprep.mubr.msk.f32.mxu1 %vm659_vm2, %v5979_v28  ;;  %3335 = vmatprep.mubr.msk.f32.mxu0 %vm659_vm2, %v7665_v9  ;;  %v7673_v9 = vld [vmem:[#allocation36_spill] sm:$0xff] }
 0x233   : > { %1189 = vmatmul.mubr.f32.gmra.mrb[28].mxu0 %v7666_v62  ;;  %2649 = vmatmul.mubr.f32.gmra.mrb[56].mxu1 %v5985_v42  ;;  %v7674_v62 = vld [vmem:[#allocation85_spill] sm:$0xff]  ;;  %v7675_v42 = vld [vmem:[#allocation86_spill] sm:$0xff] }
 0x234   : > { %3518 = vmatprep.mubr.msk.f32.mxu1 %vm659_vm2, %v7667_v2  ;;  %3336 = vmatprep.mubr.msk.f32.mxu0 %vm659_vm2, %v7668_v40  ;;  %v7676_v2 = vld [vmem:[#allocation83_spill] sm:$0xff] }
 0x235   : > { %v7677_v40 = vld [vmem:[#allocation7_spill] sm:$0xff] }
 0x237   : > { %1194 = vmatmul.mubr.f32.gmra.mrb[30].mxu0 %v7669_v29  ;;  %2654 = vmatmul.mubr.f32.gmra.mrb[58].mxu1 %v7670_v5  ;;  %v7678_v29 = vld [vmem:[#allocation37_spill] sm:$0xff] }
 0x238   : > { %3519 = vmatprep.mubr.msk.f32.mxu1 %vm659_vm2, %v7671_v59  ;;  %3337 = vmatprep.mubr.msk.f32.mxu0 %vm659_vm2, %v7672_v61  ;;  %v7679_v61 = vld [vmem:[#allocation40_spill] sm:$0xff] }
 0x23b   : > { %1199 = vmatmul.mubr.f32.gmra.mrb[32].mxu0 %v7673_v9  ;;  %2659 = vmatmul.mubr.f32.gmra.mrb[60].mxu1 %v7674_v62  ;;  %v7680_v9 = vld [vmem:[#allocation84_spill] sm:$0xff] }
 0x23c   : > { %3520 = vmatprep.mubr.msk.f32.mxu1 %vm659_vm2, %v7675_v42  ;;  %3338 = vmatprep.mubr.msk.f32.mxu0 %vm659_vm2, %v7676_v2  ;;  %v7681_v2 = vld [vmem:[#allocation39_spill] sm:$0xff] }
 0x23f   : > { %1204 = vmatmul.mubr.f32.gmra.mrb[34].mxu0 %v7677_v40  ;;  %2664 = vmatmul.mubr.f32.gmra.mrb[62].mxu1 %v6020_v33 }
 0x240   : > { %3545 = vmatprep.mubr.msk.f32.mxu1 %vm659_vm2, %v7612_v39  ;;  %3339 = vmatprep.mubr.msk.f32.mxu0 %vm659_vm2, %v7678_v29  ;;  %v7682_v39 = vld [vmem:[#allocation45_spill] sm:$0xff] }
 0x241   : > { %v7683_v29 = vld [vmem:[#allocation41_spill] sm:$0xff] }
 0x243   : > { %1209 = vmatmul.mubr.f32.gmra.mrb[36].mxu0 %v7679_v61  ;;  %2759 = vmatmul.mubr.f32.vlgmr.msra.gmra.mrb[0].mxu1 %v7615_v14  ;;  %v7684_v14 = vld [vmem:[#allocation54_spill] sm:$0xff] }
 0x244   : > { %3546 = vmatprep.mubr.msk.f32.mxu1 %vm659_vm2, %v7616_v46  ;;  %3340 = vmatprep.mubr.msk.f32.mxu0 %vm659_vm2, %v7680_v9  ;;  %v7685_v46 = vld [vmem:[#allocation53_spill] sm:$0xff] }
 0x247   : > { %1214 = vmatmul.mubr.f32.gmra.mrb[38].mxu0 %v7681_v2  ;;  %2764 = vmatmul.mubr.f32.gmra.mrb[2].mxu1 %v7620_v63  ;;  %v7686_v63 = vld [vmem:[#allocation19_spill] sm:$0xff] }
 0x248   : > { %3547 = vmatprep.mubr.msk.f32.mxu1 %vm659_vm2, %v7621_v43  ;;  %3341 = vmatprep.mubr.msk.f32.mxu0 %vm659_vm2, %v7682_v39  ;;  %v7689_v43 = vld [vmem:[#allocation38_spill] sm:$0xff] }
 0x24b   : > { %1219 = vmatmul.mubr.f32.gmra.mrb[40].mxu0 %v7683_v29  ;;  %2769 = vmatmul.mubr.f32.gmra.mrb[4].mxu1 %v7624_v27  ;;  %v7690_v27 = vld [vmem:[#allocation9_spill] sm:$0xff] }
 0x24c   : > { %3548 = vmatprep.mubr.msk.f32.mxu1 %vm659_vm2, %v7625_v35  ;;  %3342 = vmatprep.mubr.msk.f32.mxu0 %vm659_vm2, %v7684_v14  ;;  %v7691_v35 = vld [vmem:[#allocation49_spill] sm:$0xff] }
 0x24f   : > { %1224 = vmatmul.mubr.f32.gmra.mrb[42].mxu0 %v7685_v46  ;;  %2774 = vmatmul.mubr.f32.gmra.mrb[6].mxu1 %v7629_v23  ;;  %v7688_v23 = vld [vmem:[#allocation8_spill] sm:$0xff] }
 0x250   : > { %3549 = vmatprep.mubr.msk.f32.mxu1 %vm659_vm2, %v7630_v8  ;;  %3343 = vmatprep.mubr.msk.f32.mxu0 %vm659_vm2, %v7686_v63  ;;  %v7687_v8 = vld [vmem:[#allocation46_spill] sm:$0xff] }
 0x253   : > { %1229 = vmatmul.mubr.f32.gmra.mrb[44].mxu0 %v6122_v48  ;;  %2779 = vmatmul.mubr.f32.gmra.mrb[8].mxu1 %v7633_v1  ;;  %v7693_v1 = vld [vmem:[#allocation43_spill] sm:$0xff] }
 0x254   : > { %3550 = vmatprep.mubr.msk.f32.mxu1 %vm659_vm2, %v7634_v24  ;;  %3344 = vmatprep.mubr.msk.f32.mxu0 %vm659_vm2, %v6116_v13  ;;  %v7694_v24 = vld [vmem:[#allocation44_spill] sm:$0xff] }
 0x257   : > { %1234 = vmatmul.mubr.f32.gmra.mrb[46].mxu0 %v6138_v44  ;;  %2784 = vmatmul.mubr.f32.gmra.mrb[10].mxu1 %v7638_v53  ;;  %v7692_v53 = vld [vmem:[#allocation64_spill] sm:$0xff] }
 0x258   : > { %3551 = vmatprep.mubr.msk.f32.mxu1 %vm659_vm2, %v7639_v50  ;;  %3345 = vmatprep.mubr.msk.f32.mxu0 %vm659_vm2, %v6142_v19  ;;  %v7695_v50 = vld [vmem:[#allocation47_spill] sm:$0xff] }
 0x25b   : > { %1239 = vmatmul.mubr.f32.gmra.mrb[48].mxu0 %v7687_v8  ;;  %2789 = vmatmul.mubr.f32.gmra.mrb[12].mxu1 %v7642_v34  ;;  %v7698_v34 = vld [vmem:[#allocation50_spill] sm:$0xff] }
 0x25c   : > { %3552 = vmatprep.mubr.msk.f32.mxu1 %vm659_vm2, %v7643_v16  ;;  %3346 = vmatprep.mubr.msk.f32.mxu0 %vm659_vm2, %v7688_v23  ;;  %v7700_v16 = vld [vmem:[#allocation12_spill] sm:$0xff] }
 0x25f   : > { %1244 = vmatmul.mubr.f32.gmra.mrb[50].mxu0 %v7689_v43  ;;  %2794 = vmatmul.mubr.f32.gmra.mrb[14].mxu1 %v7645_v22  ;;  %v7696_v22 = vld [vmem:[#allocation48_spill] sm:$0xff] }
 0x260   : > { %3553 = vmatprep.mubr.msk.f32.mxu1 %vm659_vm2, %v7646_v41  ;;  %3347 = vmatprep.mubr.msk.f32.mxu0 %vm659_vm2, %v7690_v27  ;;  %v7697_v41 = vld [vmem:[#allocation51_spill] sm:$0xff] }
 0x263   : > { %1249 = vmatmul.mubr.f32.gmra.mrb[52].mxu0 %v7691_v35  ;;  %2799 = vmatmul.mubr.f32.gmra.mrb[16].mxu1 %v7649_v60  ;;  %v7701_v60 = vld [vmem:[#allocation23_spill] sm:$0xff] }
 0x264   : > { %3554 = vmatprep.mubr.msk.f32.mxu1 %vm659_vm2, %v7692_v53  ;;  %3348 = vmatprep.mubr.msk.f32.mxu0 %vm659_vm2, %v7693_v1 }
 0x267   : > { %1254 = vmatmul.mubr.f32.gmra.mrb[54].mxu0 %v7694_v24  ;;  %2804 = vmatmul.mubr.f32.gmra.mrb[18].mxu1 %v7652_v25  ;;  %v7702_v25 = vld [vmem:[#allocation11_spill] sm:$0xff] }
 0x268   : > { %3555 = vmatprep.mubr.msk.f32.mxu1 %vm659_vm2, %v7653_v3  ;;  %3349 = vmatprep.mubr.msk.f32.mxu0 %vm659_vm2, %v7695_v50  ;;  %v7699_v3 = vld [vmem:[#allocation52_spill] sm:$0xff] }
 0x26b   : > { %1259 = vmatmul.mubr.f32.gmra.mrb[56].mxu0 %v7696_v22  ;;  %2809 = vmatmul.mubr.f32.gmra.mrb[20].mxu1 %v7654_v58  ;;  %v7733_v58 = vld [vmem:[#allocation92_spill] sm:$0xff] }
 0x26c   : > { %3556 = vmatprep.mubr.msk.f32.mxu1 %vm659_vm2, %v7655_v52  ;;  %3350 = vmatprep.mubr.msk.f32.mxu0 %vm659_vm2, %v7697_v41  ;;  %v7734_v52 = vld [vmem:[#allocation42_spill] sm:$0xff] }
 0x26f   : > { %1264 = vmatmul.mubr.f32.gmra.mrb[58].mxu0 %v7698_v34  ;;  %2814 = vmatmul.mubr.f32.gmra.mrb[22].mxu1 %v5512_v0  ;;  %v7703_v0 = vld [vmem:[#allocation71_spill] sm:$0xff] }
 0x270   : > { %3557 = vmatprep.mubr.msk.f32.mxu1 %vm659_vm2, %v7656_v47  ;;  %3351 = vmatprep.mubr.msk.f32.mxu0 %vm659_vm2, %v7699_v3  ;;  %v7705_v47 = vld [vmem:[#allocation74_spill] sm:$0xff] }
 0x273   : > { %1269 = vmatmul.mubr.f32.gmra.mrb[60].mxu0 %v7700_v16  ;;  %2819 = vmatmul.mubr.f32.gmra.mrb[24].mxu1 %v5554_v32  ;;  %v7706_v32 = vld [vmem:[#allocation75_spill] sm:$0xff] }
 0x274   : > { %3558 = vmatprep.mubr.msk.f32.mxu1 %vm659_vm2, %v5564_v7  ;;  %3352 = vmatprep.mubr.msk.f32.mxu0 %vm659_vm2, %v7701_v60  ;;  %v7708_v7 = vld [vmem:[#allocation55_spill] sm:$0xff] }
 0x277   : > { %1274 = vmatmul.mubr.f32.gmra.mrb[62].mxu0 %v7702_v25  ;;  %2824 = vmatmul.mubr.f32.gmra.mrb[26].mxu1 %v5587_v30  ;;  %v7710_v30 = vld [vmem:[#allocation78_spill] sm:$0xff] }
 0x278   : > { %3559 = vmatprep.mubr.msk.f32.mxu1 %vm659_vm2, %v5597_v10  ;;  %3377 = vmatprep.mubr.msk.f32.mxu0 %vm659_vm2, %v5519_v38  ;;  %v7704_v38 = vld [vmem:[#allocation72_spill] sm:$0xff] }
 0x279   : > { %v7712_v10 = vld [vmem:[#allocation80_spill] sm:$0xff] }
 0x27b   : > { %1369 = vmatmul.mubr.f32.vlgmr.msra.gmra.mrb[0].mxu0 %v7703_v0  ;;  %2829 = vmatmul.mubr.f32.gmra.mrb[28].mxu1 %v5887_v57  ;;  %v7724_v57 = vld [vmem:[#allocation35_spill] sm:$0xff] }
 0x27c   : > { %3560 = vmatprep.mubr.msk.f32.mxu1 %vm659_vm2, %v5895_v15  ;;  %3378 = vmatprep.mubr.msk.f32.mxu0 %vm659_vm2, %v5557_v54  ;;  %v7707_v54 = vld [vmem:[#allocation56_spill] sm:$0xff]  ;;  %v7723_v15 = vld [vmem:[#allocation65_spill] sm:$0xff] }
 0x27f   : > { %1374 = vmatmul.mubr.f32.gmra.mrb[2].mxu0 %v5578_v45  ;;  %2834 = vmatmul.mubr.f32.gmra.mrb[30].mxu1 %v5913_v55  ;;  %v7709_v45 = vld [vmem:[#allocation77_spill] sm:$0xff]  ;;  %v7722_v55 = vld [vmem:[#allocation66_spill] sm:$0xff] }
 0x280   : > { %3561 = vmatprep.mubr.msk.f32.mxu1 %vm659_vm2, %v5919_v12  ;;  %3379 = vmatprep.mubr.msk.f32.mxu0 %vm659_vm2, %v5590_v26  ;;  %v7711_v26 = vld [vmem:[#allocation79_spill] sm:$0xff]  ;;  %v7720_v12 = vld [vmem:[#allocation82_spill] sm:$0xff] }
 0x283   : > { %1379 = vmatmul.mubr.f32.gmra.mrb[4].mxu0 %v5617_v21  ;;  %2839 = vmatmul.mubr.f32.gmra.mrb[32].mxu1 %v5936_v6  ;;  %v7713_v21 = vld [vmem:[#allocation81_spill] sm:$0xff]  ;;  %v7726_v6 = vld [vmem:[#allocation88_spill] sm:$0xff] }
 0x284   : > { %3562 = vmatprep.mubr.msk.f32.mxu1 %vm659_vm2, %v5942_v4  ;;  %3380 = vmatprep.mubr.msk.f32.mxu0 %vm659_vm2, %v5620_v56  ;;  %v7714_v56 = vld [vmem:[#allocation5_spill] sm:$0xff] }
 0x285   : > { %v7727_v4 = vld [vmem:[#allocation89_spill] sm:$0xff] }
 0x287   : > { %1384 = vmatmul.mubr.f32.gmra.mrb[6].mxu0 %v5645_v49  ;;  %2844 = vmatmul.mubr.f32.gmra.mrb[34].mxu1 %v5951_v18  ;;  %v7715_v49 = vld [vmem:[#allocation63_spill] sm:$0xff] }
 0x288   : > { %3563 = vmatprep.mubr.msk.f32.mxu1 %vm659_vm2, %v5956_v17  ;;  %3381 = vmatprep.mubr.msk.f32.mxu0 %vm659_vm2, %v7704_v38  ;;  %v7728_v18 = vld [vmem:[#allocation83_spill] sm:$0xff] }
 0x289   : > { %v7729_v17 = vld [vmem:[#allocation91_spill] sm:$0xff] }
 0x28b   : > { %1389 = vmatmul.mubr.f32.gmra.mrb[8].mxu0 %v5673_v20  ;;  %2849 = vmatmul.mubr.f32.gmra.mrb[36].mxu1 %v5962_v31  ;;  %v7717_v20 = vld [vmem:[#allocation34_spill] sm:$0xff]  ;;  %v7725_v31 = vld [vmem:[#allocation36_spill] sm:$0xff] }
 0x28c   : > { %3564 = vmatprep.mubr.msk.f32.mxu1 %vm659_vm2, %v7662_v11  ;;  %3382 = vmatprep.mubr.msk.f32.mxu0 %vm659_vm2, %v7657_v51  ;;  %v7716_v51 = vld [vmem:[#allocation33_spill] sm:$0xff]  ;;  %v7719_v11 = vld [vmem:[#allocation67_spill] sm:$0xff] }
 0x28f   : > { %1394 = vmatmul.mubr.f32.gmra.mrb[10].mxu0 %v7705_v47  ;;  %2854 = vmatmul.mubr.f32.gmra.mrb[38].mxu1 %v5974_v37  ;;  %v7721_v37 = vld [vmem:[#allocation6_spill] sm:$0xff] }
 0x290   : > { %3565 = vmatprep.mubr.msk.f32.mxu1 %vm659_vm2, %v5979_v28  ;;  %3383 = vmatprep.mubr.msk.f32.mxu0 %vm659_vm2, %v7706_v32  ;;  %v7730_v28 = vld [vmem:[#allocation37_spill] sm:$0xff] }
 0x293   : > { %1399 = vmatmul.mubr.f32.gmra.mrb[12].mxu0 %v7658_v36  ;;  %2859 = vmatmul.mubr.f32.gmra.mrb[40].mxu1 %v7707_v54  ;;  %v7718_v36 = vld [vmem:[#allocation87_spill] sm:$0xff] }
 0x294   : > { %3566 = vmatprep.mubr.msk.f32.mxu1 %vm659_vm2, %v7708_v7  ;;  %3384 = vmatprep.mubr.msk.f32.mxu0 %vm659_vm2, %v7709_v45 }
 0x297   : > { %1404 = vmatmul.mubr.f32.gmra.mrb[14].mxu0 %v7710_v30  ;;  %2864 = vmatmul.mubr.f32.gmra.mrb[42].mxu1 %v7670_v5 }
 0x298   : > { %3567 = vmatprep.mubr.msk.f32.mxu1 %vm659_vm2, %v7671_v59  ;;  %3385 = vmatprep.mubr.msk.f32.mxu0 %vm659_vm2, %v7711_v26  ;;  %v7740_v59 = vld [vmem:[#allocation14_spill] sm:$0xff] }
 0x29b   : > { %1409 = vmatmul.mubr.f32.gmra.mrb[16].mxu0 %v7712_v10  ;;  %2869 = vmatmul.mubr.f32.gmra.mrb[44].mxu1 %v7674_v62 }
 0x29c   : > { %3568 = vmatprep.mubr.msk.f32.mxu1 %vm659_vm2, %v7675_v42  ;;  %3386 = vmatprep.mubr.msk.f32.mxu0 %vm659_vm2, %v7713_v21  ;;  %v7731_v42 = vld [vmem:[#allocation90_spill] sm:$0xff] }
 0x29f   : > { %1414 = vmatmul.mubr.f32.gmra.mrb[18].mxu0 %v7714_v56  ;;  %2874 = vmatmul.mubr.f32.gmra.mrb[46].mxu1 %v6020_v33  ;;  %v7732_v33 = vld [vmem:[#allocation93_spill] sm:$0xff] }
 0x2a0   : > { %3569 = vmatprep.mubr.msk.f32.mxu1 %vm659_vm2, %v7715_v49  ;;  %3387 = vmatprep.mubr.msk.f32.mxu0 %vm659_vm2, %v7716_v51 }
 0x2a3   : > { %1419 = vmatmul.mubr.f32.gmra.mrb[20].mxu0 %v7717_v20  ;;  %2879 = vmatmul.mubr.f32.gmra.mrb[48].mxu1 %v7718_v36 }
 0x2a4   : > { %3570 = vmatprep.mubr.msk.f32.mxu1 %vm659_vm2, %v7719_v11  ;;  %3388 = vmatprep.mubr.msk.f32.mxu0 %vm659_vm2, %v7720_v12 }
 0x2a7   : > { %1424 = vmatmul.mubr.f32.gmra.mrb[22].mxu0 %v7721_v37  ;;  %2884 = vmatmul.mubr.f32.gmra.mrb[50].mxu1 %v7722_v55 }
 0x2a8   : > { %3571 = vmatprep.mubr.msk.f32.mxu1 %vm659_vm2, %v7723_v15  ;;  %3389 = vmatprep.mubr.msk.f32.mxu0 %vm659_vm2, %v7724_v57 }
 0x2ab   : > { %1429 = vmatmul.mubr.f32.gmra.mrb[24].mxu0 %v7725_v31  ;;  %2889 = vmatmul.mubr.f32.gmra.mrb[52].mxu1 %v7726_v6 }
 0x2ac   : > { %3572 = vmatprep.mubr.msk.f32.mxu1 %vm659_vm2, %v7727_v4  ;;  %3390 = vmatprep.mubr.msk.f32.mxu0 %vm659_vm2, %v7728_v18 }
 0x2af   : > { %1434 = vmatmul.mubr.f32.gmra.mrb[26].mxu0 %v7677_v40  ;;  %2894 = vmatmul.mubr.f32.gmra.mrb[54].mxu1 %v7729_v17  ;;  %v7741_v40 = vld [vmem:[#allocation13_spill] sm:$0xff] }
 0x2b0   : > { %3391 = vmatprep.mubr.msk.f32.mxu0 %vm659_vm2, %v7730_v28  ;;  %3573 = vmatprep.mubr.msk.f32.mxu1 %vm659_vm2, %v7731_v42 }
 0x2b3   : > { %1439 = vmatmul.mubr.f32.gmra.mrb[28].mxu0 %v7679_v61  ;;  %2899 = vmatmul.mubr.f32.gmra.mrb[56].mxu1 %v7732_v33  ;;  %v7735_v61 = vld [vmem:[#allocation24_spill] sm:$0xff] }
 0x2b4   : > { %3392 = vmatprep.mubr.msk.f32.mxu0 %vm659_vm2, %v7680_v9  ;;  %3574 = vmatprep.mubr.msk.f32.mxu1 %vm659_vm2, %v7733_v58 }
 0x2b7   : > { %1444 = vmatmul.mubr.f32.gmra.mrb[30].mxu0 %v7681_v2  ;;  %2904 = vmatmul.mubr.f32.gmra.mrb[58].mxu1 %v7734_v52 }
 0x2b8   : > { %3393 = vmatprep.mubr.msk.f32.mxu0 %vm659_vm2, %v7682_v39  ;;  %3575 = vmatprep.mubr.msk.f32.mxu1 %vm659_vm2, %v7731_v42 }
 0x2bb   : > { %1449 = vmatmul.mubr.f32.gmra.mrb[32].mxu0 %v7683_v29  ;;  %2909 = vmatmul.mubr.f32.gmra.mrb[60].mxu1 %v7732_v33  ;;  %v7742_v29 = vld [vmem:[#allocation18_spill] sm:$0xff] }
 0x2bc   : > { %3394 = vmatprep.mubr.msk.f32.mxu0 %vm659_vm2, %v7684_v14  ;;  %3576 = vmatprep.mubr.msk.f32.mxu1 %vm659_vm2, %v7733_v58 }
 0x2bf   : > { %1454 = vmatmul.mubr.f32.gmra.mrb[34].mxu0 %v7685_v46  ;;  %2914 = vmatmul.mubr.f32.gmra.mrb[62].mxu1 %v7734_v52 }
 0x2c0   : > { %3395 = vmatprep.mubr.msk.f32.mxu0 %vm659_vm2, %v7686_v63 }
 0x2c3   : > { %1459 = vmatmul.mubr.f32.gmra.mrb[36].mxu0 %v6122_v48  ;;  %v7736_v48 = vld [vmem:[#allocation27_spill] sm:$0xff] }
 0x2c4   : > { %3396 = vmatprep.mubr.msk.f32.mxu0 %vm659_vm2, %v6116_v13  ;;  %v7737_v13 = vld [vmem:[#allocation15_spill] sm:$0xff] }
 0x2c7   : > { %1464 = vmatmul.mubr.f32.gmra.mrb[38].mxu0 %v6138_v44  ;;  %v7738_v44 = vld [vmem:[#allocation28_spill] sm:$0xff] }
 0x2c8   : > { %3397 = vmatprep.mubr.msk.f32.mxu0 %vm659_vm2, %v6142_v19  ;;  %v7739_v19 = vld [vmem:[#allocation10_spill] sm:$0xff] }
 0x2cb   : > { %1469 = vmatmul.mubr.f32.gmra.mrb[40].mxu0 %v7687_v8 }
 0x2cc   : > { %3398 = vmatprep.mubr.msk.f32.mxu0 %vm659_vm2, %v7688_v23 }
 0x2cf   : > { %1474 = vmatmul.mubr.f32.gmra.mrb[42].mxu0 %v7689_v43 }
 0x2d0   : > { %3399 = vmatprep.mubr.msk.f32.mxu0 %vm659_vm2, %v7690_v27 }
 0x2d3   : > { %1479 = vmatmul.mubr.f32.gmra.mrb[44].mxu0 %v7691_v35 }
 0x2d4   : > { %3400 = vmatprep.mubr.msk.f32.mxu0 %vm659_vm2, %v7693_v1 }
 0x2d7   : > { %1484 = vmatmul.mubr.f32.gmra.mrb[46].mxu0 %v7694_v24 }
 0x2d8   : > { %3401 = vmatprep.mubr.msk.f32.mxu0 %vm659_vm2, %v7695_v50 }
 0x2db   : > { %1489 = vmatmul.mubr.f32.gmra.mrb[48].mxu0 %v7696_v22 }
 0x2dc   : > { %3402 = vmatprep.mubr.msk.f32.mxu0 %vm659_vm2, %v7697_v41 }
 0x2df   : > { %1494 = vmatmul.mubr.f32.gmra.mrb[50].mxu0 %v7698_v34 }
 0x2e0   : > { %3403 = vmatprep.mubr.msk.f32.mxu0 %vm659_vm2, %v7699_v3 }
 0x2e3   : > { %1499 = vmatmul.mubr.f32.gmra.mrb[52].mxu0 %v7700_v16 }
 0x2e4   : > { %3404 = vmatprep.mubr.msk.f32.mxu0 %vm659_vm2, %v7701_v60 }
 0x2e7   : > { %1504 = vmatmul.mubr.f32.gmra.mrb[54].mxu0 %v7702_v25 }
 0x2e8   : > { %3405 = vmatprep.mubr.msk.f32.mxu0 %vm659_vm2, %v7735_v61 }
 0x2eb   : > { %1509 = vmatmul.mubr.f32.gmra.mrb[56].mxu0 %v7736_v48 }
 0x2ec   : > { %3406 = vmatprep.mubr.msk.f32.mxu0 %vm659_vm2, %v7737_v13 }
 0x2ef   : > { %1514 = vmatmul.mubr.f32.gmra.mrb[58].mxu0 %v7738_v44 }
 0x2f0   : > { %3407 = vmatprep.mubr.msk.f32.mxu0 %vm659_vm2, %v7739_v19 }
 0x2f3   : > { %1519 = vmatmul.mubr.f32.gmra.mrb[60].mxu0 %v7740_v59 }
 0x2f4   : > { %3408 = vmatprep.mubr.msk.f32.mxu0 %vm659_vm2, %v7741_v40 }
 0x2f7   : > { %1524 = vmatmul.mubr.f32.gmra.mrb[62].mxu0 %v7742_v29 }
 0x316   : > { %v2760_v5 = vpop.f32.mrb[0].mxu1 }
 0x317   : > { %2983 = vrot.lane.b32.xlu0 %v2760_v5, %s4165_s29  ;;  %v2762_v9 = vpop.f32.mrb[1].mxu1 }
 0x31a   : > { %v2765_v62 = vpop.f32.mrb[2].mxu1 }
 0x31b   : > { %v2767_v2 = vpop.f32.mrb[3].mxu1  ;;  %2985 = vrot.lane.b32.xlu1 %v2765_v62, %s4165_s29 }
 0x31e   : > { %v2770_v39 = vpop.f32.mrb[4].mxu1 }
 0x31f   : > { %2987 = vrot.lane.b32.xlu0 %v2770_v39, %s4165_s29  ;;  %v2772_v14 = vpop.f32.mrb[5].mxu1 }
 0x322   : > { %v2775_v46 = vpop.f32.mrb[6].mxu1 }
 0x323   : > { %v2777_v63 = vpop.f32.mrb[7].mxu1  ;;  %2989 = vrot.lane.b32.xlu1 %v2775_v46, %s4165_s29 }
 0x326   : > { %v2780_v8 = vpop.f32.mrb[8].mxu1 }
 0x327   : > { %2991 = vrot.lane.b32.xlu0 %v2780_v8, %s4165_s29  ;;  %v2782_v23 = vpop.f32.mrb[9].mxu1 }
 0x32a   : > { %v2785_v43 = vpop.f32.mrb[10].mxu1 }
 0x32b   : > { %v2787_v27 = vpop.f32.mrb[11].mxu1  ;;  %2993 = vrot.lane.b32.xlu1 %v2785_v43, %s4165_s29 }
 0x32e   : > { %v2790_v35 = vpop.f32.mrb[12].mxu1 }
 0x32f   : > { %2995 = vrot.lane.b32.xlu0 %v2790_v35, %s4165_s29  ;;  %v2792_v53 = vpop.f32.mrb[13].mxu1 }
 0x332   : > { %v2795_v1 = vpop.f32.mrb[14].mxu1 }
 0x333   : > { %v2797_v24 = vpop.f32.mrb[15].mxu1  ;;  %2997 = vrot.lane.b32.xlu1 %v2795_v1, %s4165_s29 }
 0x336   : > { %v2800_v50 = vpop.f32.mrb[16].mxu1 }
 0x337   : > { %2999 = vrot.lane.b32.xlu0 %v2800_v50, %s4165_s29  ;;  %v2802_v22 = vpop.f32.mrb[17].mxu1 }
 0x33a   : > { %v2805_v41 = vpop.f32.mrb[18].mxu1 }
 0x33b   : > { %v2807_v34 = vpop.f32.mrb[19].mxu1  ;;  %3001 = vrot.lane.b32.xlu1 %v2805_v41, %s4165_s29 }
 0x33e   : > { %v2810_v3 = vpop.f32.mrb[20].mxu1 }
 0x33f   : > { %3003 = vrot.lane.b32.xlu0 %v2810_v3, %s4165_s29  ;;  %v2812_v16 = vpop.f32.mrb[21].mxu1 }
 0x342   : > { %v2815_v60 = vpop.f32.mrb[22].mxu1 }
 0x343   : > { %v2817_v25 = vpop.f32.mrb[23].mxu1  ;;  %3005 = vrot.lane.b32.xlu1 %v2815_v60, %s4165_s29 }
 0x346   : > { %v2820_v0 = vpop.f32.mrb[24].mxu1 }
 0x347   : > { %3007 = vrot.lane.b32.xlu0 %v2820_v0, %s4165_s29  ;;  %v2822_v38 = vpop.f32.mrb[25].mxu1  ;;  %v6849_v0 = vld [vmem:[%s7072_s2] ss:$0 sm:$0xff] }
 0x34a   : > { %v2825_v47 = vpop.f32.mrb[26].mxu1 }
 0x34b   : > { %v2827_v32 = vpop.f32.mrb[27].mxu1  ;;  %3009 = vrot.lane.b32.xlu1 %v2825_v47, %s4165_s29 }
 0x34e   : > { %v6798_v54 = vpop.f32.mrb[0].mxu0  ;;  %v2830_v7 = vpop.f32.mrb[28].mxu1 }
 0x34f   : > { %3011 = vrot.lane.b32.xlu0 %v2830_v7, %s4165_s29  ;;  %v1372_v45 = vpop.f32.mrb[1].mxu0  ;;  %v2832_v30 = vpop.f32.mrb[29].mxu1 }
 0x352   : > { %v6801_v26 = vpop.f32.mrb[2].mxu0  ;;  %v2835_v10 = vpop.f32.mrb[30].mxu1 }
 0x353   : > { %v2837_v21 = vpop.f32.mrb[31].mxu1  ;;  %3013 = vrot.lane.b32.xlu1 %v2835_v10, %s4165_s29  ;;  %v1377_v56 = vpop.f32.mrb[3].mxu0 }
 0x356   : > { %v6804_v49 = vpop.f32.mrb[4].mxu0  ;;  %v2840_v51 = vpop.f32.mrb[32].mxu1 }
 0x357   : > { %3015 = vrot.lane.b32.xlu0 %v2840_v51, %s4165_s29  ;;  %v1382_v20 = vpop.f32.mrb[5].mxu0  ;;  %v2842_v36 = vpop.f32.mrb[33].mxu1 }
 0x35a   : > { %v6807_v11 = vpop.f32.mrb[6].mxu0  ;;  %v2845_v12 = vpop.f32.mrb[34].mxu1 }
 0x35b   : > { %v2847_v37 = vpop.f32.mrb[35].mxu1  ;;  %3017 = vrot.lane.b32.xlu1 %v2845_v12, %s4165_s29  ;;  %v1387_v55 = vpop.f32.mrb[7].mxu0 }
 0x35e   : > { %v6810_v15 = vpop.f32.mrb[8].mxu0  ;;  %v2850_v57 = vpop.f32.mrb[36].mxu1 }
 0x35f   : > { %3019 = vrot.lane.b32.xlu0 %v2850_v57, %s4165_s29  ;;  %v1392_v31 = vpop.f32.mrb[9].mxu0  ;;  %v2852_v6 = vpop.f32.mrb[37].mxu1 }
 0x362   : > { %v6813_v4 = vpop.f32.mrb[10].mxu0  ;;  %v2855_v18 = vpop.f32.mrb[38].mxu1 }
 0x363   : > { %v2857_v17 = vpop.f32.mrb[39].mxu1  ;;  %3021 = vrot.lane.b32.xlu1 %v2855_v18, %s4165_s29  ;;  %v1397_v28 = vpop.f32.mrb[11].mxu0 }
 0x366   : > { %v6816_v42 = vpop.f32.mrb[12].mxu0  ;;  %v2860_v33 = vpop.f32.mrb[40].mxu1 }
 0x367   : > { %3023 = vrot.lane.b32.xlu0 %v2860_v33, %s4165_s29  ;;  %v1402_v58 = vpop.f32.mrb[13].mxu0  ;;  %v2862_v52 = vpop.f32.mrb[41].mxu1 }
 0x36a   : > { %v6819_v61 = vpop.f32.mrb[14].mxu0  ;;  %v2865_v48 = vpop.f32.mrb[42].mxu1 }
 0x36b   : > { %v2867_v13 = vpop.f32.mrb[43].mxu1  ;;  %3025 = vrot.lane.b32.xlu1 %v2865_v48, %s4165_s29  ;;  %v1407_v44 = vpop.f32.mrb[15].mxu0 }
 0x36e   : > { %v6822_v19 = vpop.f32.mrb[16].mxu0  ;;  %v2870_v59 = vpop.f32.mrb[44].mxu1 }
 0x36f   : > { %3027 = vrot.lane.b32.xlu0 %v2870_v59, %s4165_s29  ;;  %v1412_v40 = vpop.f32.mrb[17].mxu0  ;;  %v2872_v29 = vpop.f32.mrb[45].mxu1 }
 0x372   : > { %v6825_v5 = vpop.f32.mrb[18].mxu0  ;;  %v2875_v9 = vpop.f32.mrb[46].mxu1 }
 0x373   : > { %v2877_v62 = vpop.f32.mrb[47].mxu1  ;;  %3029 = vrot.lane.b32.xlu1 %v2875_v9, %s4165_s29  ;;  %v1417_v2 = vpop.f32.mrb[19].mxu0 }
 0x376   : > { %v6828_v39 = vpop.f32.mrb[20].mxu0  ;;  %v2880_v14 = vpop.f32.mrb[48].mxu1 }
 0x377   : > { %3031 = vrot.lane.b32.xlu0 %v2880_v14, %s4165_s29  ;;  %v1422_v46 = vpop.f32.mrb[21].mxu0  ;;  %v2882_v63 = vpop.f32.mrb[49].mxu1 }
 0x37a   : > { %v6831_v8 = vpop.f32.mrb[22].mxu0  ;;  %v2885_v23 = vpop.f32.mrb[50].mxu1 }
 0x37b   : > { %v2887_v43 = vpop.f32.mrb[51].mxu1  ;;  %3033 = vrot.lane.b32.xlu1 %v2885_v23, %s4165_s29  ;;  %v1427_v27 = vpop.f32.mrb[23].mxu0 }
 0x37e   : > { %v6834_v35 = vpop.f32.mrb[24].mxu0  ;;  %v2890_v53 = vpop.f32.mrb[52].mxu1 }
 0x37f   : > { %3035 = vrot.lane.b32.xlu0 %v2890_v53, %s4165_s29  ;;  %v1432_v1 = vpop.f32.mrb[25].mxu0  ;;  %v2892_v24 = vpop.f32.mrb[53].mxu1 }
 0x382   : > { %v6837_v50 = vpop.f32.mrb[26].mxu0  ;;  %v2895_v22 = vpop.f32.mrb[54].mxu1 }
 0x383   : > { %v2897_v41 = vpop.f32.mrb[55].mxu1  ;;  %3037 = vrot.lane.b32.xlu1 %v2895_v22, %s4165_s29  ;;  %v1437_v34 = vpop.f32.mrb[27].mxu0 }
 0x386   : > { %v6841_v3 = vpop.f32.mrb[28].mxu0  ;;  %v2900_v16 = vpop.f32.mrb[56].mxu1 }
 0x387   : > { %3039 = vrot.lane.b32.xlu0 %v2900_v16, %s4165_s29  ;;  %v1442_v60 = vpop.f32.mrb[29].mxu0  ;;  %v2902_v25 = vpop.f32.mrb[57].mxu1 }
 0x389   : > { %v2984_v38 = vpop.permute.xlu0 %2983 }
 0x38a   : > { %v3079_v47 = vsel %vm659_vm2, %v6798_v54, %v2984_v38  ;;  %v6853_v32 = vpop.f32.mrb[30].mxu0  ;;  %v2905_v7 = vpop.f32.mrb[58].mxu1 }
 0x38b   : > { %v3118_v45 = vadd.f32 %v6849_v0, %v3079_v47  ;;  %v2907_v30 = vpop.f32.mrb[59].mxu1  ;;  %3041 = vrot.lane.b32.xlu1 %v2905_v7, %s4165_s29  ;;  %v1447_v10 = vpop.f32.mrb[31].mxu0 }
 0x38d   : > { %3150 = vst [vmem:[%s6857_s8] sm:$0xff] %v3118_v45  ;;  %v2986_v21 = vpop.permute.xlu1 %2985 }
 0x38e   : > { %v3080_v56 = vsel %vm659_vm2, %v6801_v26, %v2986_v21  ;;  %v6862_v54 = vpop.f32.mrb[32].mxu0  ;;  %v2910_v51 = vpop.f32.mrb[60].mxu1 }
 0x38f   : > { %v3119_v20 = vadd.f32 %v6849_v0, %v3080_v56  ;;  %3043 = vrot.lane.b32.xlu0 %v2910_v51, %s4165_s29  ;;  %v1452_v36 = vpop.f32.mrb[33].mxu0  ;;  %v2912_v12 = vpop.f32.mrb[61].mxu1 }
 0x391   : > { %3151 = vst [vmem:[%s6857_s8 + $0x8] sm:$0xff] %v3119_v20  ;;  %v2988_v37 = vpop.permute.xlu0 %2987 }
 0x392   : > { %v3081_v55 = vsel %vm659_vm2, %v6804_v49, %v2988_v37  ;;  %v6869_v57 = vpop.f32.mrb[34].mxu0  ;;  %v2915_v31 = vpop.f32.mrb[62].mxu1 }
 0x393   : > { %v3120_v26 = vadd.f32 %v6849_v0, %v3081_v55  ;;  %v2917_v6 = vpop.f32.mrb[63].mxu1  ;;  %3045 = vrot.lane.b32.xlu1 %v2915_v31, %s4165_s29  ;;  %v1457_v18 = vpop.f32.mrb[35].mxu0  ;;  %s3584_s29 = sshll.u32 %s4212_s16, 12  ;;  %s7029_s16 = scalar_lea.sflag [#allocation3], %s161_s5 }
 0x394   : > { %s7021_s17 = scalar_lea.hbm %s7073_s3, %s3584_s29 }
 0x395   : > { %3152 = vst [vmem:[%s6857_s8 + $0x10] sm:$0xff] %v3120_v26  ;;  %v2990_v17 = vpop.permute.xlu1 %2989 }
 0x396   : > { %v3082_v28 = vsel %vm659_vm2, %v6807_v11, %v2990_v17  ;;  %v6876_v33 = vpop.f32.mrb[36].mxu0 }
 0x397   : > { %v3121_v49 = vadd.f32 %v6849_v0, %v3082_v28  ;;  %v1462_v58 = vpop.f32.mrb[37].mxu0 }
 0x399   : > { %3153 = vst [vmem:[%s6857_s8 + $0x18] sm:$0xff] %v3121_v49  ;;  %v2992_v52 = vpop.permute.xlu0 %2991 }
 0x39a   : > { %v3083_v48 = vsel %vm659_vm2, %v6810_v15, %v2992_v52  ;;  %v6882_v13 = vpop.f32.mrb[38].mxu0 }
 0x39b   : > { %v3122_v44 = vadd.f32 %v6849_v0, %v3083_v48  ;;  %v1467_v59 = vpop.f32.mrb[39].mxu0 }
 0x39d   : > { %3154 = vst [vmem:[%s6857_s8 + $0x20] sm:$0xff] %v3122_v44  ;;  %v2994_v40 = vpop.permute.xlu1 %2993 }
 0x39e   : > { %v3084_v11 = vsel %vm659_vm2, %v6813_v4, %v2994_v40  ;;  %v6888_v29 = vpop.f32.mrb[40].mxu0 }
 0x39f   : > { %v3123_v9 = vadd.f32 %v6849_v0, %v3084_v11  ;;  %v1472_v62 = vpop.f32.mrb[41].mxu0 }
 0x3a1   : > { %3155 = vst [vmem:[%s6857_s8 + $0x28] sm:$0xff] %v3123_v9  ;;  %v2996_v2 = vpop.permute.xlu0 %2995 }
 0x3a2   : > { %v3085_v15 = vsel %vm659_vm2, %v6816_v42, %v2996_v2  ;;  %v6894_v14 = vpop.f32.mrb[42].mxu0 }
 0x3a3   : > { %v3124_v46 = vadd.f32 %v6849_v0, %v3085_v15  ;;  %v1477_v63 = vpop.f32.mrb[43].mxu0 }
 0x3a5   : > { %3156 = vst [vmem:[%s6857_s8 + $0x30] sm:$0xff] %v3124_v46  ;;  %v2998_v23 = vpop.permute.xlu1 %2997 }
 0x3a6   : > { %v3086_v4 = vsel %vm659_vm2, %v6819_v61, %v2998_v23  ;;  %v6900_v43 = vpop.f32.mrb[44].mxu0 }
 0x3a7   : > { %v3125_v27 = vadd.f32 %v6849_v0, %v3086_v4  ;;  %v1482_v53 = vpop.f32.mrb[45].mxu0 }
 0x3a9   : > { %3157 = vst [vmem:[%s6857_s8 + $0x38] sm:$0xff] %v3125_v27  ;;  %v3000_v1 = vpop.permute.xlu0 %2999 }
 0x3aa   : > { %v3087_v42 = vsel %vm659_vm2, %v6822_v19, %v3000_v1  ;;  %v6906_v24 = vpop.f32.mrb[46].mxu0 }
 0x3ab   : > { %v3126_v22 = vadd.f32 %v6849_v0, %v3087_v42  ;;  %v1487_v41 = vpop.f32.mrb[47].mxu0 }
 0x3ad   : > { %3158 = vst [vmem:[%s6857_s8 + $0x40] sm:$0xff] %v3126_v22  ;;  %v3002_v34 = vpop.permute.xlu1 %3001 }
 0x3ae   : > { %v3088_v61 = vsel %vm659_vm2, %v6825_v5, %v3002_v34  ;;  %v6912_v16 = vpop.f32.mrb[48].mxu0 }
 0x3af   : > { %v3127_v60 = vadd.f32 %v6849_v0, %v3088_v61  ;;  %v1492_v25 = vpop.f32.mrb[49].mxu0 }
 0x3b1   : > { %3159 = vst [vmem:[%s6857_s8 + $0x48] sm:$0xff] %v3127_v60  ;;  %v3004_v38 = vpop.permute.xlu0 %3003 }
 0x3b2   : > { %v3089_v19 = vsel %vm659_vm2, %v6828_v39, %v3004_v38  ;;  %v6918_v47 = vpop.f32.mrb[50].mxu0 }
 0x3b3   : > { %v3128_v7 = vadd.f32 %v6849_v0, %v3089_v19  ;;  %v1497_v45 = vpop.f32.mrb[51].mxu0 }
 0x3b5   : > { %3160 = vst [vmem:[%s6857_s8 + $0x50] sm:$0xff] %v3128_v7  ;;  %v3006_v30 = vpop.permute.xlu1 %3005 }
 0x3b6   : > { %v3090_v5 = vsel %vm659_vm2, %v6831_v8, %v3006_v30  ;;  %v6924_v10 = vpop.f32.mrb[52].mxu0 }
 0x3b7   : > { %v3129_v21 = vadd.f32 %v6849_v0, %v3090_v5  ;;  %v1502_v56 = vpop.f32.mrb[53].mxu0 }
 0x3b9   : > { %3161 = vst [vmem:[%s6857_s8 + $0x58] sm:$0xff] %v3129_v21  ;;  %v3008_v51 = vpop.permute.xlu0 %3007 }
 0x3ba   : > { %v3091_v39 = vsel %vm659_vm2, %v6834_v35, %v3008_v51  ;;  %v6930_v20 = vpop.f32.mrb[54].mxu0 }
 0x3bb   : > { %v3130_v36 = vadd.f32 %v6849_v0, %v3091_v39  ;;  %v1507_v12 = vpop.f32.mrb[55].mxu0 }
 0x3bd   : > { %3162 = vst [vmem:[%s6857_s8 + $0x60] sm:$0xff] %v3130_v36  ;;  %v3010_v37 = vpop.permute.xlu1 %3009 }
 0x3be   : > { %v3092_v8 = vsel %vm659_vm2, %v6837_v50, %v3010_v37  ;;  %v6936_v55 = vpop.f32.mrb[56].mxu0 }
 0x3bf   : > { %v3131_v31 = vadd.f32 %v6849_v0, %v3092_v8  ;;  %v1512_v26 = vpop.f32.mrb[57].mxu0 }
 0x3c1   : > { %3163 = vst [vmem:[%s6857_s8 + $0x68] sm:$0xff] %v3131_v31  ;;  %v3012_v6 = vpop.permute.xlu0 %3011 }
 0x3c2   : > { %v3093_v35 = vsel %vm659_vm2, %v6841_v3, %v3012_v6  ;;  %v6942_v18 = vpop.f32.mrb[58].mxu0 }
 0x3c3   : > { %v3132_v17 = vadd.f32 %v6849_v0, %v3093_v35  ;;  %v1517_v28 = vpop.f32.mrb[59].mxu0 }
 0x3c5   : > { %3164 = vst [vmem:[%s6857_s8 + $0x70] sm:$0xff] %v3132_v17  ;;  %v3014_v50 = vpop.permute.xlu1 %3013 }
 0x3c6   : > { %v3094_v49 = vsel %vm659_vm2, %v6853_v32, %v3014_v50  ;;  %v6948_v58 = vpop.f32.mrb[60].mxu0 }
 0x3c7   : > { %v3133_v52 = vadd.f32 %v6849_v0, %v3094_v49  ;;  %v1522_v48 = vpop.f32.mrb[61].mxu0 }
 0x3c9   : > { %3165 = vst [vmem:[%s6857_s8 + $0x78] sm:$0xff] %v3133_v52  ;;  %v3016_v3 = vpop.permute.xlu0 %3015 }
 0x3ca   : > { %v3095_v44 = vsel %vm659_vm2, %v6862_v54, %v3016_v3  ;;  %v6954_v59 = vpop.f32.mrb[62].mxu0 }
 0x3cb   : > { %v3134_v40 = vadd.f32 %v6849_v0, %v3095_v44  ;;  %v1527_v11 = vpop.f32.mrb[63].mxu0 }
 0x3cd   : > { %3166 = vst [vmem:[%s6857_s8 + $0x80] sm:$0xff] %v3134_v40  ;;  %v3018_v32 = vpop.permute.xlu1 %3017 }
 0x3ce   : > { %v3096_v9 = vsel %vm659_vm2, %v6869_v57, %v3018_v32 }
 0x3cf   : > { %v3135_v62 = vadd.f32 %v6849_v0, %v3096_v9 }
 0x3d1   : > { %3167 = vst [vmem:[%s6857_s8 + $0x88] sm:$0xff] %v3135_v62  ;;  %v3020_v2 = vpop.permute.xlu0 %3019 }
 0x3d2   : > { %v3097_v54 = vsel %vm659_vm2, %v6876_v33, %v3020_v2 }
 0x3d3   : > { %v3136_v15 = vadd.f32 %v6849_v0, %v3097_v54 }
 0x3d5   : > { %3168 = vst [vmem:[%s6857_s8 + $0x90] sm:$0xff] %v3136_v15  ;;  %v3022_v46 = vpop.permute.xlu1 %3021 }
 0x3d6   : > { %v3098_v63 = vsel %vm659_vm2, %v6882_v13, %v3022_v46 }
 0x3d7   : > { %v3137_v23 = vadd.f32 %v6849_v0, %v3098_v63 }
 0x3d9   : > { %3169 = vst [vmem:[%s6857_s8 + $0x98] sm:$0xff] %v3137_v23  ;;  %v3024_v57 = vpop.permute.xlu0 %3023 }
 0x3da   : > { %v3099_v4 = vsel %vm659_vm2, %v6888_v29, %v3024_v57 }
 0x3db   : > { %v3138_v27 = vadd.f32 %v6849_v0, %v3099_v4 }
 0x3dd   : > { %3170 = vst [vmem:[%s6857_s8 + $0xa0] sm:$0xff] %v3138_v27  ;;  %v3026_v33 = vpop.permute.xlu1 %3025 }
 0x3de   : > { %v3100_v53 = vsel %vm659_vm2, %v6894_v14, %v3026_v33 }
 0x3df   : > { %v3139_v1 = vadd.f32 %v6849_v0, %v3100_v53 }
 0x3e1   : > { %3171 = vst [vmem:[%s6857_s8 + $0xa8] sm:$0xff] %v3139_v1  ;;  %v3028_v13 = vpop.permute.xlu0 %3027 }
 0x3e2   : > { %v3101_v42 = vsel %vm659_vm2, %v6900_v43, %v3028_v13 }
 0x3e3   : > { %v3140_v22 = vadd.f32 %v6849_v0, %v3101_v42 }
 0x3e5   : > { %3172 = vst [vmem:[%s6857_s8 + $0xb0] sm:$0xff] %v3140_v22  ;;  %v3030_v29 = vpop.permute.xlu1 %3029 }
 0x3e6   : > { %v3102_v41 = vsel %vm659_vm2, %v6906_v24, %v3030_v29 }
 0x3e7   : > { %v3141_v34 = vadd.f32 %v6849_v0, %v3102_v41 }
 0x3e9   : > { %3173 = vst [vmem:[%s6857_s8 + $0xb8] sm:$0xff] %v3141_v34  ;;  %v3032_v14 = vpop.permute.xlu0 %3031 }
 0x3ea   : > { %v3103_v61 = vsel %vm659_vm2, %v6912_v16, %v3032_v14 }
 0x3eb   : > { %v3142_v60 = vadd.f32 %v6849_v0, %v3103_v61 }
 0x3ed   : > { %3174 = vst [vmem:[%s6857_s8 + $0xc0] sm:$0xff] %v3142_v60  ;;  %v3034_v43 = vpop.permute.xlu1 %3033 }
 0x3ee   : > { %v3104_v25 = vsel %vm659_vm2, %v6918_v47, %v3034_v43 }
 0x3ef   : > { %v3143_v38 = vadd.f32 %v6849_v0, %v3104_v25 }
 0x3f1   : > { %3175 = vst [vmem:[%s6857_s8 + $0xc8] sm:$0xff] %v3143_v38  ;;  %v3036_v24 = vpop.permute.xlu0 %3035 }
 0x3f2   : > { %v3105_v19 = vsel %vm659_vm2, %v6924_v10, %v3036_v24 }
 0x3f3   : > { %v3144_v7 = vadd.f32 %v6849_v0, %v3105_v19 }
 0x3f5   : > { %3176 = vst [vmem:[%s6857_s8 + $0xd0] sm:$0xff] %v3144_v7  ;;  %v3038_v16 = vpop.permute.xlu1 %3037 }
 0x3f6   : > { %v3106_v45 = vsel %vm659_vm2, %v6930_v20, %v3038_v16 }
 0x3f7   : > { %v3145_v47 = vadd.f32 %v6849_v0, %v3106_v45 }
 0x3f9   : > { %3177 = vst [vmem:[%s6857_s8 + $0xd8] sm:$0xff] %v3145_v47  ;;  %v3040_v30 = vpop.permute.xlu0 %3039 }
 0x3fa   : > { %v3107_v5 = vsel %vm659_vm2, %v6936_v55, %v3040_v30 }
 0x3fb   : > { %v3146_v21 = vadd.f32 %v6849_v0, %v3107_v5 }
 0x3fd   : > { %3178 = vst [vmem:[%s6857_s8 + $0xe0] sm:$0xff] %v3146_v21  ;;  %v3042_v10 = vpop.permute.xlu1 %3041 }
 0x3fe   : > { %v3108_v56 = vsel %vm659_vm2, %v6942_v18, %v3042_v10 }
 0x3ff   : > { %v3147_v51 = vadd.f32 %v6849_v0, %v3108_v56 }
 0x401   : > { %3179 = vst [vmem:[%s6857_s8 + $0xe8] sm:$0xff] %v3147_v51  ;;  %v3044_v39 = vpop.permute.xlu0 %3043 }
 0x402   : > { %v3109_v20 = vsel %vm659_vm2, %v6948_v58, %v3044_v39 }
 0x403   : > { %v3148_v36 = vadd.f32 %v6849_v0, %v3109_v20 }
 0x405   : > { %3180 = vst [vmem:[%s6857_s8 + $0xf0] sm:$0xff] %v3148_v36  ;;  %v3046_v12 = vpop.permute.xlu1 %3045 }
 0x406   : > { %v3110_v37 = vsel %vm659_vm2, %v6954_v59, %v3046_v12 }
 0x407   : > { %v3149_v8 = vadd.f32 %v6849_v0, %v3110_v37 }
 0x409   : > { %3181 = vst [vmem:[%s6857_s8 + $0xf8] sm:$0xff] %v3149_v8 }
 0x40a   : > { %4114 = shalt.err (!%p4111_p3)
}
 0x40b   : > { %s4115_s26 = scalar_lea.hbm %s7021_s17, 4096  ;;  %s4119_s4 = scalar_lea.hbm %s7073_s3, 8192 }
 0x40c   : > { %p4116_p4 = scmp.ne.s32.totalorder %s7021_s17, %s4115_s26  ;;  %p4120_p9 = scmp.lt.u32.totalorder %s7021_s17, %s7073_s3 }
 0x40d   : > { %p4121_p10 = scmp.lt.u32.totalorder %s4119_s4, %s4115_s26  ;;  %p4123_p12 = scmp.lt.u32.totalorder %s4115_s26, %s7021_s17 }
 0x40e   : > { %p4117_p7 = pnand %p4116_p4, %p4229_p5 }
 0x40f   : > { %p4122_p11 = por %p4121_p10, %p4120_p9 }
 0x410   : > { %p4118_p8 = pneg %p4117_p7 }
 0x411   : > { %p4124_p13 = por %p4123_p12, %p4122_p11 }
 0x413   : > { %p4125_p0 = pnand %p4124_p13, %p4118_p8 }
 0x415   : > { %4128 = shalt.err (!%p4125_p0)
}
 0x416   : > { %s4169_s28 = smov 128   ;;  %s4170_s7 = smov 8  }
 0x417   : > { %4057 = dma.vmem_to_hbm [thread:$0]  (%p4229_p5), %s7023_s9, 4096, %s7021_s17, %s7029_s16, %s4169_s28, %s4169_s28, %s4170_s7  }
 0x418 PF: > { %p4063_p1 = scmp.ge.s32.totalorder %s4163_s15, 2  ;;  %s3211_s8 = sand.u32 1, %s4151_s12  }
 0x419   : > { %s3212_s29 = scalar_lea.sflag [#allocation3], %s3211_s8 }
 0x41a   : > { %p4060_p2 = pnand %p4063_p1, %p4233_p6 }
 0x41c   : > { %4146 = dma.done.wait (!%p4060_p2), %s3212_s29, 4096  }
 0x41d   : > { %4148 = vsyncadd (!%p4060_p2), %s3212_s29, 4294963200  ;;  %p13_p3 = scmp.ge.s32.totalorder %s4216_s18, 4   ;;  %s7743_s12 = smov %s4155_s13 }
 0x41e   : > { %s7744_s13 = smov %s4159_s14  ;;  %s7745_s14 = smov %s4227_s21 }
 0x41f   : > { %s7746_s15 = smov %s4216_s18  ;;  %15 = sbr.rel (!%p13_p3) target bundleno = 3 (0x3), region = 72 }
 0x426   :  { %3217 = vsyncpa [#allocation3], 1 }
 0x427   :  { %3219 = vsyncpa [#allocation3 + $0x1], 1 }

</bundles_post_ra>
